<compile_context>
chip_gen: v7x
topology: tpu7x:2x2x1
jax: 0.10.0
libtpu: 0.0.40
codegen_flags: <defaults>
</compile_context>

<pallas_src>
import functools

import jax
import jax.numpy as jnp
from jax.experimental import pallas as pl
from jax.experimental.pallas import tpu as pltpu

IN_FEATS = 1433
HID_FEATS = 16
OUT_FEATS = 7


def _round_up(a, b):
    return (a + b - 1) // b * b


IN_PAD = _round_up(IN_FEATS, 128)   # 1536: lane-dense x loads / W1 rows
HID_PAD = 128                       # hidden dim padded to one full lane width
OUT_PAD = 128                       # output dim padded to one full lane width
ROW_TILE = 256                      # node-row tile (multiple of 8; fits all chips)
MAX_RESIDENT_K = 8192               # keep all adj columns resident up to this many nodes
BIG_K_TILE = 2048                   # reduction tile for larger graphs (bounded VMEM)


def _choose_padding(n, max_resident_k):
    """Pick padded node count and the adjacency-column (reduction) tile.

    Small/medium graphs keep every adjacency column of a row tile resident
    (one reduction step => minimal per-step overhead).  Large graphs tile the
    reduction axis so VMEM stays bounded; padding is exact (zeros).
    """
    n_pad = _round_up(max(n, ROW_TILE), ROW_TILE)
    if n_pad <= max_resident_k:
        return n_pad, n_pad
    k_tile = max(ROW_TILE, min(BIG_K_TILE, max_resident_k))
    return _round_up(n_pad, k_tile), k_tile


# ----------------------------- kernels --------------------------------------

def feat_transform_kernel(x_ref, w1_ref, z1_ref):
    # z1 = x @ W1   (reassociated layer 1: multiply by the small weight first)
    z1_ref[...] = jnp.dot(x_ref[...], w1_ref[...],
                          preferred_element_type=jnp.float32)


def layer1_agg_kernel(adj_ref, z1_ref, b1_ref, w2_ref, z2_ref, acc_ref):
    # acc = adj @ z1 + b1  (accumulated over the adjacency-column grid axis)
    # finalize: h1 = relu(acc) ; z2 = h1 @ W2   (second transform fused here)
    k = pl.program_id(1)

    @pl.when(k == 0)
    def _init():
        acc_ref[...] = jnp.zeros_like(acc_ref) + b1_ref[...]

    adj = adj_ref[...].astype(jnp.float32)   # adj stored as bf16 ({0,1} exact)
    acc_ref[...] += jnp.dot(adj, z1_ref[...], preferred_element_type=jnp.float32)

    @pl.when(k == pl.num_programs(1) - 1)
    def _finalize():
        h1 = jnp.maximum(acc_ref[...], 0.0)
        z2_ref[...] = jnp.dot(h1, w2_ref[...], preferred_element_type=jnp.float32)


def layer2_agg_kernel(adj_ref, z2_ref, b2_ref, out_ref):
    # out = adj @ z2 + b2   (output tile is resident across the reduction axis)
    k = pl.program_id(1)

    @pl.when(k == 0)
    def _init():
        out_ref[...] = jnp.zeros_like(out_ref) + b2_ref[...]

    adj = adj_ref[...].astype(jnp.float32)
    out_ref[...] += jnp.dot(adj, z2_ref[...], preferred_element_type=jnp.float32)


# ----------------------------- wrapper ---------------------------------------

@functools.partial(jax.jit, static_argnames=("max_resident_k",))
def gcn_net_forward(adj, x, w1, b1, w2, b2, *, max_resident_k=MAX_RESIDENT_K):
    """Two-layer GCN forward, row-tiled over nodes (3 streaming Pallas passes)."""
    n = x.shape[0]
    n_pad, k_tile = _choose_padding(n, max_resident_k)
    row_grid = n_pad // ROW_TILE
    k_grid = n_pad // k_tile
    f32 = jnp.float32

    # Zero-pad: node count to a multiple of the tiles, feature dims to 128
    # lanes. Zero padding is exact — padded adj columns only ever multiply
    # zero-padded feature rows, and padded output rows/cols are sliced away.
    adj_p = (jnp.zeros((n_pad, n_pad), jnp.bfloat16)
             .at[:n, :n].set(adj.astype(jnp.bfloat16)))   # lossless for {0,1}
    x_p = jnp.zeros((n_pad, IN_PAD), f32).at[:n, :IN_FEATS].set(x.astype(f32))
    w1_p = jnp.zeros((IN_PAD, HID_PAD), f32).at[:IN_FEATS, :HID_FEATS].set(w1)
    b1_p = jnp.zeros((1, HID_PAD), f32).at[:, :HID_FEATS].set(b1.reshape(1, -1))
    w2_p = jnp.zeros((HID_PAD, OUT_PAD), f32).at[:HID_FEATS, :OUT_FEATS].set(w2)
    b2_p = jnp.zeros((1, OUT_PAD), f32).at[:, :OUT_FEATS].set(b2.reshape(1, -1))

    cparams_1d = pltpu.CompilerParams(
        dimension_semantics=("parallel",),              # 2 TCs on v7x split rows
        vmem_limit_bytes=32 * 1024 * 1024)
    cparams_2d = pltpu.CompilerParams(
        dimension_semantics=("parallel", "arbitrary"),  # rows parallel, reduction serial
        vmem_limit_bytes=32 * 1024 * 1024)

    # ---- Pass 1: z1 = x @ W1  — row-tiled over nodes -------------------------
    z1 = pl.pallas_call(
        feat_transform_kernel,
        out_shape=jax.ShapeDtypeStruct((n_pad, HID_PAD), f32),
        grid=(row_grid,),
        in_specs=[pl.BlockSpec((ROW_TILE, IN_PAD), lambda i: (i, 0)),
                  pl.BlockSpec((IN_PAD, HID_PAD), lambda i: (0, 0))],
        out_specs=pl.BlockSpec((ROW_TILE, HID_PAD), lambda i: (i, 0)),
        compiler_params=cparams_1d,
        cost_estimate=pl.CostEstimate(
            flops=2 * n_pad * IN_PAD * HID_PAD,
            transcendentals=0,
            bytes_accessed=4 * (n_pad * IN_PAD + IN_PAD * HID_PAD
                                + n_pad * HID_PAD)),
    )(x_p, w1_p)

    # ---- Pass 2: h1 = relu(adj @ z1 + b1); z2 = h1 @ W2 (fused) --------------
    z2 = pl.pallas_call(
        layer1_agg_kernel,
        out_shape=jax.ShapeDtypeStruct((n_pad, OUT_PAD), f32),
        grid=(row_grid, k_grid),
        in_specs=[pl.BlockSpec((ROW_TILE, k_tile), lambda i, k: (i, k)),   # adj tile
                  pl.BlockSpec((k_tile, HID_PAD), lambda i, k: (k, 0)),    # z1 tile
                  pl.BlockSpec((1, HID_PAD), lambda i, k: (0, 0)),         # b1
                  pl.BlockSpec((HID_PAD, OUT_PAD), lambda i, k: (0, 0))],  # W2
        out_specs=pl.BlockSpec((ROW_TILE, OUT_PAD), lambda i, k: (i, 0)),
        scratch_shapes=[pltpu.VMEM((ROW_TILE, HID_PAD), f32)],
        compiler_params=cparams_2d,
        cost_estimate=pl.CostEstimate(
            flops=2 * n_pad * n_pad * HID_PAD + 2 * n_pad * HID_PAD * OUT_PAD,
            transcendentals=0,
            bytes_accessed=2 * n_pad * n_pad
                           + 4 * (row_grid * n_pad * HID_PAD + HID_PAD
                                  + HID_PAD * OUT_PAD + n_pad * OUT_PAD)),
    )(adj_p, z1, b1_p, w2_p)

    # ---- Pass 3: out = adj @ z2 + b2 ------------------------------------------
    out_p = pl.pallas_call(
        layer2_agg_kernel,
        out_shape=jax.ShapeDtypeStruct((n_pad, OUT_PAD), f32),
        grid=(row_grid, k_grid),
        in_specs=[pl.BlockSpec((ROW_TILE, k_tile), lambda i, k: (i, k)),   # adj tile
                  pl.BlockSpec((k_tile, OUT_PAD), lambda i, k: (k, 0)),    # z2 tile
                  pl.BlockSpec((1, OUT_PAD), lambda i, k: (0, 0))],        # b2
        out_specs=pl.BlockSpec((ROW_TILE, OUT_PAD), lambda i, k: (i, 0)),
        compiler_params=cparams_2d,
        cost_estimate=pl.CostEstimate(
            flops=2 * n_pad * n_pad * OUT_PAD,
            transcendentals=0,
            bytes_accessed=2 * n_pad * n_pad
                           + 4 * (row_grid * n_pad * OUT_PAD + OUT_PAD
                                  + n_pad * OUT_PAD)),
    )(adj_p, z2, b2_p)

    return out_p[:n, :OUT_FEATS]


# ----------------------------- init / demo -----------------------------------

def init_params(key):
    """Deterministic init mimicking torch nn.Linear default (U[-1/sqrt(fan_in), +]).

    Weights stored as (in_feats, out_feats) so the math is h @ W + b.
    """
    k1, k2, k3, k4 = jax.random.split(key, 4)
    bound1 = 1.0 / jnp.sqrt(float(IN_FEATS))
    bound2 = 1.0 / jnp.sqrt(float(HID_FEATS))
    w1 = jax.random.uniform(k1, (IN_FEATS, HID_FEATS), jnp.float32, -bound1, bound1)
    b1 = jax.random.uniform(k2, (HID_FEATS,), jnp.float32, -bound1, bound1)
    w2 = jax.random.uniform(k3, (HID_FEATS, OUT_FEATS), jnp.float32, -bound2, bound2)
    b2 = jax.random.uniform(k4, (OUT_FEATS,), jnp.float32, -bound2, bound2)
    return w1, b1, w2, b2


if __name__ == "__main__":
    key = jax.random.PRNGKey(0)
    k_feat, k_adj, k_param = jax.random.split(key, 3)

    # Small synthetic graph: N nodes, sparse random directed edges + self-loops.
    # N=300 pads to 512 -> exercises multiple row tiles.
    N = 300
    features = jax.random.normal(k_feat, (N, IN_FEATS), jnp.float32)
    adj = (jax.random.uniform(k_adj, (N, N)) < 0.05).astype(jnp.float32)
    adj = jnp.maximum(adj, jnp.eye(N, dtype=jnp.float32))  # self-loops

    w1, b1, w2, b2 = init_params(k_param)

    # Default path: reduction axis fully resident (single K step per row tile).
    out = gcn_net_forward(adj, features, w1, b1, w2, b2)
    out = jax.block_until_ready(out)

    # Also exercise the large-graph K-tiled reduction path on the same inputs.
    out_kt = gcn_net_forward(adj, features, w1, b1, w2, b2, max_resident_k=256)
    out_kt = jax.block_until_ready(out_kt)

    # Pure-JAX reference (same association as the kernel; mathematically
    # identical to the module's (adj @ x) @ W order by matmul associativity).
    ref_h1 = jnp.maximum(adj @ (features @ w1) + b1, 0.0)
    ref = adj @ (ref_h1 @ w2) + b2

    assert out.shape == (N, OUT_FEATS)
    assert bool(jnp.all(jnp.isfinite(out)))
    assert jnp.allclose(out, ref, atol=1e-3, rtol=1e-3)
    assert jnp.allclose(out_kt, ref, atol=1e-3, rtol=1e-3)

    print("KERNEL_OK")
</pallas_src>

<mosaic_0001>
module attributes {stable_mosaic.version = 11 : i64} {
  func.func @feat_transform_kernel(%arg0: i32, %arg1: memref<256x1536xf32, #tpu.memory_space<vmem>>, %arg2: memref<1536x128xf32, #tpu.memory_space<vmem>>, %arg3: memref<256x128xf32, #tpu.memory_space<vmem>>) attributes {dimension_semantics = [#tpu.dimension_semantics<parallel>], iteration_bounds = array<i64: 2>, scalar_prefetch = 0 : i64, scratch_operands = 0 : i64, tpu.core_type = #tpu.core_type<tc>, window_params = [{transform_indices = @transform_0, window_bounds = array<i64: 256, 1536>}, {pipeline_mode = #tpu.pipeline_mode<synchronous>, transform_indices = @transform_1, window_bounds = array<i64: 1536, 128>}, {transform_indices = @transform_2, window_bounds = array<i64: 256, 128>}]} {
    %c0 = arith.constant 0 : index
    %c0_0 = arith.constant 0 : index
    %0 = vector.load %arg1[%c0, %c0_0] : memref<256x1536xf32, #tpu.memory_space<vmem>>, vector<256x1536xf32>
    %c0_1 = arith.constant 0 : index
    %c0_2 = arith.constant 0 : index
    %1 = vector.load %arg2[%c0_1, %c0_2] : memref<1536x128xf32, #tpu.memory_space<vmem>>, vector<1536x128xf32>
    %cst = arith.constant dense<0.000000e+00> : vector<256x128xf32>
    %2 = tpu.matmul %0, %1, %cst {dimension_numbers = #tpu.dot_dimension_numbers<[1], [0], [0], [1], [0, 0, 1, 1], [], []>} : vector<256x1536xf32>, vector<1536x128xf32>, vector<256x128xf32> -> vector<256x128xf32>
    %c0_3 = arith.constant 0 : index
    %c0_4 = arith.constant 0 : index
    %3 = vector.load %arg3[%c0_3, %c0_4] : memref<256x128xf32, #tpu.memory_space<vmem>>, vector<256x128xf32>
    tpu.vector_store %arg3[%c0_3, %c0_4], %2 {strides = array<i32>} : memref<256x128xf32, #tpu.memory_space<vmem>>, vector<256x128xf32>,
    return
  }
  func.func @transform_0(%arg0: i32) -> (i32, i32) {
    %c0_i32 = arith.constant 0 : i32
    %c0_i32_0 = arith.constant 0 : i32
    return %arg0, %c0_i32 : i32, i32
  }
  func.func @transform_1(%arg0: i32) -> (i32, i32) {
    %c0_i32 = arith.constant 0 : i32
    %c0_i32_0 = arith.constant 0 : i32
    %c0_i32_1 = arith.constant 0 : i32
    return %c0_i32, %c0_i32_0 : i32, i32
  }
  func.func @transform_2(%arg0: i32) -> (i32, i32) {
    %c0_i32 = arith.constant 0 : i32
    %c0_i32_0 = arith.constant 0 : i32
    return %arg0, %c0_i32 : i32, i32
  }
}

module attributes {stable_mosaic.version = 11 : i64} {
  func.func @layer1_agg_kernel(%arg0: i32, %arg1: i32, %arg2: memref<256x512xbf16, #tpu.memory_space<vmem>>, %arg3: memref<512x128xf32, #tpu.memory_space<vmem>>, %arg4: memref<1x128xf32, #tpu.memory_space<vmem>>, %arg5: memref<128x128xf32, #tpu.memory_space<vmem>>, %arg6: memref<256x128xf32, #tpu.memory_space<vmem>>, %arg7: memref<256x128xf32, #tpu.memory_space<vmem>>) attributes {dimension_semantics = [#tpu.dimension_semantics<parallel>, #tpu.dimension_semantics<arbitrary>], iteration_bounds = array<i64: 2, 1>, scalar_prefetch = 0 : i64, scratch_operands = 1 : i64, tpu.core_type = #tpu.core_type<tc>, window_params = [{transform_indices = @transform_0, window_bounds = array<i64: 256, 512>}, {transform_indices = @transform_1, window_bounds = array<i64: 512, 128>}, {pipeline_mode = #tpu.pipeline_mode<synchronous>, transform_indices = @transform_2, window_bounds = array<i64: 1, 128>}, {pipeline_mode = #tpu.pipeline_mode<synchronous>, transform_indices = @transform_3, window_bounds = array<i64: 128, 128>}, {transform_indices = @transform_4, window_bounds = array<i64: 256, 128>}]} {
    %c0_i32 = arith.constant 0 : i32
    %0 = arith.cmpi eq, %arg1, %c0_i32 : i32
    %1 = arith.extui %0 : i1 to i32
    %c0_i32_0 = arith.constant 0 : i32
    %2 = arith.cmpi ne, %1, %c0_i32_0 : i32
    scf.if %2 {
      %cst_10 = arith.constant 0.000000e+00 : f32
      %13 = vector.broadcast %cst_10 : f32 to vector<256x128xf32>
      %c0_11 = arith.constant 0 : index
      %c0_12 = arith.constant 0 : index
      %14 = vector.load %arg4[%c0_11, %c0_12] : memref<1x128xf32, #tpu.memory_space<vmem>>, vector<1x128xf32>
      %15 = vector.broadcast %14 : vector<1x128xf32> to vector<256x128xf32>
      %16 = arith.addf %13, %15 : vector<256x128xf32>
      %c0_13 = arith.constant 0 : index
      %c0_14 = arith.constant 0 : index
      %17 = vector.load %arg7[%c0_13, %c0_14] : memref<256x128xf32, #tpu.memory_space<vmem>>, vector<256x128xf32>
      tpu.vector_store %arg7[%c0_13, %c0_14], %16 {strides = array<i32>} : memref<256x128xf32, #tpu.memory_space<vmem>>, vector<256x128xf32>,
    } else {
    }
    %c0 = arith.constant 0 : index
    %c0_1 = arith.constant 0 : index
    %3 = vector.load %arg2[%c0, %c0_1] : memref<256x512xbf16, #tpu.memory_space<vmem>>, vector<256x512xbf16>
    %4 = arith.extf %3 : vector<256x512xbf16> to vector<256x512xf32>
    %c0_2 = arith.constant 0 : index
    %c0_3 = arith.constant 0 : index
    %5 = vector.load %arg7[%c0_2, %c0_3] : memref<256x128xf32, #tpu.memory_space<vmem>>, vector<256x128xf32>
    %c0_4 = arith.constant 0 : index
    %c0_5 = arith.constant 0 : index
    %6 = vector.load %arg3[%c0_4, %c0_5] : memref<512x128xf32, #tpu.memory_space<vmem>>, vector<512x128xf32>
    %cst = arith.constant dense<0.000000e+00> : vector<256x128xf32>
    %7 = tpu.matmul %4, %6, %cst {dimension_numbers = #tpu.dot_dimension_numbers<[1], [0], [0], [1], [0, 0, 1, 1], [], []>} : vector<256x512xf32>, vector<512x128xf32>, vector<256x128xf32> -> vector<256x128xf32>
    %8 = arith.addf %5, %7 : vector<256x128xf32>
    %c0_6 = arith.constant 0 : index
    %c0_7 = arith.constant 0 : index
    %9 = vector.load %arg7[%c0_6, %c0_7] : memref<256x128xf32, #tpu.memory_space<vmem>>, vector<256x128xf32>
    tpu.vector_store %arg7[%c0_6, %c0_7], %8 {strides = array<i32>} : memref<256x128xf32, #tpu.memory_space<vmem>>, vector<256x128xf32>,
    %c0_i32_8 = arith.constant 0 : i32
    %10 = arith.cmpi eq, %arg1, %c0_i32_8 : i32
    %11 = arith.extui %10 : i1 to i32
    %c0_i32_9 = arith.constant 0 : i32
    %12 = arith.cmpi ne, %11, %c0_i32_9 : i32
    scf.if %12 {
      %c0_10 = arith.constant 0 : index
      %c0_11 = arith.constant 0 : index
      %13 = vector.load %arg7[%c0_10, %c0_11] : memref<256x128xf32, #tpu.memory_space<vmem>>, vector<256x128xf32>
      %cst_12 = arith.constant 0.000000e+00 : f32
      %14 = vector.broadcast %cst_12 : f32 to vector<256x128xf32>
      %15 = arith.maximumf %13, %14 : vector<256x128xf32>
      %c0_13 = arith.constant 0 : index
      %c0_14 = arith.constant 0 : index
      %16 = vector.load %arg5[%c0_13, %c0_14] : memref<128x128xf32, #tpu.memory_space<vmem>>, vector<128x128xf32>
      %cst_15 = arith.constant dense<0.000000e+00> : vector<256x128xf32>
      %17 = tpu.matmul %15, %16, %cst_15 {dimension_numbers = #tpu.dot_dimension_numbers<[1], [0], [0], [1], [0, 0, 1, 1], [], []>} : vector<256x128xf32>, vector<128x128xf32>, vector<256x128xf32> -> vector<256x128xf32>
      %c0_16 = arith.constant 0 : index
      %c0_17 = arith.constant 0 : index
      %18 = vector.load %arg6[%c0_16, %c0_17] : memref<256x128xf32, #tpu.memory_space<vmem>>, vector<256x128xf32>
      tpu.vector_store %arg6[%c0_16, %c0_17], %17 {strides = array<i32>} : memref<256x128xf32, #tpu.memory_space<vmem>>, vector<256x128xf32>,
    } else {
    }
    return
  }
  func.func @transform_0(%arg0: i32, %arg1: i32) -> (i32, i32) {
    %c0_i32 = arith.constant 0 : i32
    return %arg0, %arg1 : i32, i32
  }
  func.func @transform_1(%arg0: i32, %arg1: i32) -> (i32, i32) {
    %c0_i32 = arith.constant 0 : i32
    %c0_i32_0 = arith.constant 0 : i32
    return %arg1, %c0_i32 : i32, i32
  }
  func.func @transform_2(%arg0: i32, %arg1: i32) -> (i32, i32) {
    %c0_i32 = arith.constant 0 : i32
    %c0_i32_0 = arith.constant 0 : i32
    %c0_i32_1 = arith.constant 0 : i32
    return %c0_i32, %c0_i32_0 : i32, i32
  }
  func.func @transform_3(%arg0: i32, %arg1: i32) -> (i32, i32) {
    %c0_i32 = arith.constant 0 : i32
    %c0_i32_0 = arith.constant 0 : i32
    %c0_i32_1 = arith.constant 0 : i32
    return %c0_i32, %c0_i32_0 : i32, i32
  }
  func.func @transform_4(%arg0: i32, %arg1: i32) -> (i32, i32) {
    %c0_i32 = arith.constant 0 : i32
    %c0_i32_0 = arith.constant 0 : i32
    return %arg0, %c0_i32 : i32, i32
  }
}

module attributes {stable_mosaic.version = 11 : i64} {
  func.func @layer2_agg_kernel(%arg0: i32, %arg1: i32, %arg2: memref<256x512xbf16, #tpu.memory_space<vmem>>, %arg3: memref<512x128xf32, #tpu.memory_space<vmem>>, %arg4: memref<1x128xf32, #tpu.memory_space<vmem>>, %arg5: memref<256x128xf32, #tpu.memory_space<vmem>>) attributes {dimension_semantics = [#tpu.dimension_semantics<parallel>, #tpu.dimension_semantics<arbitrary>], iteration_bounds = array<i64: 2, 1>, scalar_prefetch = 0 : i64, scratch_operands = 0 : i64, tpu.core_type = #tpu.core_type<tc>, window_params = [{transform_indices = @transform_0, window_bounds = array<i64: 256, 512>}, {transform_indices = @transform_1, window_bounds = array<i64: 512, 128>}, {pipeline_mode = #tpu.pipeline_mode<synchronous>, transform_indices = @transform_2, window_bounds = array<i64: 1, 128>}, {transform_indices = @transform_3, window_bounds = array<i64: 256, 128>}]} {
    %c0_i32 = arith.constant 0 : i32
    %0 = arith.cmpi eq, %arg1, %c0_i32 : i32
    %1 = arith.extui %0 : i1 to i32
    %c0_i32_0 = arith.constant 0 : i32
    %2 = arith.cmpi ne, %1, %c0_i32_0 : i32
    scf.if %2 {
      %cst_8 = arith.constant 0.000000e+00 : f32
      %10 = vector.broadcast %cst_8 : f32 to vector<256x128xf32>
      %c0_9 = arith.constant 0 : index
      %c0_10 = arith.constant 0 : index
      %11 = vector.load %arg4[%c0_9, %c0_10] : memref<1x128xf32, #tpu.memory_space<vmem>>, vector<1x128xf32>
      %12 = vector.broadcast %11 : vector<1x128xf32> to vector<256x128xf32>
      %13 = arith.addf %10, %12 : vector<256x128xf32>
      %c0_11 = arith.constant 0 : index
      %c0_12 = arith.constant 0 : index
      %14 = vector.load %arg5[%c0_11, %c0_12] : memref<256x128xf32, #tpu.memory_space<vmem>>, vector<256x128xf32>
      tpu.vector_store %arg5[%c0_11, %c0_12], %13 {strides = array<i32>} : memref<256x128xf32, #tpu.memory_space<vmem>>, vector<256x128xf32>,
    } else {
    }
    %c0 = arith.constant 0 : index
    %c0_1 = arith.constant 0 : index
    %3 = vector.load %arg2[%c0, %c0_1] : memref<256x512xbf16, #tpu.memory_space<vmem>>, vector<256x512xbf16>
    %4 = arith.extf %3 : vector<256x512xbf16> to vector<256x512xf32>
    %c0_2 = arith.constant 0 : index
    %c0_3 = arith.constant 0 : index
    %5 = vector.load %arg5[%c0_2, %c0_3] : memref<256x128xf32, #tpu.memory_space<vmem>>, vector<256x128xf32>
    %c0_4 = arith.constant 0 : index
    %c0_5 = arith.constant 0 : index
    %6 = vector.load %arg3[%c0_4, %c0_5] : memref<512x128xf32, #tpu.memory_space<vmem>>, vector<512x128xf32>
    %cst = arith.constant dense<0.000000e+00> : vector<256x128xf32>
    %7 = tpu.matmul %4, %6, %cst {dimension_numbers = #tpu.dot_dimension_numbers<[1], [0], [0], [1], [0, 0, 1, 1], [], []>} : vector<256x512xf32>, vector<512x128xf32>, vector<256x128xf32> -> vector<256x128xf32>
    %8 = arith.addf %5, %7 : vector<256x128xf32>
    %c0_6 = arith.constant 0 : index
    %c0_7 = arith.constant 0 : index
    %9 = vector.load %arg5[%c0_6, %c0_7] : memref<256x128xf32, #tpu.memory_space<vmem>>, vector<256x128xf32>
    tpu.vector_store %arg5[%c0_6, %c0_7], %8 {strides = array<i32>} : memref<256x128xf32, #tpu.memory_space<vmem>>, vector<256x128xf32>,
    return
  }
  func.func @transform_0(%arg0: i32, %arg1: i32) -> (i32, i32) {
    %c0_i32 = arith.constant 0 : i32
    return %arg0, %arg1 : i32, i32
  }
  func.func @transform_1(%arg0: i32, %arg1: i32) -> (i32, i32) {
    %c0_i32 = arith.constant 0 : i32
    %c0_i32_0 = arith.constant 0 : i32
    return %arg1, %c0_i32 : i32, i32
  }
  func.func @transform_2(%arg0: i32, %arg1: i32) -> (i32, i32) {
    %c0_i32 = arith.constant 0 : i32
    %c0_i32_0 = arith.constant 0 : i32
    %c0_i32_1 = arith.constant 0 : i32
    return %c0_i32, %c0_i32_0 : i32, i32
  }
  func.func @transform_3(%arg0: i32, %arg1: i32) -> (i32, i32) {
    %c0_i32 = arith.constant 0 : i32
    %c0_i32_0 = arith.constant 0 : i32
    return %arg0, %c0_i32 : i32, i32
  }
}

</mosaic_0001>

<bundles_post_ra>
// kernel: gcn_net_forward.5
= control target key start
LH: loop header
LB: loop body
LE: loop exit
PB: predicated region body
PF: predicated region fallthrough
CT: control target
= control target key end

     0   :  { %s1340_s12 = smov 0   ;;  %s1342_s13 = smov 0   ;;  %s1749_s0 = inlined_call_operand.vmem [shape: bf16[512,512], index: 0, kind: input, shape index: {}]   ;;  %s1750_s1 = inlined_call_operand.vmem [shape: f32[512,128], index: 1, kind: input, shape index: {}]   ;;  %s1751_s2 = inlined_call_operand.vmem [shape: f32[1,128], index: 2, kind: input, shape index: {}]   ;;  %s1752_s3 = inlined_call_operand.vmem [shape: f32[512,128], index: 3, kind: output, shape index: {}]  }
   0x1   :  { %s1344_s14 = smov 0  }
   0x2 LB: > { %s25_s15 = sadd.s32 1, %s1313_s13  ;;  %p1164_p0 = scmp.ge.s32.totalorder %s1317_s14, 1  ;;  %s1317_s14 = sphi %s1344_s14, %s13_s14   ;;  %s1313_s13 = sphi %s1342_s13, %s1754_s13   ;;  %s1309_s12 = sphi %s1340_s12, %s1753_s12  }
   0x3   : > { %p27_p1 = scmp.ge.s32.totalorder %s25_s15, 2  ;;  %p169_p2 = scmp.lt.s32.totalorder %s1317_s14, 3 }
   0x5   : > { %s1756_s15 = smov (%p27_p1, %s25_s15), 0  ;;  %p170_p3 = pnand %p1164_p0, %p169_p2 }
   0x6   : > { %v495_v0 = vld [vmem:[%s1750_s1] sm:$0xff] (!%p170_p3)  ;;  %v496_v1 = vld [vmem:[%s1750_s1 + $0x8] sm:$0xff] (!%p170_p3)  ;;  %v1319_v3 = vmov (!%p170_p3), 0.0|0.0   ;;  %v497_v6 = vld [vmem:[%s1750_s1 + $0x10] sm:$0xff] (!%p170_p3)  ;;  %s1165_s9 = sshll.u32 (!%p170_p3), %s1309_s12, 5 }
   0x7   : > { %173 = sbr.rel (%p170_p3) target bundleno = 414 (0x19e), region = 32  ;;  %v527_v2 = vld [vmem:[%s1750_s1 + $0x100] sm:$0xff] (!%p170_p3)  ;;  %1174 = vmatprep.subr.bf16.mxu0 (!%p170_p3), %v1319_v3  ;;  %1222 = vmatprep.subr.bf16.mxu1 (!%p170_p3), %v1319_v3  ;;  %v1175_v4 = vpack.c.bf16 (!%p170_p3), %v496_v1, %v495_v0  ;;  %v528_v5 = vld [vmem:[%s1750_s1 + $0x108] sm:$0xff] (!%p170_p3)  ;;  %v498_v7 = vld [vmem:[%s1750_s1 + $0x18] sm:$0xff] (!%p170_p3)  ;;  %p205_p4 = scmp.lt.s32.totalorder (!%p170_p3), %s1165_s9, 63 }
   0x8   : > { %v1223_v8 = vpack.c.bf16 (!%p170_p3), %v528_v5, %v527_v2  ;;  %v529_v9 = vld [vmem:[%s1750_s1 + $0x110] sm:$0xff] (!%p170_p3)  ;;  %v530_v10 = vld [vmem:[%s1750_s1 + $0x118] sm:$0xff] (!%p170_p3)  ;;  %v1178_v11 = vpack.c.bf16 (!%p170_p3), %v498_v7, %v497_v6  ;;  %v499_v13 = vld [vmem:[%s1750_s1 + $0x20] sm:$0xff] (!%p170_p3) }
   0x9   : > { %1176 = vmatpush1.bf16.msra.mxu0 (!%p170_p3), %v1175_v4  ;;  %v1226_v12 = vpack.c.bf16 (!%p170_p3), %v530_v10, %v529_v9  ;;  %v500_v14 = vld [vmem:[%s1750_s1 + $0x28] sm:$0xff] (!%p170_p3)  ;;  %v531_v15 = vld [vmem:[%s1750_s1 + $0x120] sm:$0xff] (!%p170_p3)  ;;  %v501_v19 = vld [vmem:[%s1750_s1 + $0x30] sm:$0xff] (!%p170_p3) }
   0xa   : > { %1224 = vmatpush1.bf16.msra.mxu1 (!%p170_p3), %v1223_v8  ;;  %1177 = vmatprep.subr.bf16.mxu0 (!%p170_p3), %v1319_v3  ;;  %v532_v16 = vld [vmem:[%s1750_s1 + $0x128] sm:$0xff] (!%p170_p3)  ;;  %v1181_v17 = vpack.c.bf16 (!%p170_p3), %v500_v14, %v499_v13  ;;  %v502_v20 = vld [vmem:[%s1750_s1 + $0x38] sm:$0xff] (!%p170_p3)  ;;  %v533_v21 = vld [vmem:[%s1750_s1 + $0x130] sm:$0xff] (!%p170_p3) }
   0xb   : > { %1225 = vmatprep.subr.bf16.mxu1 (!%p170_p3), %v1319_v3  ;;  %v1229_v18 = vpack.c.bf16 (!%p170_p3), %v532_v16, %v531_v15  ;;  %v534_v22 = vld [vmem:[%s1750_s1 + $0x138] sm:$0xff] (!%p170_p3)  ;;  %v1184_v23 = vpack.c.bf16 (!%p170_p3), %v502_v20, %v501_v19  ;;  %v503_v25 = vld [vmem:[%s1750_s1 + $0x40] sm:$0xff] (!%p170_p3)  ;;  %v504_v26 = vld [vmem:[%s1750_s1 + $0x48] sm:$0xff] (!%p170_p3) }
   0xc   : > { %v1232_v24 = vpack.c.bf16 (!%p170_p3), %v534_v22, %v533_v21  ;;  %v535_v27 = vld [vmem:[%s1750_s1 + $0x140] sm:$0xff] (!%p170_p3)  ;;  %v536_v28 = vld [vmem:[%s1750_s1 + $0x148] sm:$0xff] (!%p170_p3)  ;;  %v1187_v29 = vpack.c.bf16 (!%p170_p3), %v504_v26, %v503_v25  ;;  %v505_v31 = vld [vmem:[%s1750_s1 + $0x50] sm:$0xff] (!%p170_p3) }
   0xd   : > { %1179 = vmatpush1.bf16.msra.mxu0 (!%p170_p3), %v1178_v11  ;;  %v1235_v30 = vpack.c.bf16 (!%p170_p3), %v536_v28, %v535_v27  ;;  %v506_v32 = vld [vmem:[%s1750_s1 + $0x58] sm:$0xff] (!%p170_p3)  ;;  %v537_v33 = vld [vmem:[%s1750_s1 + $0x150] sm:$0xff] (!%p170_p3)  ;;  %v507_v37 = vld [vmem:[%s1750_s1 + $0x60] sm:$0xff] (!%p170_p3) }
   0xe   : > { %1227 = vmatpush1.bf16.msra.mxu1 %v1226_v12  ;;  %1180 = vmatprep.subr.bf16.mxu0 %v1319_v3  ;;  %s1758_s9 = smov (!%p205_p4, %s1165_s9), 63  ;;  %v538_v34 = vld [vmem:[%s1750_s1 + $0x158] sm:$0xff]  ;;  %v1190_v35 = vpack.c.bf16 %v506_v32, %v505_v31  ;;  %v508_v38 = vld [vmem:[%s1750_s1 + $0x68] sm:$0xff]  ;;  %v539_v39 = vld [vmem:[%s1750_s1 + $0x160] sm:$0xff] }
   0xf   : > { %1228 = vmatprep.subr.bf16.mxu1 %v1319_v3  ;;  %s1173_s6 = sshll.u32 %s1758_s9, 4  ;;  %v1238_v36 = vpack.c.bf16 %v538_v34, %v537_v33  ;;  %v540_v40 = vld [vmem:[%s1750_s1 + $0x168] sm:$0xff]  ;;  %v1193_v44 = vpack.c.bf16 %v508_v38, %v507_v37  ;;  %v509_v47 = vld [vmem:[%s1750_s1 + $0x70] sm:$0xff]  ;;  %v510_v48 = vld [vmem:[%s1750_s1 + $0x78] sm:$0xff]  ;;  %s1169_s10 = sshll.u32 %s1758_s9, 3 }
  0x10   : > { %s1449_s21 = scalar_lea.vmem %s1749_s0, %s1173_s6  ;;  %v1241_v46 = vpack.c.bf16 %v540_v40, %v539_v39  ;;  %v541_v49 = vld [vmem:[%s1750_s1 + $0x170] sm:$0xff]  ;;  %v542_v50 = vld [vmem:[%s1750_s1 + $0x178] sm:$0xff]  ;;  %v1196_v51 = vpack.c.bf16 %v510_v48, %v509_v47  ;;  %v511_v53 = vld [vmem:[%s1750_s1 + $0x80] sm:$0xff]  ;;  %s1674_s18 = scalar_lea.vmem %s1752_s3, %s1169_s10 }
  0x11   : > { %1182 = vmatpush1.bf16.msra.mxu0 %v1181_v17  ;;  %v1466_v41 = vld [vmem:[%s1449_s21] sm:$0xff]  ;;  %v1469_v42 = vld [vmem:[%s1449_s21 + $0x8] sm:$0xff]  ;;  %v1244_v52 = vpack.c.bf16 %v542_v50, %v541_v49  ;;  %v513_v59 = vld [vmem:[%s1750_s1 + $0x90] sm:$0xff] }
  0x12   : > { %1230 = vmatpush1.bf16.msra.mxu1 %v1229_v18  ;;  %1183 = vmatprep.subr.bf16.mxu0 %v1319_v3  ;;  %v336_v43 = vunpack.c.h.bf16 %v1466_v41  ;;  %v338_v45 = vunpack.c.h.bf16 %v1469_v42  ;;  %v512_v54 = vld [vmem:[%s1750_s1 + $0x88] sm:$0xff]  ;;  %v543_v55 = vld [vmem:[%s1750_s1 + $0x180] sm:$0xff]  ;;  %v514_v60 = vld [vmem:[%s1750_s1 + $0x98] sm:$0xff]  ;;  %v335_v40 = vunpack.c.l.bf16 %v1466_v41 }
  0x13   : > { %1231 = vmatprep.subr.bf16.mxu1 %v1319_v3  ;;  %v544_v56 = vld [vmem:[%s1750_s1 + $0x188] sm:$0xff]  ;;  %v1199_v57 = vpack.c.bf16 %v512_v54, %v511_v53  ;;  %v545_v61 = vld [vmem:[%s1750_s1 + $0x190] sm:$0xff]  ;;  %v546_v62 = vld [vmem:[%s1750_s1 + $0x198] sm:$0xff]  ;;  %v1202_v63 = vpack.c.bf16 %v514_v60, %v513_v59 }
  0x14   : > { %623 = vmatprep.mubr.f32.mxu0 %v336_v43  ;;  %848 = vmatprep.mubr.f32.mxu1 %v338_v45  ;;  %v1247_v58 = vpack.c.bf16 %v544_v56, %v543_v55  ;;  %v1250_v0 = vpack.c.bf16 %v546_v62, %v545_v61  ;;  %v515_v1 = vld [vmem:[%s1750_s1 + $0xa0] sm:$0xff]  ;;  %v516_v2 = vld [vmem:[%s1750_s1 + $0xa8] sm:$0xff]  ;;  %v517_v8 = vld [vmem:[%s1750_s1 + $0xb0] sm:$0xff]  ;;  %v337_v43 = vunpack.c.l.bf16 %v1469_v42 }
  0x15   : > { %1185 = vmatpush1.bf16.msra.mxu0 %v1184_v23  ;;  %v547_v4 = vld [vmem:[%s1750_s1 + $0x1a0] sm:$0xff]  ;;  %v548_v5 = vld [vmem:[%s1750_s1 + $0x1a8] sm:$0xff]  ;;  %v1205_v6 = vpack.c.bf16 %v516_v2, %v515_v1  ;;  %v518_v9 = vld [vmem:[%s1750_s1 + $0xb8] sm:$0xff] }
  0x16   : > { %1233 = vmatpush1.bf16.msra.mxu1 %v1232_v24  ;;  %1186 = vmatprep.subr.bf16.mxu0 %v1319_v3  ;;  %v1253_v7 = vpack.c.bf16 %v548_v5, %v547_v4  ;;  %v549_v10 = vld [vmem:[%s1750_s1 + $0x1b0] sm:$0xff]  ;;  %v550_v11 = vld [vmem:[%s1750_s1 + $0x1b8] sm:$0xff]  ;;  %v1208_v12 = vpack.c.bf16 %v518_v9, %v517_v8  ;;  %v519_v14 = vld [vmem:[%s1750_s1 + $0xc0] sm:$0xff] }
  0x17   : > { %1234 = vmatprep.subr.bf16.mxu1 %v1319_v3  ;;  %v1256_v13 = vpack.c.bf16 %v550_v11, %v549_v10  ;;  %v520_v15 = vld [vmem:[%s1750_s1 + $0xc8] sm:$0xff]  ;;  %v551_v16 = vld [vmem:[%s1750_s1 + $0x1c0] sm:$0xff]  ;;  %v521_v20 = vld [vmem:[%s1750_s1 + $0xd0] sm:$0xff] }
  0x18   : > { %v552_v17 = vld [vmem:[%s1750_s1 + $0x1c8] sm:$0xff]  ;;  %v1211_v18 = vpack.c.bf16 %v520_v15, %v519_v14  ;;  %v522_v21 = vld [vmem:[%s1750_s1 + $0xd8] sm:$0xff]  ;;  %v553_v22 = vld [vmem:[%s1750_s1 + $0x1d0] sm:$0xff] }
  0x19   : > { %1188 = vmatpush1.bf16.msra.mxu0 %v1187_v29  ;;  %v1259_v19 = vpack.c.bf16 %v552_v17, %v551_v16  ;;  %v554_v23 = vld [vmem:[%s1750_s1 + $0x1d8] sm:$0xff]  ;;  %v1214_v24 = vpack.c.bf16 %v522_v21, %v521_v20  ;;  %v523_v26 = vld [vmem:[%s1750_s1 + $0xe0] sm:$0xff]  ;;  %v524_v27 = vld [vmem:[%s1750_s1 + $0xe8] sm:$0xff] }
  0x1a   : > { %1236 = vmatpush1.bf16.msra.mxu1 %v1235_v30  ;;  %1189 = vmatprep.subr.bf16.mxu0 %v1319_v3  ;;  %v1262_v25 = vpack.c.bf16 %v554_v23, %v553_v22  ;;  %v555_v28 = vld [vmem:[%s1750_s1 + $0x1e0] sm:$0xff]  ;;  %v556_v29 = vld [vmem:[%s1750_s1 + $0x1e8] sm:$0xff]  ;;  %v1217_v30 = vpack.c.bf16 %v524_v27, %v523_v26  ;;  %v525_v32 = vld [vmem:[%s1750_s1 + $0xf0] sm:$0xff] }
  0x1b   : > { %1237 = vmatprep.subr.bf16.mxu1 %v1319_v3  ;;  %v1265_v31 = vpack.c.bf16 %v556_v29, %v555_v28  ;;  %v526_v33 = vld [vmem:[%s1750_s1 + $0xf8] sm:$0xff]  ;;  %v557_v34 = vld [vmem:[%s1750_s1 + $0x1f0] sm:$0xff]  ;;  %v276_v47 = vld [vmem:[%s1449_s21 + $0x28] sm:$0xff] }
  0x1c   : > { %v273_v38 = vld [vmem:[%s1449_s21 + $0x10] sm:$0xff]  ;;  %v274_v39 = vld [vmem:[%s1449_s21 + $0x18] sm:$0xff]  ;;  %v346_v41 = vunpack.c.h.bf16 %v276_v47  ;;  %v345_v42 = vunpack.c.l.bf16 %v276_v47  ;;  %v279_v55 = vld [vmem:[%s1449_s21 + $0x40] sm:$0xff] }
  0x1d   : > { %1191 = vmatpush1.bf16.msra.mxu0 %v1190_v35  ;;  %v558_v35 = vld [vmem:[%s1750_s1 + $0x1f8] sm:$0xff]  ;;  %v342_v45 = vunpack.c.h.bf16 %v274_v39  ;;  %v339_v48 = vunpack.c.l.bf16 %v273_v38  ;;  %v277_v50 = vld [vmem:[%s1449_s21 + $0x30] sm:$0xff]  ;;  %v280_v56 = vld [vmem:[%s1449_s21 + $0x48] sm:$0xff]  ;;  %v352_v59 = vunpack.c.h.bf16 %v279_v55 }
  0x1e   : > { %1239 = vmatpush1.bf16.msra.mxu1 %v1238_v36  ;;  %1192 = vmatprep.subr.bf16.mxu0 %v1319_v3  ;;  %v1220_v36 = vpack.c.bf16 %v526_v33, %v525_v32  ;;  %v1268_v37 = vpack.c.bf16 %v558_v35, %v557_v34  ;;  %v348_v53 = vunpack.c.h.bf16 %v277_v50  ;;  %v354_v60 = vunpack.c.h.bf16 %v280_v56  ;;  %v281_v61 = vld [vmem:[%s1449_s21 + $0x50] sm:$0xff]  ;;  %v282_v62 = vld [vmem:[%s1449_s21 + $0x58] sm:$0xff]  ;;  %v283_v4 = vld [vmem:[%s1449_s21 + $0x60] sm:$0xff] }
  0x1f   : > { %1240 = vmatprep.subr.bf16.mxu1 %v1319_v3  ;;  %v356_v1 = vunpack.c.h.bf16 %v281_v61  ;;  %v358_v2 = vunpack.c.h.bf16 %v282_v62  ;;  %v284_v5 = vld [vmem:[%s1449_s21 + $0x68] sm:$0xff]  ;;  %v360_v8 = vunpack.c.h.bf16 %v283_v4  ;;  %v285_v10 = vld [vmem:[%s1449_s21 + $0x70] sm:$0xff]  ;;  %v286_v11 = vld [vmem:[%s1449_s21 + $0x78] sm:$0xff] }
  0x20   : > { %v362_v9 = vunpack.c.h.bf16 %v284_v5  ;;  %v364_v14 = vunpack.c.h.bf16 %v285_v10  ;;  %v366_v15 = vunpack.c.h.bf16 %v286_v11  ;;  %v287_v16 = vld [vmem:[%s1449_s21 + $0x80] sm:$0xff]  ;;  %v288_v17 = vld [vmem:[%s1449_s21 + $0x88] sm:$0xff]  ;;  %v289_v22 = vld [vmem:[%s1449_s21 + $0x90] sm:$0xff] }
  0x21   : > { %1194 = vmatpush1.bf16.msra.mxu0 %v1193_v44  ;;  %v340_v44 = vunpack.c.h.bf16 %v273_v38  ;;  %v368_v20 = vunpack.c.h.bf16 %v287_v16  ;;  %v370_v21 = vunpack.c.h.bf16 %v288_v17  ;;  %v290_v23 = vld [vmem:[%s1449_s21 + $0x98] sm:$0xff]  ;;  %v372_v26 = vunpack.c.h.bf16 %v289_v22  ;;  %v291_v28 = vld [vmem:[%s1449_s21 + $0xa0] sm:$0xff]  ;;  %v292_v29 = vld [vmem:[%s1449_s21 + $0xa8] sm:$0xff] }
  0x22   : > { %1242 = vmatpush1.bf16.msra.mxu1 %v1241_v46  ;;  %1195 = vmatprep.subr.bf16.mxu0 %v1319_v3  ;;  %v275_v46 = vld [vmem:[%s1449_s21 + $0x20] sm:$0xff]  ;;  %v374_v27 = vunpack.c.h.bf16 %v290_v23  ;;  %v376_v32 = vunpack.c.h.bf16 %v291_v28  ;;  %v378_v33 = vunpack.c.h.bf16 %v292_v29  ;;  %v293_v34 = vld [vmem:[%s1449_s21 + $0xb0] sm:$0xff]  ;;  %v294_v35 = vld [vmem:[%s1449_s21 + $0xb8] sm:$0xff] }
  0x23   : > { %1243 = vmatprep.subr.bf16.mxu1 %v1319_v3  ;;  %v344_v49 = vunpack.c.h.bf16 %v275_v46  ;;  %v380_v38 = vunpack.c.h.bf16 %v293_v34 }
  0x25   : > { %1197 = vmatpush1.bf16.msra.mxu0 %v1196_v51  ;;  %v278_v51 = vld [vmem:[%s1449_s21 + $0x38] sm:$0xff] }
  0x26   : > { %1245 = vmatpush1.bf16.msra.mxu1 %v1244_v52  ;;  %1198 = vmatprep.subr.bf16.mxu0 %v1319_v3  ;;  %v343_v52 = vunpack.c.l.bf16 %v275_v46  ;;  %v350_v54 = vunpack.c.h.bf16 %v278_v51 }
  0x27   : > { %1246 = vmatprep.subr.bf16.mxu1 %v1319_v3 }
  0x29   : > { %1200 = vmatpush1.bf16.msra.mxu0 %v1199_v57  ;;  %v347_v57 = vunpack.c.l.bf16 %v277_v50 }
  0x2a   : > { %1248 = vmatpush1.bf16.msra.mxu1 %v1247_v58  ;;  %1201 = vmatprep.subr.bf16.mxu0 %v1319_v3  ;;  %v349_v58 = vunpack.c.l.bf16 %v278_v51 }
  0x2b   : > { %1249 = vmatprep.subr.bf16.mxu1 %v1319_v3 }
  0x2d   : > { %1203 = vmatpush1.bf16.msra.mxu0 %v1202_v63  ;;  %v351_v63 = vunpack.c.l.bf16 %v279_v55 }
  0x2e   : > { %1251 = vmatpush1.bf16.msra.mxu1 %v1250_v0  ;;  %1204 = vmatprep.subr.bf16.mxu0 %v1319_v3  ;;  %v353_v0 = vunpack.c.l.bf16 %v280_v56 }
  0x2f   : > { %1252 = vmatprep.subr.bf16.mxu1 %v1319_v3 }
  0x31   : > { %1206 = vmatpush1.bf16.msra.mxu0 %v1205_v6  ;;  %v355_v6 = vunpack.c.l.bf16 %v281_v61 }
  0x32   : > { %1254 = vmatpush1.bf16.msra.mxu1 %v1253_v7  ;;  %1207 = vmatprep.subr.bf16.mxu0 %v1319_v3  ;;  %v357_v7 = vunpack.c.l.bf16 %v282_v62 }
  0x33   : > { %1255 = vmatprep.subr.bf16.mxu1 %v1319_v3 }
  0x35   : > { %1209 = vmatpush1.bf16.msra.mxu0 %v1208_v12  ;;  %v359_v12 = vunpack.c.l.bf16 %v283_v4 }
  0x36   : > { %1257 = vmatpush1.bf16.msra.mxu1 %v1256_v13  ;;  %1210 = vmatprep.subr.bf16.mxu0 %v1319_v3  ;;  %v361_v13 = vunpack.c.l.bf16 %v284_v5 }
  0x37   : > { %1258 = vmatprep.subr.bf16.mxu1 %v1319_v3 }
  0x39   : > { %1212 = vmatpush1.bf16.msra.mxu0 %v1211_v18  ;;  %v363_v18 = vunpack.c.l.bf16 %v285_v10 }
  0x3a   : > { %1260 = vmatpush1.bf16.msra.mxu1 %v1259_v19  ;;  %1213 = vmatprep.subr.bf16.mxu0 %v1319_v3  ;;  %v365_v19 = vunpack.c.l.bf16 %v286_v11 }
  0x3b   : > { %1261 = vmatprep.subr.bf16.mxu1 %v1319_v3 }
  0x3d   : > { %1215 = vmatpush1.bf16.msra.mxu0 %v1214_v24  ;;  %v367_v24 = vunpack.c.l.bf16 %v287_v16 }
  0x3e   : > { %1263 = vmatpush1.bf16.msra.mxu1 %v1262_v25  ;;  %1216 = vmatprep.subr.bf16.mxu0 %v1319_v3  ;;  %v369_v25 = vunpack.c.l.bf16 %v288_v17 }
  0x3f   : > { %1264 = vmatprep.subr.bf16.mxu1 %v1319_v3 }
  0x41   : > { %1218 = vmatpush1.bf16.msra.mxu0 %v1217_v30  ;;  %v371_v30 = vunpack.c.l.bf16 %v289_v22 }
  0x42   : > { %1266 = vmatpush1.bf16.msra.mxu1 %v1265_v31  ;;  %1219 = vmatprep.subr.bf16.mxu0 %v1319_v3  ;;  %v373_v31 = vunpack.c.l.bf16 %v290_v23 }
  0x43   : > { %1267 = vmatprep.subr.bf16.mxu1 %v1319_v3  ;;  %v341_v3 = vunpack.c.l.bf16 %v274_v39  ;;  %v382_v39 = vunpack.c.h.bf16 %v294_v35 }
  0x45   : > { %1221 = vmatpush1.bf16.msra.mxu0 %v1220_v36  ;;  %v375_v36 = vunpack.c.l.bf16 %v291_v28 }
  0x46   : > { %1269 = vmatpush1.bf16.msra.mxu1 %v1268_v37  ;;  %v377_v37 = vunpack.c.l.bf16 %v292_v29 }
  0x48   : > { %624 = vmatmul.mubr.f32.vlgmr.msra.gmra.mrb[0].mxu0 %v335_v40  ;;  %v295_v40 = vld [vmem:[%s1449_s21 + $0xc0] sm:$0xff] }
  0x49   : > { %849 = vmatmul.mubr.f32.vlgmr.msra.gmra.mrb[0].mxu1 %v337_v43  ;;  %628 = vmatprep.mubr.f32.mxu0 %v340_v44  ;;  %v296_v43 = vld [vmem:[%s1449_s21 + $0xc8] sm:$0xff]  ;;  %v379_v44 = vunpack.c.l.bf16 %v293_v34  ;;  %v384_v46 = vunpack.c.h.bf16 %v295_v40 }
  0x4a   : > { %853 = vmatprep.mubr.f32.mxu1 %v342_v45  ;;  %v381_v45 = vunpack.c.l.bf16 %v294_v35  ;;  %v386_v47 = vunpack.c.h.bf16 %v296_v43 }
  0x4c   : > { %629 = vmatmul.mubr.f32.gmra.mrb[2].mxu0 %v339_v48  ;;  %v297_v48 = vld [vmem:[%s1449_s21 + $0xd0] sm:$0xff] }
  0x4d   : > { %854 = vmatmul.mubr.f32.gmra.mrb[2].mxu1 %v341_v3  ;;  %633 = vmatprep.mubr.f32.mxu0 %v344_v49  ;;  %v298_v3 = vld [vmem:[%s1449_s21 + $0xd8] sm:$0xff]  ;;  %v383_v49 = vunpack.c.l.bf16 %v295_v40  ;;  %v388_v50 = vunpack.c.h.bf16 %v297_v48 }
  0x4e   : > { %858 = vmatprep.mubr.f32.mxu1 %v346_v41  ;;  %v385_v41 = vunpack.c.l.bf16 %v296_v43  ;;  %v390_v51 = vunpack.c.h.bf16 %v298_v3 }
  0x50   : > { %634 = vmatmul.mubr.f32.gmra.mrb[4].mxu0 %v343_v52  ;;  %v299_v52 = vld [vmem:[%s1449_s21 + $0xe0] sm:$0xff] }
  0x51   : > { %859 = vmatmul.mubr.f32.gmra.mrb[4].mxu1 %v345_v42  ;;  %638 = vmatprep.mubr.f32.mxu0 %v348_v53  ;;  %v300_v42 = vld [vmem:[%s1449_s21 + $0xe8] sm:$0xff]  ;;  %v387_v53 = vunpack.c.l.bf16 %v297_v48  ;;  %v392_v55 = vunpack.c.h.bf16 %v299_v52 }
  0x52   : > { %863 = vmatprep.mubr.f32.mxu1 %v350_v54  ;;  %v389_v54 = vunpack.c.l.bf16 %v298_v3  ;;  %v394_v56 = vunpack.c.h.bf16 %v300_v42 }
  0x54   : > { %639 = vmatmul.mubr.f32.gmra.mrb[6].mxu0 %v347_v57  ;;  %v301_v57 = vld [vmem:[%s1449_s21 + $0xf0] sm:$0xff] }
  0x55   : > { %864 = vmatmul.mubr.f32.gmra.mrb[6].mxu1 %v349_v58  ;;  %643 = vmatprep.mubr.f32.mxu0 %v352_v59  ;;  %v302_v58 = vld [vmem:[%s1449_s21 + $0xf8] sm:$0xff]  ;;  %v391_v59 = vunpack.c.l.bf16 %v299_v52  ;;  %v396_v61 = vunpack.c.h.bf16 %v301_v57 }
  0x56   : > { %868 = vmatprep.mubr.f32.mxu1 %v354_v60  ;;  %v393_v60 = vunpack.c.l.bf16 %v300_v42  ;;  %v398_v62 = vunpack.c.h.bf16 %v302_v58 }
  0x58   : > { %644 = vmatmul.mubr.f32.gmra.mrb[8].mxu0 %v351_v63  ;;  %v303_v63 = vld [vmem:[%s1449_s21 + $0x100] sm:$0xff] }
  0x59   : > { %869 = vmatmul.mubr.f32.gmra.mrb[8].mxu1 %v353_v0  ;;  %648 = vmatprep.mubr.f32.mxu0 %v356_v1  ;;  %v304_v0 = vld [vmem:[%s1449_s21 + $0x108] sm:$0xff]  ;;  %v395_v1 = vunpack.c.l.bf16 %v301_v57  ;;  %v400_v4 = vunpack.c.h.bf16 %v303_v63 }
  0x5a   : > { %873 = vmatprep.mubr.f32.mxu1 %v358_v2  ;;  %v397_v2 = vunpack.c.l.bf16 %v302_v58  ;;  %v402_v5 = vunpack.c.h.bf16 %v304_v0 }
  0x5c   : > { %649 = vmatmul.mubr.f32.gmra.mrb[10].mxu0 %v355_v6  ;;  %v305_v6 = vld [vmem:[%s1449_s21 + $0x110] sm:$0xff] }
  0x5d   : > { %874 = vmatmul.mubr.f32.gmra.mrb[10].mxu1 %v357_v7  ;;  %653 = vmatprep.mubr.f32.mxu0 %v360_v8  ;;  %v306_v7 = vld [vmem:[%s1449_s21 + $0x118] sm:$0xff]  ;;  %v399_v8 = vunpack.c.l.bf16 %v303_v63  ;;  %v404_v10 = vunpack.c.h.bf16 %v305_v6 }
  0x5e   : > { %878 = vmatprep.mubr.f32.mxu1 %v362_v9  ;;  %v401_v9 = vunpack.c.l.bf16 %v304_v0  ;;  %v406_v11 = vunpack.c.h.bf16 %v306_v7 }
  0x60   : > { %654 = vmatmul.mubr.f32.gmra.mrb[12].mxu0 %v359_v12  ;;  %v307_v12 = vld [vmem:[%s1449_s21 + $0x120] sm:$0xff] }
  0x61   : > { %879 = vmatmul.mubr.f32.gmra.mrb[12].mxu1 %v361_v13  ;;  %658 = vmatprep.mubr.f32.mxu0 %v364_v14  ;;  %v308_v13 = vld [vmem:[%s1449_s21 + $0x128] sm:$0xff]  ;;  %v403_v14 = vunpack.c.l.bf16 %v305_v6  ;;  %v408_v16 = vunpack.c.h.bf16 %v307_v12 }
  0x62   : > { %883 = vmatprep.mubr.f32.mxu1 %v366_v15  ;;  %v405_v15 = vunpack.c.l.bf16 %v306_v7  ;;  %v410_v17 = vunpack.c.h.bf16 %v308_v13 }
  0x64   : > { %659 = vmatmul.mubr.f32.gmra.mrb[14].mxu0 %v363_v18  ;;  %v309_v18 = vld [vmem:[%s1449_s21 + $0x130] sm:$0xff] }
  0x65   : > { %884 = vmatmul.mubr.f32.gmra.mrb[14].mxu1 %v365_v19  ;;  %663 = vmatprep.mubr.f32.mxu0 %v368_v20  ;;  %v310_v19 = vld [vmem:[%s1449_s21 + $0x138] sm:$0xff]  ;;  %v407_v20 = vunpack.c.l.bf16 %v307_v12  ;;  %v412_v22 = vunpack.c.h.bf16 %v309_v18 }
  0x66   : > { %888 = vmatprep.mubr.f32.mxu1 %v370_v21  ;;  %v409_v21 = vunpack.c.l.bf16 %v308_v13  ;;  %v414_v23 = vunpack.c.h.bf16 %v310_v19 }
  0x68   : > { %664 = vmatmul.mubr.f32.gmra.mrb[16].mxu0 %v367_v24  ;;  %v311_v24 = vld [vmem:[%s1449_s21 + $0x140] sm:$0xff] }
  0x69   : > { %889 = vmatmul.mubr.f32.gmra.mrb[16].mxu1 %v369_v25  ;;  %668 = vmatprep.mubr.f32.mxu0 %v372_v26  ;;  %v312_v25 = vld [vmem:[%s1449_s21 + $0x148] sm:$0xff]  ;;  %v411_v26 = vunpack.c.l.bf16 %v309_v18  ;;  %v416_v28 = vunpack.c.h.bf16 %v311_v24 }
  0x6a   : > { %893 = vmatprep.mubr.f32.mxu1 %v374_v27  ;;  %v413_v27 = vunpack.c.l.bf16 %v310_v19  ;;  %v418_v29 = vunpack.c.h.bf16 %v312_v25 }
  0x6c   : > { %669 = vmatmul.mubr.f32.gmra.mrb[18].mxu0 %v371_v30  ;;  %v313_v30 = vld [vmem:[%s1449_s21 + $0x150] sm:$0xff] }
  0x6d   : > { %894 = vmatmul.mubr.f32.gmra.mrb[18].mxu1 %v373_v31  ;;  %673 = vmatprep.mubr.f32.mxu0 %v376_v32  ;;  %v314_v31 = vld [vmem:[%s1449_s21 + $0x158] sm:$0xff]  ;;  %v415_v32 = vunpack.c.l.bf16 %v311_v24  ;;  %v420_v34 = vunpack.c.h.bf16 %v313_v30 }
  0x6e   : > { %898 = vmatprep.mubr.f32.mxu1 %v378_v33  ;;  %v417_v33 = vunpack.c.l.bf16 %v312_v25  ;;  %v422_v35 = vunpack.c.h.bf16 %v314_v31 }
  0x70   : > { %674 = vmatmul.mubr.f32.gmra.mrb[20].mxu0 %v375_v36  ;;  %v315_v36 = vld [vmem:[%s1449_s21 + $0x160] sm:$0xff] }
  0x71   : > { %899 = vmatmul.mubr.f32.gmra.mrb[20].mxu1 %v377_v37  ;;  %678 = vmatprep.mubr.f32.mxu0 %v380_v38  ;;  %v316_v37 = vld [vmem:[%s1449_s21 + $0x168] sm:$0xff]  ;;  %v419_v38 = vunpack.c.l.bf16 %v313_v30  ;;  %v424_v40 = vunpack.c.h.bf16 %v315_v36 }
  0x72   : > { %903 = vmatprep.mubr.f32.mxu1 %v382_v39  ;;  %v421_v39 = vunpack.c.l.bf16 %v314_v31  ;;  %v426_v43 = vunpack.c.h.bf16 %v316_v37 }
  0x74   : > { %679 = vmatmul.mubr.f32.gmra.mrb[22].mxu0 %v379_v44  ;;  %v317_v44 = vld [vmem:[%s1449_s21 + $0x170] sm:$0xff] }
  0x75   : > { %904 = vmatmul.mubr.f32.gmra.mrb[22].mxu1 %v381_v45  ;;  %683 = vmatprep.mubr.f32.mxu0 %v384_v46  ;;  %v318_v45 = vld [vmem:[%s1449_s21 + $0x178] sm:$0xff]  ;;  %v423_v46 = vunpack.c.l.bf16 %v315_v36  ;;  %v428_v48 = vunpack.c.h.bf16 %v317_v44 }
  0x76   : > { %908 = vmatprep.mubr.f32.mxu1 %v386_v47  ;;  %v425_v47 = vunpack.c.l.bf16 %v316_v37  ;;  %v430_v3 = vunpack.c.h.bf16 %v318_v45 }
  0x78   : > { %684 = vmatmul.mubr.f32.gmra.mrb[24].mxu0 %v383_v49  ;;  %v319_v49 = vld [vmem:[%s1449_s21 + $0x180] sm:$0xff] }
  0x79   : > { %909 = vmatmul.mubr.f32.gmra.mrb[24].mxu1 %v385_v41  ;;  %688 = vmatprep.mubr.f32.mxu0 %v388_v50  ;;  %v320_v41 = vld [vmem:[%s1449_s21 + $0x188] sm:$0xff]  ;;  %v427_v50 = vunpack.c.l.bf16 %v317_v44  ;;  %v432_v52 = vunpack.c.h.bf16 %v319_v49 }
  0x7a   : > { %913 = vmatprep.mubr.f32.mxu1 %v390_v51  ;;  %v429_v51 = vunpack.c.l.bf16 %v318_v45  ;;  %v434_v42 = vunpack.c.h.bf16 %v320_v41 }
  0x7c   : > { %689 = vmatmul.mubr.f32.gmra.mrb[26].mxu0 %v387_v53  ;;  %v321_v53 = vld [vmem:[%s1449_s21 + $0x190] sm:$0xff] }
  0x7d   : > { %914 = vmatmul.mubr.f32.gmra.mrb[26].mxu1 %v389_v54  ;;  %693 = vmatprep.mubr.f32.mxu0 %v392_v55  ;;  %v322_v54 = vld [vmem:[%s1449_s21 + $0x198] sm:$0xff]  ;;  %v431_v55 = vunpack.c.l.bf16 %v319_v49  ;;  %v436_v57 = vunpack.c.h.bf16 %v321_v53 }
  0x7e   : > { %918 = vmatprep.mubr.f32.mxu1 %v394_v56  ;;  %v433_v56 = vunpack.c.l.bf16 %v320_v41  ;;  %v438_v58 = vunpack.c.h.bf16 %v322_v54 }
  0x80   : > { %694 = vmatmul.mubr.f32.gmra.mrb[28].mxu0 %v391_v59  ;;  %v323_v59 = vld [vmem:[%s1449_s21 + $0x1a0] sm:$0xff] }
  0x81   : > { %919 = vmatmul.mubr.f32.gmra.mrb[28].mxu1 %v393_v60  ;;  %698 = vmatprep.mubr.f32.mxu0 %v396_v61  ;;  %v324_v60 = vld [vmem:[%s1449_s21 + $0x1a8] sm:$0xff]  ;;  %v435_v61 = vunpack.c.l.bf16 %v321_v53  ;;  %v440_v63 = vunpack.c.h.bf16 %v323_v59 }
  0x82   : > { %923 = vmatprep.mubr.f32.mxu1 %v398_v62  ;;  %v437_v62 = vunpack.c.l.bf16 %v322_v54  ;;  %v442_v0 = vunpack.c.h.bf16 %v324_v60 }
  0x84   : > { %699 = vmatmul.mubr.f32.gmra.mrb[30].mxu0 %v395_v1  ;;  %v325_v1 = vld [vmem:[%s1449_s21 + $0x1b0] sm:$0xff] }
  0x85   : > { %924 = vmatmul.mubr.f32.gmra.mrb[30].mxu1 %v397_v2  ;;  %703 = vmatprep.mubr.f32.mxu0 %v400_v4  ;;  %v326_v2 = vld [vmem:[%s1449_s21 + $0x1b8] sm:$0xff]  ;;  %v439_v4 = vunpack.c.l.bf16 %v323_v59  ;;  %v444_v6 = vunpack.c.h.bf16 %v325_v1 }
  0x86   : > { %928 = vmatprep.mubr.f32.mxu1 %v402_v5  ;;  %v441_v5 = vunpack.c.l.bf16 %v324_v60  ;;  %v446_v7 = vunpack.c.h.bf16 %v326_v2 }
  0x88   : > { %704 = vmatmul.mubr.f32.gmra.mrb[32].mxu0 %v399_v8  ;;  %v327_v8 = vld [vmem:[%s1449_s21 + $0x1c0] sm:$0xff] }
  0x89   : > { %929 = vmatmul.mubr.f32.gmra.mrb[32].mxu1 %v401_v9  ;;  %708 = vmatprep.mubr.f32.mxu0 %v404_v10  ;;  %v328_v9 = vld [vmem:[%s1449_s21 + $0x1c8] sm:$0xff]  ;;  %v443_v10 = vunpack.c.l.bf16 %v325_v1  ;;  %v448_v12 = vunpack.c.h.bf16 %v327_v8 }
  0x8a   : > { %933 = vmatprep.mubr.f32.mxu1 %v406_v11  ;;  %v445_v11 = vunpack.c.l.bf16 %v326_v2  ;;  %v450_v13 = vunpack.c.h.bf16 %v328_v9 }
  0x8c   : > { %709 = vmatmul.mubr.f32.gmra.mrb[34].mxu0 %v403_v14  ;;  %v329_v14 = vld [vmem:[%s1449_s21 + $0x1d0] sm:$0xff] }
  0x8d   : > { %934 = vmatmul.mubr.f32.gmra.mrb[34].mxu1 %v405_v15  ;;  %713 = vmatprep.mubr.f32.mxu0 %v408_v16  ;;  %v330_v15 = vld [vmem:[%s1449_s21 + $0x1d8] sm:$0xff]  ;;  %v447_v16 = vunpack.c.l.bf16 %v327_v8  ;;  %v452_v18 = vunpack.c.h.bf16 %v329_v14 }
  0x8e   : > { %938 = vmatprep.mubr.f32.mxu1 %v410_v17  ;;  %v449_v17 = vunpack.c.l.bf16 %v328_v9  ;;  %v454_v19 = vunpack.c.h.bf16 %v330_v15 }
  0x90   : > { %714 = vmatmul.mubr.f32.gmra.mrb[36].mxu0 %v407_v20  ;;  %v331_v20 = vld [vmem:[%s1449_s21 + $0x1e0] sm:$0xff] }
  0x91   : > { %939 = vmatmul.mubr.f32.gmra.mrb[36].mxu1 %v409_v21  ;;  %718 = vmatprep.mubr.f32.mxu0 %v412_v22  ;;  %v332_v21 = vld [vmem:[%s1449_s21 + $0x1e8] sm:$0xff]  ;;  %v451_v22 = vunpack.c.l.bf16 %v329_v14  ;;  %v456_v24 = vunpack.c.h.bf16 %v331_v20 }
  0x92   : > { %943 = vmatprep.mubr.f32.mxu1 %v414_v23  ;;  %v453_v23 = vunpack.c.l.bf16 %v330_v15  ;;  %v458_v25 = vunpack.c.h.bf16 %v332_v21 }
  0x94   : > { %719 = vmatmul.mubr.f32.gmra.mrb[38].mxu0 %v411_v26  ;;  %v333_v26 = vld [vmem:[%s1449_s21 + $0x1f0] sm:$0xff] }
  0x95   : > { %944 = vmatmul.mubr.f32.gmra.mrb[38].mxu1 %v413_v27  ;;  %723 = vmatprep.mubr.f32.mxu0 %v416_v28  ;;  %v334_v27 = vld [vmem:[%s1449_s21 + $0x1f8] sm:$0xff]  ;;  %v455_v28 = vunpack.c.l.bf16 %v331_v20  ;;  %v460_v30 = vunpack.c.h.bf16 %v333_v26 }
  0x96   : > { %948 = vmatprep.mubr.f32.mxu1 %v418_v29  ;;  %v457_v29 = vunpack.c.l.bf16 %v332_v21  ;;  %v462_v31 = vunpack.c.h.bf16 %v334_v27 }
  0x98   : > { %724 = vmatmul.mubr.f32.gmra.mrb[40].mxu0 %v415_v32  ;;  %v459_v32 = vunpack.c.l.bf16 %v333_v26 }
  0x99   : > { %949 = vmatmul.mubr.f32.gmra.mrb[40].mxu1 %v417_v33  ;;  %728 = vmatprep.mubr.f32.mxu0 %v420_v34  ;;  %v461_v33 = vunpack.c.l.bf16 %v334_v27 }
  0x9a   : > { %953 = vmatprep.mubr.f32.mxu1 %v422_v35  ;;  %v1669_v35 = vld [vmem:[%s1751_s2] ss:$0 sm:$0xff] }
  0x9c   : > { %729 = vmatmul.mubr.f32.gmra.mrb[42].mxu0 %v419_v38 }
  0x9d   : > { %954 = vmatmul.mubr.f32.gmra.mrb[42].mxu1 %v421_v39  ;;  %733 = vmatprep.mubr.f32.mxu0 %v424_v40 }
  0x9e   : > { %958 = vmatprep.mubr.f32.mxu1 %v426_v43 }
  0xa0   : > { %734 = vmatmul.mubr.f32.gmra.mrb[44].mxu0 %v423_v46 }
  0xa1   : > { %959 = vmatmul.mubr.f32.gmra.mrb[44].mxu1 %v425_v47  ;;  %738 = vmatprep.mubr.f32.mxu0 %v428_v48 }
  0xa2   : > { %963 = vmatprep.mubr.f32.mxu1 %v430_v3 }
  0xa4   : > { %739 = vmatmul.mubr.f32.gmra.mrb[46].mxu0 %v427_v50 }
  0xa5   : > { %964 = vmatmul.mubr.f32.gmra.mrb[46].mxu1 %v429_v51  ;;  %743 = vmatprep.mubr.f32.mxu0 %v432_v52 }
  0xa6   : > { %968 = vmatprep.mubr.f32.mxu1 %v434_v42 }
  0xa8   : > { %744 = vmatmul.mubr.f32.gmra.mrb[48].mxu0 %v431_v55 }
  0xa9   : > { %969 = vmatmul.mubr.f32.gmra.mrb[48].mxu1 %v433_v56  ;;  %748 = vmatprep.mubr.f32.mxu0 %v436_v57 }
  0xaa   : > { %973 = vmatprep.mubr.f32.mxu1 %v438_v58 }
  0xac   : > { %749 = vmatmul.mubr.f32.gmra.mrb[50].mxu0 %v435_v61 }
  0xad   : > { %974 = vmatmul.mubr.f32.gmra.mrb[50].mxu1 %v437_v62  ;;  %753 = vmatprep.mubr.f32.mxu0 %v440_v63 }
  0xae   : > { %978 = vmatprep.mubr.f32.mxu1 %v442_v0 }
  0xb0   : > { %754 = vmatmul.mubr.f32.gmra.mrb[52].mxu0 %v439_v4 }
  0xb1   : > { %979 = vmatmul.mubr.f32.gmra.mrb[52].mxu1 %v441_v5  ;;  %758 = vmatprep.mubr.f32.mxu0 %v444_v6 }
  0xb2   : > { %983 = vmatprep.mubr.f32.mxu1 %v446_v7 }
  0xb4   : > { %759 = vmatmul.mubr.f32.gmra.mrb[54].mxu0 %v443_v10 }
  0xb5   : > { %984 = vmatmul.mubr.f32.gmra.mrb[54].mxu1 %v445_v11  ;;  %763 = vmatprep.mubr.f32.mxu0 %v448_v12 }
  0xb6   : > { %988 = vmatprep.mubr.f32.mxu1 %v450_v13 }
  0xb8   : > { %764 = vmatmul.mubr.f32.gmra.mrb[56].mxu0 %v447_v16 }
  0xb9   : > { %989 = vmatmul.mubr.f32.gmra.mrb[56].mxu1 %v449_v17  ;;  %768 = vmatprep.mubr.f32.mxu0 %v452_v18 }
  0xba   : > { %993 = vmatprep.mubr.f32.mxu1 %v454_v19 }
  0xbc   : > { %769 = vmatmul.mubr.f32.gmra.mrb[58].mxu0 %v451_v22 }
  0xbd   : > { %994 = vmatmul.mubr.f32.gmra.mrb[58].mxu1 %v453_v23  ;;  %773 = vmatprep.mubr.f32.mxu0 %v456_v24 }
  0xbe   : > { %998 = vmatprep.mubr.f32.mxu1 %v458_v25 }
  0xc0   : > { %774 = vmatmul.mubr.f32.gmra.mrb[60].mxu0 %v455_v28 }
  0xc1   : > { %999 = vmatmul.mubr.f32.gmra.mrb[60].mxu1 %v457_v29  ;;  %778 = vmatprep.mubr.f32.mxu0 %v460_v30 }
  0xc2   : > { %1003 = vmatprep.mubr.f32.mxu1 %v462_v31 }
  0xc4   : > { %779 = vmatmul.mubr.f32.gmra.mrb[62].mxu0 %v459_v32 }
  0xc5   : > { %1004 = vmatmul.mubr.f32.gmra.mrb[62].mxu1 %v461_v33 }
 0x11b   : > { %v625_v34 = vpop.f32.mrb[0].mxu0 }
 0x11c   : > { %v850_v36 = vpop.f32.mrb[0].mxu1  ;;  %v627_v37 = vpop.f32.mrb[1].mxu0 }
 0x11d   : > { %v851_v38 = vadd.f32 %v850_v36, %v625_v34  ;;  %v852_v39 = vpop.f32.mrb[1].mxu1 }
 0x11f   : > { %v1009_v40 = vadd.f32 %v1669_v35, %v851_v38  ;;  %v630_v43 = vpop.f32.mrb[2].mxu0 }
 0x120   : > { %v855_v44 = vpop.f32.mrb[2].mxu1  ;;  %v632_v45 = vpop.f32.mrb[3].mxu0 }
 0x121   : > { %1041 = vst [vmem:[%s1674_s18] sm:$0xff] %v1009_v40  ;;  %v856_v46 = vadd.f32 %v855_v44, %v630_v43  ;;  %v857_v47 = vpop.f32.mrb[3].mxu1 }
 0x123   : > { %v1010_v48 = vadd.f32 %v1669_v35, %v856_v46  ;;  %v635_v3 = vpop.f32.mrb[4].mxu0 }
 0x124   : > { %v860_v49 = vpop.f32.mrb[4].mxu1  ;;  %v637_v41 = vpop.f32.mrb[5].mxu0 }
 0x125   : > { %1042 = vst [vmem:[%s1674_s18 + $0x8] sm:$0xff] %v1010_v48  ;;  %v861_v50 = vadd.f32 %v860_v49, %v635_v3  ;;  %v862_v51 = vpop.f32.mrb[5].mxu1 }
 0x127   : > { %v1011_v52 = vadd.f32 %v1669_v35, %v861_v50  ;;  %v640_v42 = vpop.f32.mrb[6].mxu0 }
 0x128   : > { %v865_v53 = vpop.f32.mrb[6].mxu1  ;;  %v642_v54 = vpop.f32.mrb[7].mxu0 }
 0x129   : > { %1043 = vst [vmem:[%s1674_s18 + $0x10] sm:$0xff] %v1011_v52  ;;  %v866_v55 = vadd.f32 %v865_v53, %v640_v42  ;;  %v867_v56 = vpop.f32.mrb[7].mxu1 }
 0x12b   : > { %v1012_v57 = vadd.f32 %v1669_v35, %v866_v55  ;;  %v645_v58 = vpop.f32.mrb[8].mxu0 }
 0x12c   : > { %v870_v59 = vpop.f32.mrb[8].mxu1  ;;  %v647_v60 = vpop.f32.mrb[9].mxu0 }
 0x12d   : > { %1044 = vst [vmem:[%s1674_s18 + $0x18] sm:$0xff] %v1012_v57  ;;  %v871_v61 = vadd.f32 %v870_v59, %v645_v58  ;;  %v872_v62 = vpop.f32.mrb[9].mxu1 }
 0x12f   : > { %v1013_v63 = vadd.f32 %v1669_v35, %v871_v61  ;;  %v650_v0 = vpop.f32.mrb[10].mxu0 }
 0x130   : > { %v875_v1 = vpop.f32.mrb[10].mxu1  ;;  %v652_v2 = vpop.f32.mrb[11].mxu0 }
 0x131   : > { %1045 = vst [vmem:[%s1674_s18 + $0x20] sm:$0xff] %v1013_v63  ;;  %v876_v4 = vadd.f32 %v875_v1, %v650_v0  ;;  %v877_v5 = vpop.f32.mrb[11].mxu1 }
 0x133   : > { %v1014_v6 = vadd.f32 %v1669_v35, %v876_v4  ;;  %v655_v7 = vpop.f32.mrb[12].mxu0 }
 0x134   : > { %v880_v8 = vpop.f32.mrb[12].mxu1  ;;  %v657_v9 = vpop.f32.mrb[13].mxu0 }
 0x135   : > { %1046 = vst [vmem:[%s1674_s18 + $0x28] sm:$0xff] %v1014_v6  ;;  %v881_v10 = vadd.f32 %v880_v8, %v655_v7  ;;  %v882_v11 = vpop.f32.mrb[13].mxu1 }
 0x137   : > { %v1015_v12 = vadd.f32 %v1669_v35, %v881_v10  ;;  %v660_v13 = vpop.f32.mrb[14].mxu0 }
 0x138   : > { %v885_v14 = vpop.f32.mrb[14].mxu1  ;;  %v662_v15 = vpop.f32.mrb[15].mxu0 }
 0x139   : > { %1047 = vst [vmem:[%s1674_s18 + $0x30] sm:$0xff] %v1015_v12  ;;  %v886_v16 = vadd.f32 %v885_v14, %v660_v13  ;;  %v887_v17 = vpop.f32.mrb[15].mxu1 }
 0x13b   : > { %v1016_v18 = vadd.f32 %v1669_v35, %v886_v16  ;;  %v665_v19 = vpop.f32.mrb[16].mxu0 }
 0x13c   : > { %v890_v20 = vpop.f32.mrb[16].mxu1  ;;  %v667_v21 = vpop.f32.mrb[17].mxu0 }
 0x13d   : > { %1048 = vst [vmem:[%s1674_s18 + $0x38] sm:$0xff] %v1016_v18  ;;  %v891_v22 = vadd.f32 %v890_v20, %v665_v19  ;;  %v892_v23 = vpop.f32.mrb[17].mxu1 }
 0x13f   : > { %v1017_v24 = vadd.f32 %v1669_v35, %v891_v22  ;;  %v670_v25 = vpop.f32.mrb[18].mxu0 }
 0x140   : > { %v895_v26 = vpop.f32.mrb[18].mxu1  ;;  %v672_v27 = vpop.f32.mrb[19].mxu0 }
 0x141   : > { %1049 = vst [vmem:[%s1674_s18 + $0x40] sm:$0xff] %v1017_v24  ;;  %v896_v28 = vadd.f32 %v895_v26, %v670_v25  ;;  %v897_v29 = vpop.f32.mrb[19].mxu1 }
 0x143   : > { %v1018_v30 = vadd.f32 %v1669_v35, %v896_v28  ;;  %v675_v31 = vpop.f32.mrb[20].mxu0 }
 0x144   : > { %v900_v32 = vpop.f32.mrb[20].mxu1  ;;  %v677_v33 = vpop.f32.mrb[21].mxu0 }
 0x145   : > { %1050 = vst [vmem:[%s1674_s18 + $0x48] sm:$0xff] %v1018_v30  ;;  %v901_v34 = vadd.f32 %v900_v32, %v675_v31  ;;  %v902_v36 = vpop.f32.mrb[21].mxu1 }
 0x147   : > { %v1019_v37 = vadd.f32 %v1669_v35, %v901_v34  ;;  %v680_v38 = vpop.f32.mrb[22].mxu0 }
 0x148   : > { %v905_v39 = vpop.f32.mrb[22].mxu1  ;;  %v682_v40 = vpop.f32.mrb[23].mxu0 }
 0x149   : > { %1051 = vst [vmem:[%s1674_s18 + $0x50] sm:$0xff] %v1019_v37  ;;  %v906_v43 = vadd.f32 %v905_v39, %v680_v38  ;;  %v907_v44 = vpop.f32.mrb[23].mxu1 }
 0x14b   : > { %v1020_v45 = vadd.f32 %v1669_v35, %v906_v43  ;;  %v685_v46 = vpop.f32.mrb[24].mxu0 }
 0x14c   : > { %v910_v47 = vpop.f32.mrb[24].mxu1  ;;  %v687_v48 = vpop.f32.mrb[25].mxu0 }
 0x14d   : > { %1052 = vst [vmem:[%s1674_s18 + $0x58] sm:$0xff] %v1020_v45  ;;  %v911_v3 = vadd.f32 %v910_v47, %v685_v46  ;;  %v912_v49 = vpop.f32.mrb[25].mxu1 }
 0x14f   : > { %v1021_v41 = vadd.f32 %v1669_v35, %v911_v3  ;;  %v690_v50 = vpop.f32.mrb[26].mxu0 }
 0x150   : > { %v915_v51 = vpop.f32.mrb[26].mxu1  ;;  %v692_v52 = vpop.f32.mrb[27].mxu0 }
 0x151   : > { %1053 = vst [vmem:[%s1674_s18 + $0x60] sm:$0xff] %v1021_v41  ;;  %v916_v42 = vadd.f32 %v915_v51, %v690_v50  ;;  %v917_v53 = vpop.f32.mrb[27].mxu1 }
 0x153   : > { %v1022_v54 = vadd.f32 %v1669_v35, %v916_v42  ;;  %v695_v55 = vpop.f32.mrb[28].mxu0 }
 0x154   : > { %v920_v56 = vpop.f32.mrb[28].mxu1  ;;  %v697_v57 = vpop.f32.mrb[29].mxu0 }
 0x155   : > { %1054 = vst [vmem:[%s1674_s18 + $0x68] sm:$0xff] %v1022_v54  ;;  %v921_v58 = vadd.f32 %v920_v56, %v695_v55  ;;  %v922_v59 = vpop.f32.mrb[29].mxu1 }
 0x157   : > { %v1023_v60 = vadd.f32 %v1669_v35, %v921_v58  ;;  %v700_v61 = vpop.f32.mrb[30].mxu0 }
 0x158   : > { %v925_v62 = vpop.f32.mrb[30].mxu1  ;;  %v702_v63 = vpop.f32.mrb[31].mxu0 }
 0x159   : > { %1055 = vst [vmem:[%s1674_s18 + $0x70] sm:$0xff] %v1023_v60  ;;  %v926_v0 = vadd.f32 %v925_v62, %v700_v61  ;;  %v927_v1 = vpop.f32.mrb[31].mxu1 }
 0x15b   : > { %v1024_v2 = vadd.f32 %v1669_v35, %v926_v0  ;;  %v705_v4 = vpop.f32.mrb[32].mxu0 }
 0x15c   : > { %v930_v5 = vpop.f32.mrb[32].mxu1  ;;  %v707_v6 = vpop.f32.mrb[33].mxu0 }
 0x15d   : > { %1056 = vst [vmem:[%s1674_s18 + $0x78] sm:$0xff] %v1024_v2  ;;  %v931_v7 = vadd.f32 %v930_v5, %v705_v4  ;;  %v932_v8 = vpop.f32.mrb[33].mxu1 }
 0x15f   : > { %v1025_v9 = vadd.f32 %v1669_v35, %v931_v7  ;;  %v710_v10 = vpop.f32.mrb[34].mxu0 }
 0x160   : > { %v935_v11 = vpop.f32.mrb[34].mxu1  ;;  %v712_v12 = vpop.f32.mrb[35].mxu0 }
 0x161   : > { %1057 = vst [vmem:[%s1674_s18 + $0x80] sm:$0xff] %v1025_v9  ;;  %v936_v13 = vadd.f32 %v935_v11, %v710_v10  ;;  %v937_v14 = vpop.f32.mrb[35].mxu1 }
 0x163   : > { %v1026_v15 = vadd.f32 %v1669_v35, %v936_v13  ;;  %v715_v16 = vpop.f32.mrb[36].mxu0 }
 0x164   : > { %v940_v17 = vpop.f32.mrb[36].mxu1  ;;  %v717_v18 = vpop.f32.mrb[37].mxu0 }
 0x165   : > { %1058 = vst [vmem:[%s1674_s18 + $0x88] sm:$0xff] %v1026_v15  ;;  %v941_v19 = vadd.f32 %v940_v17, %v715_v16  ;;  %v942_v20 = vpop.f32.mrb[37].mxu1 }
 0x167   : > { %v1027_v21 = vadd.f32 %v1669_v35, %v941_v19  ;;  %v720_v22 = vpop.f32.mrb[38].mxu0 }
 0x168   : > { %v945_v23 = vpop.f32.mrb[38].mxu1  ;;  %v722_v24 = vpop.f32.mrb[39].mxu0 }
 0x169   : > { %1059 = vst [vmem:[%s1674_s18 + $0x90] sm:$0xff] %v1027_v21  ;;  %v946_v25 = vadd.f32 %v945_v23, %v720_v22  ;;  %v947_v26 = vpop.f32.mrb[39].mxu1 }
 0x16b   : > { %v1028_v27 = vadd.f32 %v1669_v35, %v946_v25  ;;  %v725_v28 = vpop.f32.mrb[40].mxu0 }
 0x16c   : > { %v950_v29 = vpop.f32.mrb[40].mxu1  ;;  %v727_v30 = vpop.f32.mrb[41].mxu0 }
 0x16d   : > { %1060 = vst [vmem:[%s1674_s18 + $0x98] sm:$0xff] %v1028_v27  ;;  %v951_v31 = vadd.f32 %v950_v29, %v725_v28  ;;  %v952_v32 = vpop.f32.mrb[41].mxu1 }
 0x16f   : > { %v1029_v33 = vadd.f32 %v1669_v35, %v951_v31  ;;  %v730_v34 = vpop.f32.mrb[42].mxu0 }
 0x170   : > { %v955_v36 = vpop.f32.mrb[42].mxu1  ;;  %v732_v37 = vpop.f32.mrb[43].mxu0 }
 0x171   : > { %1061 = vst [vmem:[%s1674_s18 + $0xa0] sm:$0xff] %v1029_v33  ;;  %v956_v38 = vadd.f32 %v955_v36, %v730_v34  ;;  %v957_v39 = vpop.f32.mrb[43].mxu1 }
 0x173   : > { %v1030_v40 = vadd.f32 %v1669_v35, %v956_v38  ;;  %v735_v43 = vpop.f32.mrb[44].mxu0 }
 0x174   : > { %v960_v44 = vpop.f32.mrb[44].mxu1  ;;  %v737_v45 = vpop.f32.mrb[45].mxu0 }
 0x175   : > { %1062 = vst [vmem:[%s1674_s18 + $0xa8] sm:$0xff] %v1030_v40  ;;  %v961_v46 = vadd.f32 %v960_v44, %v735_v43  ;;  %v962_v47 = vpop.f32.mrb[45].mxu1 }
 0x177   : > { %v1031_v48 = vadd.f32 %v1669_v35, %v961_v46  ;;  %v740_v3 = vpop.f32.mrb[46].mxu0 }
 0x178   : > { %v965_v49 = vpop.f32.mrb[46].mxu1  ;;  %v742_v41 = vpop.f32.mrb[47].mxu0 }
 0x179   : > { %1063 = vst [vmem:[%s1674_s18 + $0xb0] sm:$0xff] %v1031_v48  ;;  %v966_v50 = vadd.f32 %v965_v49, %v740_v3  ;;  %v967_v51 = vpop.f32.mrb[47].mxu1 }
 0x17b   : > { %v1032_v52 = vadd.f32 %v1669_v35, %v966_v50  ;;  %v745_v42 = vpop.f32.mrb[48].mxu0 }
 0x17c   : > { %v970_v53 = vpop.f32.mrb[48].mxu1  ;;  %v747_v54 = vpop.f32.mrb[49].mxu0 }
 0x17d   : > { %1064 = vst [vmem:[%s1674_s18 + $0xb8] sm:$0xff] %v1032_v52  ;;  %v971_v55 = vadd.f32 %v970_v53, %v745_v42  ;;  %v972_v56 = vpop.f32.mrb[49].mxu1 }
 0x17f   : > { %v1033_v57 = vadd.f32 %v1669_v35, %v971_v55  ;;  %v750_v58 = vpop.f32.mrb[50].mxu0 }
 0x180   : > { %v975_v59 = vpop.f32.mrb[50].mxu1  ;;  %v752_v60 = vpop.f32.mrb[51].mxu0 }
 0x181   : > { %1065 = vst [vmem:[%s1674_s18 + $0xc0] sm:$0xff] %v1033_v57  ;;  %v976_v61 = vadd.f32 %v975_v59, %v750_v58  ;;  %v977_v62 = vpop.f32.mrb[51].mxu1 }
 0x183   : > { %v1034_v63 = vadd.f32 %v1669_v35, %v976_v61  ;;  %v755_v0 = vpop.f32.mrb[52].mxu0 }
 0x184   : > { %v980_v1 = vpop.f32.mrb[52].mxu1  ;;  %v757_v2 = vpop.f32.mrb[53].mxu0 }
 0x185   : > { %1066 = vst [vmem:[%s1674_s18 + $0xc8] sm:$0xff] %v1034_v63  ;;  %v981_v4 = vadd.f32 %v980_v1, %v755_v0  ;;  %v982_v5 = vpop.f32.mrb[53].mxu1 }
 0x187   : > { %v1035_v6 = vadd.f32 %v1669_v35, %v981_v4  ;;  %v760_v7 = vpop.f32.mrb[54].mxu0 }
 0x188   : > { %v985_v8 = vpop.f32.mrb[54].mxu1  ;;  %v762_v9 = vpop.f32.mrb[55].mxu0 }
 0x189   : > { %1067 = vst [vmem:[%s1674_s18 + $0xd0] sm:$0xff] %v1035_v6  ;;  %v986_v10 = vadd.f32 %v985_v8, %v760_v7  ;;  %v987_v11 = vpop.f32.mrb[55].mxu1 }
 0x18b   : > { %v1036_v12 = vadd.f32 %v1669_v35, %v986_v10  ;;  %v765_v13 = vpop.f32.mrb[56].mxu0 }
 0x18c   : > { %v990_v14 = vpop.f32.mrb[56].mxu1  ;;  %v767_v15 = vpop.f32.mrb[57].mxu0 }
 0x18d   : > { %1068 = vst [vmem:[%s1674_s18 + $0xd8] sm:$0xff] %v1036_v12  ;;  %v991_v16 = vadd.f32 %v990_v14, %v765_v13  ;;  %v992_v17 = vpop.f32.mrb[57].mxu1 }
 0x18f   : > { %v1037_v18 = vadd.f32 %v1669_v35, %v991_v16  ;;  %v770_v19 = vpop.f32.mrb[58].mxu0 }
 0x190   : > { %v995_v20 = vpop.f32.mrb[58].mxu1  ;;  %v772_v21 = vpop.f32.mrb[59].mxu0 }
 0x191   : > { %1069 = vst [vmem:[%s1674_s18 + $0xe0] sm:$0xff] %v1037_v18  ;;  %v996_v22 = vadd.f32 %v995_v20, %v770_v19  ;;  %v997_v23 = vpop.f32.mrb[59].mxu1 }
 0x193   : > { %v1038_v24 = vadd.f32 %v1669_v35, %v996_v22  ;;  %v775_v25 = vpop.f32.mrb[60].mxu0 }
 0x194   : > { %v1000_v26 = vpop.f32.mrb[60].mxu1  ;;  %v777_v27 = vpop.f32.mrb[61].mxu0 }
 0x195   : > { %1070 = vst [vmem:[%s1674_s18 + $0xe8] sm:$0xff] %v1038_v24  ;;  %v1001_v28 = vadd.f32 %v1000_v26, %v775_v25  ;;  %v1002_v29 = vpop.f32.mrb[61].mxu1 }
 0x197   : > { %v1039_v30 = vadd.f32 %v1669_v35, %v1001_v28  ;;  %v780_v31 = vpop.f32.mrb[62].mxu0 }
 0x198   : > { %v1005_v32 = vpop.f32.mrb[62].mxu1  ;;  %v782_v33 = vpop.f32.mrb[63].mxu0 }
 0x199   : > { %1071 = vst [vmem:[%s1674_s18 + $0xf0] sm:$0xff] %v1039_v30  ;;  %v1006_v34 = vadd.f32 %v1005_v32, %v780_v31  ;;  %v1007_v36 = vpop.f32.mrb[63].mxu1 }
 0x19b   : > { %v1040_v37 = vadd.f32 %v1669_v35, %v1006_v34 }
 0x19d   : > { %1072 = vst [vmem:[%s1674_s18 + $0xf8] sm:$0xff] %v1040_v37 }
 0x19e PF: > { %s13_s14 = sadd.s32 1, %s1317_s14   ;;  %s1753_s12 = smov %s1313_s13 }
 0x19f   : > { %p10_p5 = scmp.ge.s32.totalorder %s13_s14, 4   ;;  %s1754_s13 = smov %s1756_s15 }
 0x1a1   :  { %12 = sbr.rel (!%p10_p5) target bundleno = 2 (0x2), region = 69 }

// kernel: gcn_net_forward.4
= control target key start
LH: loop header
LB: loop body
LE: loop exit
PB: predicated region body
PF: predicated region fallthrough
CT: control target
= control target key end

     0   :  { %s1888_s15 = smov 0   ;;  %s1890_s16 = smov 0   ;;  %s2345_s0 = inlined_call_operand.vmem [shape: bf16[512,512], index: 0, kind: input, shape index: {}]   ;;  %s2346_s1 = inlined_call_operand.vmem [shape: f32[512,128], index: 1, kind: input, shape index: {}]   ;;  %s2347_s2 = inlined_call_operand.vmem [shape: f32[1,128], index: 2, kind: input, shape index: {}]   ;;  %s2348_s3 = inlined_call_operand.vmem [shape: f32[128,128], index: 3, kind: input, shape index: {}]   ;;  %s2349_s4 = inlined_call_operand.vmem [shape: f32[512,128], index: 4, kind: output, shape index: {}]  }
   0x1   :  { %s1892_s17 = smov 0  }
   0x2 LB: > { %s26_s18 = sadd.s32 1, %s1856_s16  ;;  %p1531_p0 = scmp.ge.s32.totalorder %s1860_s17, 1  ;;  %s1860_s17 = sphi %s1892_s17, %s14_s17   ;;  %s1856_s16 = sphi %s1890_s16, %s2351_s16   ;;  %s1852_s15 = sphi %s1888_s15, %s2350_s15  }
   0x3   : > { %p28_p1 = scmp.ge.s32.totalorder %s26_s18, 2  ;;  %p194_p2 = scmp.lt.s32.totalorder %s1860_s17, 3 }
   0x5   : > { %s2353_s18 = smov (%p28_p1, %s26_s18), 0  ;;  %p195_p3 = pnand %p1531_p0, %p194_p2 }
   0x6   : > { %v522_v0 = vld [vmem:[%s2346_s1] sm:$0xff] (!%p195_p3)  ;;  %v523_v1 = vld [vmem:[%s2346_s1 + $0x8] sm:$0xff] (!%p195_p3)  ;;  %v1862_v3 = vmov (!%p195_p3), 0.0|0.0   ;;  %v524_v6 = vld [vmem:[%s2346_s1 + $0x10] sm:$0xff] (!%p195_p3)  ;;  %s1532_s13 = sshll.u32 (!%p195_p3), %s1852_s15, 5 }
   0x7   : > { %198 = sbr.rel (%p195_p3) target bundleno = 629 (0x275), region = 36  ;;  %v554_v2 = vld [vmem:[%s2346_s1 + $0x100] sm:$0xff] (!%p195_p3)  ;;  %1669 = vmatprep.subr.bf16.mxu0 (!%p195_p3), %v1862_v3  ;;  %1717 = vmatprep.subr.bf16.mxu1 (!%p195_p3), %v1862_v3  ;;  %v1670_v4 = vpack.c.bf16 (!%p195_p3), %v523_v1, %v522_v0  ;;  %v555_v5 = vld [vmem:[%s2346_s1 + $0x108] sm:$0xff] (!%p195_p3)  ;;  %v525_v7 = vld [vmem:[%s2346_s1 + $0x18] sm:$0xff] (!%p195_p3)  ;;  %p232_p4 = scmp.lt.s32.totalorder (!%p195_p3), %s1532_s13, 63 }
   0x8   : > { %v1718_v8 = vpack.c.bf16 (!%p195_p3), %v555_v5, %v554_v2  ;;  %v556_v9 = vld [vmem:[%s2346_s1 + $0x110] sm:$0xff] (!%p195_p3)  ;;  %v557_v10 = vld [vmem:[%s2346_s1 + $0x118] sm:$0xff] (!%p195_p3)  ;;  %v1673_v11 = vpack.c.bf16 (!%p195_p3), %v525_v7, %v524_v6  ;;  %v526_v13 = vld [vmem:[%s2346_s1 + $0x20] sm:$0xff] (!%p195_p3) }
   0x9   : > { %1671 = vmatpush1.bf16.msra.mxu0 (!%p195_p3), %v1670_v4  ;;  %v1721_v12 = vpack.c.bf16 (!%p195_p3), %v557_v10, %v556_v9  ;;  %v527_v14 = vld [vmem:[%s2346_s1 + $0x28] sm:$0xff] (!%p195_p3)  ;;  %v558_v15 = vld [vmem:[%s2346_s1 + $0x120] sm:$0xff] (!%p195_p3)  ;;  %v528_v19 = vld [vmem:[%s2346_s1 + $0x30] sm:$0xff] (!%p195_p3) }
   0xa   : > { %1719 = vmatpush1.bf16.msra.mxu1 (!%p195_p3), %v1718_v8  ;;  %1672 = vmatprep.subr.bf16.mxu0 (!%p195_p3), %v1862_v3  ;;  %v559_v16 = vld [vmem:[%s2346_s1 + $0x128] sm:$0xff] (!%p195_p3)  ;;  %v1676_v17 = vpack.c.bf16 (!%p195_p3), %v527_v14, %v526_v13  ;;  %v529_v20 = vld [vmem:[%s2346_s1 + $0x38] sm:$0xff] (!%p195_p3)  ;;  %v560_v21 = vld [vmem:[%s2346_s1 + $0x130] sm:$0xff] (!%p195_p3) }
   0xb   : > { %1720 = vmatprep.subr.bf16.mxu1 (!%p195_p3), %v1862_v3  ;;  %v1724_v18 = vpack.c.bf16 (!%p195_p3), %v559_v16, %v558_v15  ;;  %v561_v22 = vld [vmem:[%s2346_s1 + $0x138] sm:$0xff] (!%p195_p3)  ;;  %v1679_v23 = vpack.c.bf16 (!%p195_p3), %v529_v20, %v528_v19  ;;  %v530_v25 = vld [vmem:[%s2346_s1 + $0x40] sm:$0xff] (!%p195_p3)  ;;  %v531_v26 = vld [vmem:[%s2346_s1 + $0x48] sm:$0xff] (!%p195_p3) }
   0xc   : > { %v1727_v24 = vpack.c.bf16 (!%p195_p3), %v561_v22, %v560_v21  ;;  %v562_v27 = vld [vmem:[%s2346_s1 + $0x140] sm:$0xff] (!%p195_p3)  ;;  %v563_v28 = vld [vmem:[%s2346_s1 + $0x148] sm:$0xff] (!%p195_p3)  ;;  %v1682_v29 = vpack.c.bf16 (!%p195_p3), %v531_v26, %v530_v25  ;;  %v532_v31 = vld [vmem:[%s2346_s1 + $0x50] sm:$0xff] (!%p195_p3) }
   0xd   : > { %1674 = vmatpush1.bf16.msra.mxu0 (!%p195_p3), %v1673_v11  ;;  %v1730_v30 = vpack.c.bf16 (!%p195_p3), %v563_v28, %v562_v27  ;;  %v533_v32 = vld [vmem:[%s2346_s1 + $0x58] sm:$0xff] (!%p195_p3)  ;;  %v564_v33 = vld [vmem:[%s2346_s1 + $0x150] sm:$0xff] (!%p195_p3)  ;;  %v534_v37 = vld [vmem:[%s2346_s1 + $0x60] sm:$0xff] (!%p195_p3) }
   0xe   : > { %1722 = vmatpush1.bf16.msra.mxu1 %v1721_v12  ;;  %1675 = vmatprep.subr.bf16.mxu0 %v1862_v3  ;;  %s2355_s13 = smov (!%p232_p4, %s1532_s13), 63  ;;  %v565_v34 = vld [vmem:[%s2346_s1 + $0x158] sm:$0xff]  ;;  %v1685_v35 = vpack.c.bf16 %v533_v32, %v532_v31  ;;  %v535_v38 = vld [vmem:[%s2346_s1 + $0x68] sm:$0xff]  ;;  %v566_v39 = vld [vmem:[%s2346_s1 + $0x160] sm:$0xff] }
   0xf   : > { %1723 = vmatprep.subr.bf16.mxu1 %v1862_v3  ;;  %s1540_s11 = sshll.u32 %s2355_s13, 4  ;;  %v1733_v36 = vpack.c.bf16 %v565_v34, %v564_v33  ;;  %v567_v40 = vld [vmem:[%s2346_s1 + $0x168] sm:$0xff]  ;;  %v1688_v44 = vpack.c.bf16 %v535_v38, %v534_v37  ;;  %v536_v47 = vld [vmem:[%s2346_s1 + $0x70] sm:$0xff]  ;;  %v537_v48 = vld [vmem:[%s2346_s1 + $0x78] sm:$0xff] }
  0x10   : > { %s1997_s26 = scalar_lea.vmem %s2345_s0, %s1540_s11  ;;  %v1736_v46 = vpack.c.bf16 %v567_v40, %v566_v39  ;;  %v568_v49 = vld [vmem:[%s2346_s1 + $0x170] sm:$0xff]  ;;  %v569_v50 = vld [vmem:[%s2346_s1 + $0x178] sm:$0xff]  ;;  %v1691_v51 = vpack.c.bf16 %v537_v48, %v536_v47  ;;  %v538_v53 = vld [vmem:[%s2346_s1 + $0x80] sm:$0xff] }
  0x11   : > { %1677 = vmatpush1.bf16.msra.mxu0 %v1676_v17  ;;  %v2014_v41 = vld [vmem:[%s1997_s26] sm:$0xff]  ;;  %v2017_v42 = vld [vmem:[%s1997_s26 + $0x8] sm:$0xff]  ;;  %v1739_v52 = vpack.c.bf16 %v569_v50, %v568_v49  ;;  %v540_v59 = vld [vmem:[%s2346_s1 + $0x90] sm:$0xff] }
  0x12   : > { %1725 = vmatpush1.bf16.msra.mxu1 %v1724_v18  ;;  %1678 = vmatprep.subr.bf16.mxu0 %v1862_v3  ;;  %v363_v43 = vunpack.c.h.bf16 %v2014_v41  ;;  %v365_v45 = vunpack.c.h.bf16 %v2017_v42  ;;  %v539_v54 = vld [vmem:[%s2346_s1 + $0x88] sm:$0xff]  ;;  %v570_v55 = vld [vmem:[%s2346_s1 + $0x180] sm:$0xff]  ;;  %v541_v60 = vld [vmem:[%s2346_s1 + $0x98] sm:$0xff]  ;;  %v362_v40 = vunpack.c.l.bf16 %v2014_v41 }
  0x13   : > { %1726 = vmatprep.subr.bf16.mxu1 %v1862_v3  ;;  %v571_v56 = vld [vmem:[%s2346_s1 + $0x188] sm:$0xff]  ;;  %v1694_v57 = vpack.c.bf16 %v539_v54, %v538_v53  ;;  %v572_v61 = vld [vmem:[%s2346_s1 + $0x190] sm:$0xff]  ;;  %v573_v62 = vld [vmem:[%s2346_s1 + $0x198] sm:$0xff]  ;;  %v1697_v63 = vpack.c.bf16 %v541_v60, %v540_v59 }
  0x14   : > { %650 = vmatprep.mubr.f32.mxu0 %v363_v43  ;;  %875 = vmatprep.mubr.f32.mxu1 %v365_v45  ;;  %v1742_v58 = vpack.c.bf16 %v571_v56, %v570_v55  ;;  %v1745_v0 = vpack.c.bf16 %v573_v62, %v572_v61  ;;  %v542_v1 = vld [vmem:[%s2346_s1 + $0xa0] sm:$0xff]  ;;  %v543_v2 = vld [vmem:[%s2346_s1 + $0xa8] sm:$0xff]  ;;  %v544_v8 = vld [vmem:[%s2346_s1 + $0xb0] sm:$0xff]  ;;  %v364_v43 = vunpack.c.l.bf16 %v2017_v42 }
  0x15   : > { %1680 = vmatpush1.bf16.msra.mxu0 %v1679_v23  ;;  %v574_v4 = vld [vmem:[%s2346_s1 + $0x1a0] sm:$0xff]  ;;  %v575_v5 = vld [vmem:[%s2346_s1 + $0x1a8] sm:$0xff]  ;;  %v1700_v6 = vpack.c.bf16 %v543_v2, %v542_v1  ;;  %v545_v9 = vld [vmem:[%s2346_s1 + $0xb8] sm:$0xff] }
  0x16   : > { %1728 = vmatpush1.bf16.msra.mxu1 %v1727_v24  ;;  %1681 = vmatprep.subr.bf16.mxu0 %v1862_v3  ;;  %v1748_v7 = vpack.c.bf16 %v575_v5, %v574_v4  ;;  %v576_v10 = vld [vmem:[%s2346_s1 + $0x1b0] sm:$0xff]  ;;  %v577_v11 = vld [vmem:[%s2346_s1 + $0x1b8] sm:$0xff]  ;;  %v1703_v12 = vpack.c.bf16 %v545_v9, %v544_v8  ;;  %v546_v14 = vld [vmem:[%s2346_s1 + $0xc0] sm:$0xff] }
  0x17   : > { %1729 = vmatprep.subr.bf16.mxu1 %v1862_v3  ;;  %v1751_v13 = vpack.c.bf16 %v577_v11, %v576_v10  ;;  %v547_v15 = vld [vmem:[%s2346_s1 + $0xc8] sm:$0xff]  ;;  %v578_v16 = vld [vmem:[%s2346_s1 + $0x1c0] sm:$0xff]  ;;  %v548_v20 = vld [vmem:[%s2346_s1 + $0xd0] sm:$0xff] }
  0x18   : > { %v579_v17 = vld [vmem:[%s2346_s1 + $0x1c8] sm:$0xff]  ;;  %v1706_v18 = vpack.c.bf16 %v547_v15, %v546_v14  ;;  %v549_v21 = vld [vmem:[%s2346_s1 + $0xd8] sm:$0xff]  ;;  %v580_v22 = vld [vmem:[%s2346_s1 + $0x1d0] sm:$0xff] }
  0x19   : > { %1683 = vmatpush1.bf16.msra.mxu0 %v1682_v29  ;;  %v1754_v19 = vpack.c.bf16 %v579_v17, %v578_v16  ;;  %v581_v23 = vld [vmem:[%s2346_s1 + $0x1d8] sm:$0xff]  ;;  %v1709_v24 = vpack.c.bf16 %v549_v21, %v548_v20  ;;  %v550_v26 = vld [vmem:[%s2346_s1 + $0xe0] sm:$0xff]  ;;  %v551_v27 = vld [vmem:[%s2346_s1 + $0xe8] sm:$0xff] }
  0x1a   : > { %1731 = vmatpush1.bf16.msra.mxu1 %v1730_v30  ;;  %1684 = vmatprep.subr.bf16.mxu0 %v1862_v3  ;;  %v1757_v25 = vpack.c.bf16 %v581_v23, %v580_v22  ;;  %v582_v28 = vld [vmem:[%s2346_s1 + $0x1e0] sm:$0xff]  ;;  %v583_v29 = vld [vmem:[%s2346_s1 + $0x1e8] sm:$0xff]  ;;  %v1712_v30 = vpack.c.bf16 %v551_v27, %v550_v26  ;;  %v552_v32 = vld [vmem:[%s2346_s1 + $0xf0] sm:$0xff] }
  0x1b   : > { %1732 = vmatprep.subr.bf16.mxu1 %v1862_v3  ;;  %v1760_v31 = vpack.c.bf16 %v583_v29, %v582_v28  ;;  %v553_v33 = vld [vmem:[%s2346_s1 + $0xf8] sm:$0xff]  ;;  %v584_v34 = vld [vmem:[%s2346_s1 + $0x1f0] sm:$0xff]  ;;  %v1167_v45 = vld [vmem:[%s2348_s3] sm:$0xff] }
  0x1c   : > { %v300_v38 = vld [vmem:[%s1997_s26 + $0x10] sm:$0xff]  ;;  %v301_v39 = vld [vmem:[%s1997_s26 + $0x18] sm:$0xff]  ;;  %v302_v48 = vld [vmem:[%s1997_s26 + $0x20] sm:$0xff] }
  0x1d   : > { %1686 = vmatpush1.bf16.msra.mxu0 %v1685_v35  ;;  %v585_v35 = vld [vmem:[%s2346_s1 + $0x1f8] sm:$0xff]  ;;  %v1169_v47 = vld [vmem:[%s2348_s3 + $0x10] sm:$0xff]  ;;  %v303_v49 = vld [vmem:[%s1997_s26 + $0x28] sm:$0xff]  ;;  %v366_v50 = vunpack.c.l.bf16 %v300_v38  ;;  %v371_v53 = vunpack.c.h.bf16 %v302_v48  ;;  %v370_v59 = vunpack.c.l.bf16 %v302_v48 }
  0x1e   : > { %1734 = vmatpush1.bf16.msra.mxu1 %v1733_v36  ;;  %1687 = vmatprep.subr.bf16.mxu0 %v1862_v3  ;;  %v1715_v36 = vpack.c.bf16 %v553_v33, %v552_v32  ;;  %v1763_v37 = vpack.c.bf16 %v585_v35, %v584_v34  ;;  %v1170_v42 = vld [vmem:[%s2348_s3 + $0x18] sm:$0xff]  ;;  %v1171_v54 = vld [vmem:[%s2348_s3 + $0x20] sm:$0xff]  ;;  %v1172_v55 = vld [vmem:[%s2348_s3 + $0x28] sm:$0xff]  ;;  %v373_v56 = vunpack.c.h.bf16 %v303_v49  ;;  %v372_v61 = vunpack.c.l.bf16 %v303_v49 }
  0x1f   : > { %1735 = vmatprep.subr.bf16.mxu1 %v1862_v3  ;;  %v1773_v60 = vpack.c.bf16 %v1172_v55, %v1171_v54  ;;  %v306_v2 = vld [vmem:[%s1997_s26 + $0x40] sm:$0xff]  ;;  %v307_v4 = vld [vmem:[%s1997_s26 + $0x48] sm:$0xff]  ;;  %v312_v28 = vld [vmem:[%s1997_s26 + $0x70] sm:$0xff] }
  0x20   : > { %v379_v8 = vunpack.c.h.bf16 %v306_v2  ;;  %v1175_v9 = vld [vmem:[%s2348_s3 + $0x40] sm:$0xff]  ;;  %v1176_v10 = vld [vmem:[%s2348_s3 + $0x48] sm:$0xff]  ;;  %v381_v11 = vunpack.c.h.bf16 %v307_v4  ;;  %v378_v14 = vunpack.c.l.bf16 %v306_v2  ;;  %v380_v16 = vunpack.c.l.bf16 %v307_v4  ;;  %v313_v29 = vld [vmem:[%s1997_s26 + $0x78] sm:$0xff] }
  0x21   : > { %1689 = vmatpush1.bf16.msra.mxu0 %v1688_v44  ;;  %v367_v44 = vunpack.c.h.bf16 %v300_v38  ;;  %v1781_v15 = vpack.c.bf16 %v1176_v10, %v1175_v9  ;;  %v310_v21 = vld [vmem:[%s1997_s26 + $0x60] sm:$0xff]  ;;  %v311_v22 = vld [vmem:[%s1997_s26 + $0x68] sm:$0xff]  ;;  %v391_v32 = vunpack.c.h.bf16 %v312_v28  ;;  %v393_v33 = vunpack.c.h.bf16 %v313_v29 }
  0x22   : > { %1737 = vmatpush1.bf16.msra.mxu1 %v1736_v46  ;;  %1690 = vmatprep.subr.bf16.mxu0 %v1862_v3  ;;  %v1168_v46 = vld [vmem:[%s2348_s3 + $0x8] sm:$0xff]  ;;  %v387_v26 = vunpack.c.h.bf16 %v310_v21  ;;  %v389_v27 = vunpack.c.h.bf16 %v311_v22  ;;  %v314_v34 = vld [vmem:[%s1997_s26 + $0x80] sm:$0xff] }
  0x23   : > { %1738 = vmatprep.subr.bf16.mxu1 %v1862_v3  ;;  %v1765_v41 = vpack.c.bf16 %v1168_v46, %v1167_v45  ;;  %v315_v35 = vld [vmem:[%s1997_s26 + $0x88] sm:$0xff]  ;;  %v395_v38 = vunpack.c.h.bf16 %v314_v34 }
  0x24   : > { %v396_v45 = vunpack.c.l.bf16 %v315_v35  ;;  %v319_v48 = vld [vmem:[%s1997_s26 + $0xa8] sm:$0xff] }
  0x25   : > { %1692 = vmatpush1.bf16.msra.mxu0 %v1691_v51  ;;  %v1769_v51 = vpack.c.bf16 %v1170_v42, %v1169_v47  ;;  %v404_v54 = vunpack.c.l.bf16 %v319_v48 }
  0x26   : > { %1740 = vmatpush1.bf16.msra.mxu1 %v1739_v52  ;;  %1693 = vmatprep.subr.bf16.mxu0 %v1862_v3  ;;  %v368_v52 = vunpack.c.l.bf16 %v301_v39 }
  0x27   : > { %1741 = vmatprep.subr.bf16.mxu1 %v1862_v3 }
  0x29   : > { %1695 = vmatpush1.bf16.msra.mxu0 %v1694_v57  ;;  %v304_v57 = vld [vmem:[%s1997_s26 + $0x30] sm:$0xff] }
  0x2a   : > { %1743 = vmatpush1.bf16.msra.mxu1 %v1742_v58  ;;  %1696 = vmatprep.subr.bf16.mxu0 %v1862_v3  ;;  %v305_v58 = vld [vmem:[%s1997_s26 + $0x38] sm:$0xff]  ;;  %v375_v62 = vunpack.c.h.bf16 %v304_v57  ;;  %v374_v5 = vunpack.c.l.bf16 %v304_v57  ;;  %v322_v57 = vld [vmem:[%s1997_s26 + $0xc0] sm:$0xff] }
  0x2b   : > { %1744 = vmatprep.subr.bf16.mxu1 %v1862_v3  ;;  %v377_v1 = vunpack.c.h.bf16 %v305_v58 }
  0x2d   : > { %1698 = vmatpush1.bf16.msra.mxu0 %v1697_v63  ;;  %v1173_v63 = vld [vmem:[%s2348_s3 + $0x30] sm:$0xff] }
  0x2e   : > { %1746 = vmatpush1.bf16.msra.mxu1 %v1745_v0  ;;  %1699 = vmatprep.subr.bf16.mxu0 %v1862_v3  ;;  %v1174_v0 = vld [vmem:[%s2348_s3 + $0x38] sm:$0xff] }
  0x2f   : > { %1747 = vmatprep.subr.bf16.mxu1 %v1862_v3 }
  0x31   : > { %1701 = vmatpush1.bf16.msra.mxu0 %v1700_v6  ;;  %v1777_v6 = vpack.c.bf16 %v1174_v0, %v1173_v63  ;;  %v324_v63 = vld [vmem:[%s1997_s26 + $0xd0] sm:$0xff]  ;;  %v325_v0 = vld [vmem:[%s1997_s26 + $0xd8] sm:$0xff] }
  0x32   : > { %1749 = vmatpush1.bf16.msra.mxu1 %v1748_v7  ;;  %1702 = vmatprep.subr.bf16.mxu0 %v1862_v3  ;;  %v376_v7 = vunpack.c.l.bf16 %v305_v58  ;;  %v323_v58 = vld [vmem:[%s1997_s26 + $0xc8] sm:$0xff]  ;;  %v415_v4 = vunpack.c.h.bf16 %v324_v63  ;;  %v416_v9 = vunpack.c.l.bf16 %v325_v0 }
  0x33   : > { %1750 = vmatprep.subr.bf16.mxu1 %v1862_v3  ;;  %v412_v2 = vunpack.c.l.bf16 %v323_v58 }
  0x35   : > { %1704 = vmatpush1.bf16.msra.mxu0 %v1703_v12  ;;  %v308_v12 = vld [vmem:[%s1997_s26 + $0x50] sm:$0xff] }
  0x36   : > { %1752 = vmatpush1.bf16.msra.mxu1 %v1751_v13  ;;  %1705 = vmatprep.subr.bf16.mxu0 %v1862_v3  ;;  %v309_v13 = vld [vmem:[%s1997_s26 + $0x58] sm:$0xff]  ;;  %v383_v17 = vunpack.c.h.bf16 %v308_v12  ;;  %v382_v23 = vunpack.c.l.bf16 %v308_v12  ;;  %v328_v12 = vld [vmem:[%s1997_s26 + $0xf0] sm:$0xff] }
  0x37   : > { %1753 = vmatprep.subr.bf16.mxu1 %v1862_v3  ;;  %v385_v20 = vunpack.c.h.bf16 %v309_v13 }
  0x39   : > { %1707 = vmatpush1.bf16.msra.mxu0 %v1706_v18  ;;  %v1177_v18 = vld [vmem:[%s2348_s3 + $0x50] sm:$0xff] }
  0x3a   : > { %1755 = vmatpush1.bf16.msra.mxu1 %v1754_v19  ;;  %1708 = vmatprep.subr.bf16.mxu0 %v1862_v3  ;;  %v1178_v19 = vld [vmem:[%s2348_s3 + $0x58] sm:$0xff] }
  0x3b   : > { %1756 = vmatprep.subr.bf16.mxu1 %v1862_v3 }
  0x3d   : > { %1710 = vmatpush1.bf16.msra.mxu0 %v1709_v24  ;;  %v1785_v24 = vpack.c.bf16 %v1178_v19, %v1177_v18  ;;  %v330_v18 = vld [vmem:[%s1997_s26 + $0x100] sm:$0xff]  ;;  %v331_v19 = vld [vmem:[%s1997_s26 + $0x108] sm:$0xff] }
  0x3e   : > { %1758 = vmatpush1.bf16.msra.mxu1 %v1757_v25  ;;  %1711 = vmatprep.subr.bf16.mxu0 %v1862_v3  ;;  %v384_v25 = vunpack.c.l.bf16 %v309_v13  ;;  %v329_v13 = vld [vmem:[%s1997_s26 + $0xf8] sm:$0xff] }
  0x3f   : > { %1759 = vmatprep.subr.bf16.mxu1 %v1862_v3 }
  0x41   : > { %1713 = vmatpush1.bf16.msra.mxu0 %v1712_v30  ;;  %v386_v30 = vunpack.c.l.bf16 %v310_v21  ;;  %v424_v21 = vunpack.c.l.bf16 %v329_v13 }
  0x42   : > { %1761 = vmatpush1.bf16.msra.mxu1 %v1760_v31  ;;  %1714 = vmatprep.subr.bf16.mxu0 %v1862_v3  ;;  %v388_v31 = vunpack.c.l.bf16 %v311_v22  ;;  %v427_v22 = vunpack.c.h.bf16 %v330_v18 }
  0x43   : > { %1762 = vmatprep.subr.bf16.mxu1 %v1862_v3  ;;  %v369_v3 = vunpack.c.h.bf16 %v301_v39  ;;  %v397_v39 = vunpack.c.h.bf16 %v315_v35 }
  0x45   : > { %1716 = vmatpush1.bf16.msra.mxu0 %v1715_v36  ;;  %v390_v36 = vunpack.c.l.bf16 %v312_v28 }
  0x46   : > { %1764 = vmatpush1.bf16.msra.mxu1 %v1763_v37  ;;  %1766 = vmatprep.subr.bf16.mxu0 %v1765_v41  ;;  %v392_v37 = vunpack.c.l.bf16 %v313_v29 }
  0x47   : > { %1797 = vmatprep.subr.bf16.mxu1 %v1765_v41 }
  0x48   : > { %651 = vmatmul.mubr.f32.vlgmr.msra.gmra.mrb[0].mxu0 %v362_v40  ;;  %v316_v40 = vld [vmem:[%s1997_s26 + $0x90] sm:$0xff] }
  0x49   : > { %876 = vmatmul.mubr.f32.vlgmr.msra.gmra.mrb[0].mxu1 %v364_v43  ;;  %655 = vmatprep.mubr.f32.mxu0 %v367_v44  ;;  %v317_v43 = vld [vmem:[%s1997_s26 + $0x98] sm:$0xff]  ;;  %v394_v44 = vunpack.c.l.bf16 %v314_v34  ;;  %v399_v46 = vunpack.c.h.bf16 %v316_v40 }
  0x4a   : > { %880 = vmatprep.mubr.f32.mxu1 %v369_v3  ;;  %1768 = vmatpush3.bf16.msra.mxu0 %v1765_v41  ;;  %v401_v47 = vunpack.c.h.bf16 %v317_v43  ;;  %v318_v3 = vld [vmem:[%s1997_s26 + $0xa0] sm:$0xff]  ;;  %v400_v42 = vunpack.c.l.bf16 %v317_v43 }
  0x4b   : > { %1805 = vmatpush3.bf16.msra.mxu1 %v1765_v41  ;;  %1770 = vmatprep.subr.bf16.mxu0 %v1769_v51  ;;  %v398_v41 = vunpack.c.l.bf16 %v316_v40  ;;  %v403_v49 = vunpack.c.h.bf16 %v318_v3 }
  0x4c   : > { %656 = vmatmul.mubr.f32.gmra.mrb[2].mxu0 %v366_v50  ;;  %1798 = vmatprep.subr.bf16.mxu1 %v1769_v51  ;;  %v405_v50 = vunpack.c.h.bf16 %v319_v48 }
  0x4d   : > { %881 = vmatmul.mubr.f32.gmra.mrb[2].mxu1 %v368_v52  ;;  %660 = vmatprep.mubr.f32.mxu0 %v371_v53  ;;  %v321_v52 = vld [vmem:[%s1997_s26 + $0xb8] sm:$0xff]  ;;  %v402_v53 = vunpack.c.l.bf16 %v318_v3 }
  0x4e   : > { %885 = vmatprep.mubr.f32.mxu1 %v373_v56  ;;  %1772 = vmatpush3.bf16.msra.mxu0 %v1769_v51  ;;  %v409_v56 = vunpack.c.h.bf16 %v321_v52 }
  0x4f   : > { %1806 = vmatpush3.bf16.msra.mxu1 %v1769_v51  ;;  %1774 = vmatprep.subr.bf16.mxu0 %v1773_v60  ;;  %v320_v51 = vld [vmem:[%s1997_s26 + $0xb0] sm:$0xff] }
  0x50   : > { %661 = vmatmul.mubr.f32.gmra.mrb[4].mxu0 %v370_v59  ;;  %1799 = vmatprep.subr.bf16.mxu1 %v1773_v60  ;;  %v407_v55 = vunpack.c.h.bf16 %v320_v51  ;;  %v406_v59 = vunpack.c.l.bf16 %v320_v51 }
  0x51   : > { %886 = vmatmul.mubr.f32.gmra.mrb[4].mxu1 %v372_v61  ;;  %665 = vmatprep.mubr.f32.mxu0 %v375_v62  ;;  %v411_v61 = vunpack.c.h.bf16 %v322_v57  ;;  %v413_v62 = vunpack.c.h.bf16 %v323_v58 }
  0x52   : > { %890 = vmatprep.mubr.f32.mxu1 %v377_v1  ;;  %1776 = vmatpush3.bf16.msra.mxu0 %v1773_v60  ;;  %v410_v1 = vunpack.c.l.bf16 %v322_v57 }
  0x53   : > { %1807 = vmatpush3.bf16.msra.mxu1 %v1773_v60  ;;  %1778 = vmatprep.subr.bf16.mxu0 %v1777_v6  ;;  %v408_v60 = vunpack.c.l.bf16 %v321_v52 }
  0x54   : > { %666 = vmatmul.mubr.f32.gmra.mrb[6].mxu0 %v374_v5  ;;  %1800 = vmatprep.subr.bf16.mxu1 %v1777_v6  ;;  %v417_v5 = vunpack.c.h.bf16 %v325_v0 }
  0x55   : > { %891 = vmatmul.mubr.f32.gmra.mrb[6].mxu1 %v376_v7  ;;  %670 = vmatprep.mubr.f32.mxu0 %v379_v8  ;;  %v327_v7 = vld [vmem:[%s1997_s26 + $0xe8] sm:$0xff]  ;;  %v414_v8 = vunpack.c.l.bf16 %v324_v63 }
  0x56   : > { %895 = vmatprep.mubr.f32.mxu1 %v381_v11  ;;  %1780 = vmatpush3.bf16.msra.mxu0 %v1777_v6  ;;  %v421_v11 = vunpack.c.h.bf16 %v327_v7  ;;  %v1180_v63 = vld [vmem:[%s2348_s3 + $0x68] sm:$0xff] }
  0x57   : > { %1808 = vmatpush3.bf16.msra.mxu1 %v1777_v6  ;;  %1782 = vmatprep.subr.bf16.mxu0 %v1781_v15  ;;  %v326_v6 = vld [vmem:[%s1997_s26 + $0xe0] sm:$0xff] }
  0x58   : > { %671 = vmatmul.mubr.f32.gmra.mrb[8].mxu0 %v378_v14  ;;  %1801 = vmatprep.subr.bf16.mxu1 %v1781_v15  ;;  %v419_v10 = vunpack.c.h.bf16 %v326_v6  ;;  %v418_v14 = vunpack.c.l.bf16 %v326_v6  ;;  %v347_v6 = vld [vmem:[%s1997_s26 + $0x188] sm:$0xff] }
  0x59   : > { %896 = vmatmul.mubr.f32.gmra.mrb[8].mxu1 %v380_v16  ;;  %675 = vmatprep.mubr.f32.mxu0 %v383_v17  ;;  %v423_v16 = vunpack.c.h.bf16 %v328_v12  ;;  %v425_v17 = vunpack.c.h.bf16 %v329_v13  ;;  %v461_v13 = vunpack.c.h.bf16 %v347_v6 }
  0x5a   : > { %900 = vmatprep.mubr.f32.mxu1 %v385_v20  ;;  %1784 = vmatpush3.bf16.msra.mxu0 %v1781_v15  ;;  %v422_v20 = vunpack.c.l.bf16 %v328_v12 }
  0x5b   : > { %1809 = vmatpush3.bf16.msra.mxu1 %v1781_v15  ;;  %1786 = vmatprep.subr.bf16.mxu0 %v1785_v24  ;;  %v420_v15 = vunpack.c.l.bf16 %v327_v7 }
  0x5c   : > { %676 = vmatmul.mubr.f32.gmra.mrb[10].mxu0 %v382_v23  ;;  %1802 = vmatprep.subr.bf16.mxu1 %v1785_v24  ;;  %v429_v23 = vunpack.c.h.bf16 %v331_v19 }
  0x5d   : > { %901 = vmatmul.mubr.f32.gmra.mrb[10].mxu1 %v384_v25  ;;  %680 = vmatprep.mubr.f32.mxu0 %v387_v26  ;;  %v333_v25 = vld [vmem:[%s1997_s26 + $0x118] sm:$0xff]  ;;  %v426_v26 = vunpack.c.l.bf16 %v330_v18 }
  0x5e   : > { %905 = vmatprep.mubr.f32.mxu1 %v389_v27  ;;  %1788 = vmatpush3.bf16.msra.mxu0 %v1785_v24  ;;  %v428_v27 = vunpack.c.l.bf16 %v331_v19  ;;  %v433_v29 = vunpack.c.h.bf16 %v333_v25 }
  0x5f   : > { %1810 = vmatpush3.bf16.msra.mxu1 %v1785_v24  ;;  %v332_v24 = vld [vmem:[%s1997_s26 + $0x110] sm:$0xff] }
  0x60   : > { %681 = vmatmul.mubr.f32.gmra.mrb[12].mxu0 %v386_v30  ;;  %v431_v28 = vunpack.c.h.bf16 %v332_v24  ;;  %v334_v30 = vld [vmem:[%s1997_s26 + $0x120] sm:$0xff] }
  0x61   : > { %906 = vmatmul.mubr.f32.gmra.mrb[12].mxu1 %v388_v31  ;;  %685 = vmatprep.mubr.f32.mxu0 %v391_v32  ;;  %v335_v31 = vld [vmem:[%s1997_s26 + $0x128] sm:$0xff]  ;;  %v430_v32 = vunpack.c.l.bf16 %v332_v24  ;;  %v435_v34 = vunpack.c.h.bf16 %v334_v30 }
  0x62   : > { %910 = vmatprep.mubr.f32.mxu1 %v393_v33  ;;  %v432_v33 = vunpack.c.l.bf16 %v333_v25  ;;  %v437_v35 = vunpack.c.h.bf16 %v335_v31 }
  0x64   : > { %686 = vmatmul.mubr.f32.gmra.mrb[14].mxu0 %v390_v36  ;;  %v336_v36 = vld [vmem:[%s1997_s26 + $0x130] sm:$0xff] }
  0x65   : > { %911 = vmatmul.mubr.f32.gmra.mrb[14].mxu1 %v392_v37  ;;  %690 = vmatprep.mubr.f32.mxu0 %v395_v38  ;;  %v337_v37 = vld [vmem:[%s1997_s26 + $0x138] sm:$0xff]  ;;  %v434_v38 = vunpack.c.l.bf16 %v334_v30  ;;  %v439_v40 = vunpack.c.h.bf16 %v336_v36 }
  0x66   : > { %915 = vmatprep.mubr.f32.mxu1 %v397_v39  ;;  %v436_v39 = vunpack.c.l.bf16 %v335_v31  ;;  %v441_v43 = vunpack.c.h.bf16 %v337_v37 }
  0x68   : > { %691 = vmatmul.mubr.f32.gmra.mrb[16].mxu0 %v394_v44  ;;  %v338_v44 = vld [vmem:[%s1997_s26 + $0x140] sm:$0xff] }
  0x69   : > { %916 = vmatmul.mubr.f32.gmra.mrb[16].mxu1 %v396_v45  ;;  %695 = vmatprep.mubr.f32.mxu0 %v399_v46  ;;  %v339_v45 = vld [vmem:[%s1997_s26 + $0x148] sm:$0xff]  ;;  %v438_v46 = vunpack.c.l.bf16 %v336_v36  ;;  %v443_v3 = vunpack.c.h.bf16 %v338_v44 }
  0x6a   : > { %920 = vmatprep.mubr.f32.mxu1 %v401_v47  ;;  %v440_v47 = vunpack.c.l.bf16 %v337_v37  ;;  %v445_v48 = vunpack.c.h.bf16 %v339_v45 }
  0x6c   : > { %696 = vmatmul.mubr.f32.gmra.mrb[18].mxu0 %v398_v41  ;;  %v340_v41 = vld [vmem:[%s1997_s26 + $0x150] sm:$0xff] }
  0x6d   : > { %921 = vmatmul.mubr.f32.gmra.mrb[18].mxu1 %v400_v42  ;;  %700 = vmatprep.mubr.f32.mxu0 %v403_v49  ;;  %v341_v42 = vld [vmem:[%s1997_s26 + $0x158] sm:$0xff]  ;;  %v442_v49 = vunpack.c.l.bf16 %v338_v44  ;;  %v447_v51 = vunpack.c.h.bf16 %v340_v41 }
  0x6e   : > { %925 = vmatprep.mubr.f32.mxu1 %v405_v50  ;;  %v444_v50 = vunpack.c.l.bf16 %v339_v45  ;;  %v449_v52 = vunpack.c.h.bf16 %v341_v42 }
  0x70   : > { %701 = vmatmul.mubr.f32.gmra.mrb[20].mxu0 %v402_v53  ;;  %v342_v53 = vld [vmem:[%s1997_s26 + $0x160] sm:$0xff] }
  0x71   : > { %926 = vmatmul.mubr.f32.gmra.mrb[20].mxu1 %v404_v54  ;;  %705 = vmatprep.mubr.f32.mxu0 %v407_v55  ;;  %v343_v54 = vld [vmem:[%s1997_s26 + $0x168] sm:$0xff]  ;;  %v446_v55 = vunpack.c.l.bf16 %v340_v41  ;;  %v451_v57 = vunpack.c.h.bf16 %v342_v53 }
  0x72   : > { %930 = vmatprep.mubr.f32.mxu1 %v409_v56  ;;  %v448_v56 = vunpack.c.l.bf16 %v341_v42  ;;  %v453_v58 = vunpack.c.h.bf16 %v343_v54  ;;  %v452_v0 = vunpack.c.l.bf16 %v343_v54 }
  0x74   : > { %706 = vmatmul.mubr.f32.gmra.mrb[22].mxu0 %v406_v59  ;;  %v344_v59 = vld [vmem:[%s1997_s26 + $0x170] sm:$0xff] }
  0x75   : > { %931 = vmatmul.mubr.f32.gmra.mrb[22].mxu1 %v408_v60  ;;  %710 = vmatprep.mubr.f32.mxu0 %v411_v61  ;;  %v345_v60 = vld [vmem:[%s1997_s26 + $0x178] sm:$0xff]  ;;  %v450_v61 = vunpack.c.l.bf16 %v342_v53  ;;  %v454_v7 = vunpack.c.l.bf16 %v344_v59 }
  0x76   : > { %935 = vmatprep.mubr.f32.mxu1 %v413_v62  ;;  %v1179_v62 = vld [vmem:[%s2348_s3 + $0x60] sm:$0xff] }
  0x78   : > { %711 = vmatmul.mubr.f32.gmra.mrb[24].mxu0 %v410_v1  ;;  %v455_v1 = vunpack.c.h.bf16 %v344_v59 }
  0x79   : > { %936 = vmatmul.mubr.f32.gmra.mrb[24].mxu1 %v412_v2  ;;  %715 = vmatprep.mubr.f32.mxu0 %v415_v4  ;;  %v1789_v2 = vpack.c.bf16 %v1180_v63, %v1179_v62  ;;  %v457_v4 = vunpack.c.h.bf16 %v345_v60 }
  0x7a   : > { %940 = vmatprep.mubr.f32.mxu1 %v417_v5  ;;  %v346_v5 = vld [vmem:[%s1997_s26 + $0x180] sm:$0xff] }
  0x7b   : > { %1790 = vmatprep.subr.bf16.mxu0 %v1789_v2  ;;  %1803 = vmatprep.subr.bf16.mxu1 %v1789_v2 }
  0x7c   : > { %716 = vmatmul.mubr.f32.gmra.mrb[26].mxu0 %v414_v8  ;;  %v1181_v8 = vld [vmem:[%s2348_s3 + $0x70] sm:$0xff]  ;;  %1811 = vmatpush3.bf16.msra.mxu1 %v1789_v2 }
  0x7d   : > { %941 = vmatmul.mubr.f32.gmra.mrb[26].mxu1 %v416_v9  ;;  %720 = vmatprep.mubr.f32.mxu0 %v419_v10  ;;  %v1182_v9 = vld [vmem:[%s2348_s3 + $0x78] sm:$0xff]  ;;  %v456_v10 = vunpack.c.l.bf16 %v345_v60 }
  0x7e   : > { %945 = vmatprep.mubr.f32.mxu1 %v421_v11  ;;  %v459_v11 = vunpack.c.h.bf16 %v346_v5  ;;  %v1793_v12 = vpack.c.bf16 %v1182_v9, %v1181_v8  ;;  %1792 = vmatpush3.bf16.msra.mxu0 %v1789_v2 }
  0x80   : > { %721 = vmatmul.mubr.f32.gmra.mrb[28].mxu0 %v418_v14  ;;  %v348_v14 = vld [vmem:[%s1997_s26 + $0x190] sm:$0xff]  ;;  %1794 = vmatprep.subr.bf16.mxu0 %v1793_v12 }
  0x81   : > { %946 = vmatmul.mubr.f32.gmra.mrb[28].mxu1 %v420_v15  ;;  %725 = vmatprep.mubr.f32.mxu0 %v423_v16  ;;  %v349_v15 = vld [vmem:[%s1997_s26 + $0x198] sm:$0xff]  ;;  %v458_v16 = vunpack.c.l.bf16 %v346_v5  ;;  %v463_v18 = vunpack.c.h.bf16 %v348_v14 }
  0x82   : > { %950 = vmatprep.mubr.f32.mxu1 %v425_v17  ;;  %1804 = vmatprep.subr.bf16.mxu1 %v1793_v12  ;;  %v460_v17 = vunpack.c.l.bf16 %v347_v6  ;;  %v465_v19 = vunpack.c.h.bf16 %v349_v15 }
  0x83   : > { %1812 = vmatpush3.bf16.msra.mxu1 %v1793_v12  ;;  %1796 = vmatpush3.bf16.msra.mxu0 %v1793_v12 }
  0x84   : > { %726 = vmatmul.mubr.f32.gmra.mrb[30].mxu0 %v422_v20  ;;  %v350_v20 = vld [vmem:[%s1997_s26 + $0x1a0] sm:$0xff] }
  0x85   : > { %951 = vmatmul.mubr.f32.gmra.mrb[30].mxu1 %v424_v21  ;;  %730 = vmatprep.mubr.f32.mxu0 %v427_v22  ;;  %v351_v21 = vld [vmem:[%s1997_s26 + $0x1a8] sm:$0xff]  ;;  %v462_v22 = vunpack.c.l.bf16 %v348_v14  ;;  %v467_v24 = vunpack.c.h.bf16 %v350_v20 }
  0x86   : > { %955 = vmatprep.mubr.f32.mxu1 %v429_v23  ;;  %v464_v23 = vunpack.c.l.bf16 %v349_v15  ;;  %v469_v25 = vunpack.c.h.bf16 %v351_v21 }
  0x88   : > { %731 = vmatmul.mubr.f32.gmra.mrb[32].mxu0 %v426_v26  ;;  %v352_v26 = vld [vmem:[%s1997_s26 + $0x1b0] sm:$0xff] }
  0x89   : > { %956 = vmatmul.mubr.f32.gmra.mrb[32].mxu1 %v428_v27  ;;  %735 = vmatprep.mubr.f32.mxu0 %v431_v28  ;;  %v353_v27 = vld [vmem:[%s1997_s26 + $0x1b8] sm:$0xff]  ;;  %v466_v28 = vunpack.c.l.bf16 %v350_v20  ;;  %v471_v30 = vunpack.c.h.bf16 %v352_v26 }
  0x8a   : > { %960 = vmatprep.mubr.f32.mxu1 %v433_v29  ;;  %v468_v29 = vunpack.c.l.bf16 %v351_v21  ;;  %v473_v31 = vunpack.c.h.bf16 %v353_v27 }
  0x8c   : > { %736 = vmatmul.mubr.f32.gmra.mrb[34].mxu0 %v430_v32  ;;  %v354_v32 = vld [vmem:[%s1997_s26 + $0x1c0] sm:$0xff] }
  0x8d   : > { %961 = vmatmul.mubr.f32.gmra.mrb[34].mxu1 %v432_v33  ;;  %740 = vmatprep.mubr.f32.mxu0 %v435_v34  ;;  %v355_v33 = vld [vmem:[%s1997_s26 + $0x1c8] sm:$0xff]  ;;  %v470_v34 = vunpack.c.l.bf16 %v352_v26  ;;  %v475_v36 = vunpack.c.h.bf16 %v354_v32 }
  0x8e   : > { %965 = vmatprep.mubr.f32.mxu1 %v437_v35  ;;  %v472_v35 = vunpack.c.l.bf16 %v353_v27  ;;  %v477_v37 = vunpack.c.h.bf16 %v355_v33 }
  0x90   : > { %741 = vmatmul.mubr.f32.gmra.mrb[36].mxu0 %v434_v38  ;;  %v356_v38 = vld [vmem:[%s1997_s26 + $0x1d0] sm:$0xff] }
  0x91   : > { %966 = vmatmul.mubr.f32.gmra.mrb[36].mxu1 %v436_v39  ;;  %745 = vmatprep.mubr.f32.mxu0 %v439_v40  ;;  %v357_v39 = vld [vmem:[%s1997_s26 + $0x1d8] sm:$0xff]  ;;  %v474_v40 = vunpack.c.l.bf16 %v354_v32  ;;  %v479_v44 = vunpack.c.h.bf16 %v356_v38 }
  0x92   : > { %970 = vmatprep.mubr.f32.mxu1 %v441_v43  ;;  %v476_v43 = vunpack.c.l.bf16 %v355_v33  ;;  %v481_v45 = vunpack.c.h.bf16 %v357_v39 }
  0x94   : > { %746 = vmatmul.mubr.f32.gmra.mrb[38].mxu0 %v438_v46  ;;  %v358_v46 = vld [vmem:[%s1997_s26 + $0x1e0] sm:$0xff] }
  0x95   : > { %971 = vmatmul.mubr.f32.gmra.mrb[38].mxu1 %v440_v47  ;;  %750 = vmatprep.mubr.f32.mxu0 %v443_v3  ;;  %v359_v47 = vld [vmem:[%s1997_s26 + $0x1e8] sm:$0xff]  ;;  %v478_v3 = vunpack.c.l.bf16 %v356_v38  ;;  %v483_v41 = vunpack.c.h.bf16 %v358_v46 }
  0x96   : > { %975 = vmatprep.mubr.f32.mxu1 %v445_v48  ;;  %v480_v48 = vunpack.c.l.bf16 %v357_v39  ;;  %v485_v42 = vunpack.c.h.bf16 %v359_v47 }
  0x98   : > { %751 = vmatmul.mubr.f32.gmra.mrb[40].mxu0 %v442_v49  ;;  %v360_v49 = vld [vmem:[%s1997_s26 + $0x1f0] sm:$0xff] }
  0x99   : > { %976 = vmatmul.mubr.f32.gmra.mrb[40].mxu1 %v444_v50  ;;  %755 = vmatprep.mubr.f32.mxu0 %v447_v51  ;;  %v361_v50 = vld [vmem:[%s1997_s26 + $0x1f8] sm:$0xff]  ;;  %v482_v51 = vunpack.c.l.bf16 %v358_v46  ;;  %v487_v53 = vunpack.c.h.bf16 %v360_v49  ;;  %s1536_s26 = sshll.u32 %s2355_s13, 3 }
  0x9a   : > { %980 = vmatprep.mubr.f32.mxu1 %v449_v52  ;;  %v484_v52 = vunpack.c.l.bf16 %v359_v47  ;;  %v489_v54 = vunpack.c.h.bf16 %v361_v50  ;;  %s2302_s12 = scalar_lea.vmem %s2349_s4, %s1536_s26 }
  0x9c   : > { %756 = vmatmul.mubr.f32.gmra.mrb[42].mxu0 %v446_v55  ;;  %v486_v55 = vunpack.c.l.bf16 %v360_v49 }
  0x9d   : > { %981 = vmatmul.mubr.f32.gmra.mrb[42].mxu1 %v448_v56  ;;  %760 = vmatprep.mubr.f32.mxu0 %v451_v57  ;;  %v488_v56 = vunpack.c.l.bf16 %v361_v50 }
  0x9e   : > { %985 = vmatprep.mubr.f32.mxu1 %v453_v58  ;;  %v2264_v58 = vld [vmem:[%s2347_s2] ss:$0 sm:$0xff] }
  0xa0   : > { %761 = vmatmul.mubr.f32.gmra.mrb[44].mxu0 %v450_v61 }
  0xa1   : > { %986 = vmatmul.mubr.f32.gmra.mrb[44].mxu1 %v452_v0  ;;  %765 = vmatprep.mubr.f32.mxu0 %v455_v1 }
  0xa2   : > { %990 = vmatprep.mubr.f32.mxu1 %v457_v4 }
  0xa4   : > { %766 = vmatmul.mubr.f32.gmra.mrb[46].mxu0 %v454_v7 }
  0xa5   : > { %991 = vmatmul.mubr.f32.gmra.mrb[46].mxu1 %v456_v10  ;;  %770 = vmatprep.mubr.f32.mxu0 %v459_v11 }
  0xa6   : > { %995 = vmatprep.mubr.f32.mxu1 %v461_v13 }
  0xa8   : > { %771 = vmatmul.mubr.f32.gmra.mrb[48].mxu0 %v458_v16 }
  0xa9   : > { %996 = vmatmul.mubr.f32.gmra.mrb[48].mxu1 %v460_v17  ;;  %775 = vmatprep.mubr.f32.mxu0 %v463_v18 }
  0xaa   : > { %1000 = vmatprep.mubr.f32.mxu1 %v465_v19 }
  0xac   : > { %776 = vmatmul.mubr.f32.gmra.mrb[50].mxu0 %v462_v22 }
  0xad   : > { %1001 = vmatmul.mubr.f32.gmra.mrb[50].mxu1 %v464_v23  ;;  %780 = vmatprep.mubr.f32.mxu0 %v467_v24 }
  0xae   : > { %1005 = vmatprep.mubr.f32.mxu1 %v469_v25 }
  0xb0   : > { %781 = vmatmul.mubr.f32.gmra.mrb[52].mxu0 %v466_v28 }
  0xb1   : > { %1006 = vmatmul.mubr.f32.gmra.mrb[52].mxu1 %v468_v29  ;;  %785 = vmatprep.mubr.f32.mxu0 %v471_v30 }
  0xb2   : > { %1010 = vmatprep.mubr.f32.mxu1 %v473_v31 }
  0xb4   : > { %786 = vmatmul.mubr.f32.gmra.mrb[54].mxu0 %v470_v34 }
  0xb5   : > { %1011 = vmatmul.mubr.f32.gmra.mrb[54].mxu1 %v472_v35  ;;  %790 = vmatprep.mubr.f32.mxu0 %v475_v36 }
  0xb6   : > { %1015 = vmatprep.mubr.f32.mxu1 %v477_v37 }
  0xb8   : > { %791 = vmatmul.mubr.f32.gmra.mrb[56].mxu0 %v474_v40 }
  0xb9   : > { %1016 = vmatmul.mubr.f32.gmra.mrb[56].mxu1 %v476_v43  ;;  %795 = vmatprep.mubr.f32.mxu0 %v479_v44 }
  0xba   : > { %1020 = vmatprep.mubr.f32.mxu1 %v481_v45 }
  0xbc   : > { %796 = vmatmul.mubr.f32.gmra.mrb[58].mxu0 %v478_v3 }
  0xbd   : > { %1021 = vmatmul.mubr.f32.gmra.mrb[58].mxu1 %v480_v48  ;;  %800 = vmatprep.mubr.f32.mxu0 %v483_v41 }
  0xbe   : > { %1025 = vmatprep.mubr.f32.mxu1 %v485_v42 }
  0xc0   : > { %801 = vmatmul.mubr.f32.gmra.mrb[60].mxu0 %v482_v51 }
  0xc1   : > { %1026 = vmatmul.mubr.f32.gmra.mrb[60].mxu1 %v484_v52  ;;  %805 = vmatprep.mubr.f32.mxu0 %v487_v53 }
  0xc2   : > { %1030 = vmatprep.mubr.f32.mxu1 %v489_v54 }
  0xc4   : > { %806 = vmatmul.mubr.f32.gmra.mrb[62].mxu0 %v486_v55 }
  0xc5   : > { %1031 = vmatmul.mubr.f32.gmra.mrb[62].mxu1 %v488_v56 }
 0x11b   : > { %v652_v57 = vpop.f32.mrb[0].mxu0 }
 0x11c   : > { %v877_v59 = vpop.f32.mrb[0].mxu1  ;;  %v654_v60 = vpop.f32.mrb[1].mxu0 }
 0x11d   : > { %v878_v61 = vadd.f32 %v877_v59, %v652_v57  ;;  %v879_v62 = vpop.f32.mrb[1].mxu1 }
 0x11f   : > { %v1036_v63 = vadd.f32 %v2264_v58, %v878_v61  ;;  %v657_v0 = vpop.f32.mrb[2].mxu0 }
 0x120   : > { %v882_v1 = vpop.f32.mrb[2].mxu1  ;;  %v659_v2 = vpop.f32.mrb[3].mxu0 }
 0x121   : > { %v1135_v4 = vmax.f32 %v1036_v63, 0.0  ;;  %v883_v5 = vadd.f32 %v882_v1, %v657_v0  ;;  %v884_v6 = vpop.f32.mrb[3].mxu1 }
 0x123   : > { %v1037_v7 = vadd.f32 %v2264_v58, %v883_v5  ;;  %1621 = vmatprep.mubr.f32.mxu0 %v1135_v4  ;;  %v662_v8 = vpop.f32.mrb[4].mxu0 }
 0x124   : > { %v887_v9 = vpop.f32.mrb[4].mxu1  ;;  %v664_v10 = vpop.f32.mrb[5].mxu0 }
 0x125   : > { %v1136_v11 = vmax.f32 %v1037_v7, 0.0  ;;  %v888_v12 = vadd.f32 %v887_v9, %v662_v8  ;;  %v889_v13 = vpop.f32.mrb[5].mxu1 }
 0x127   : > { %v1038_v14 = vadd.f32 %v2264_v58, %v888_v12  ;;  %1622 = vmatmul.mubr.f32.vlgmr.msra.gmra.mrb[64].mxu0 %v1136_v11  ;;  %v667_v15 = vpop.f32.mrb[6].mxu0 }
 0x128   : > { %v892_v16 = vpop.f32.mrb[6].mxu1  ;;  %v669_v17 = vpop.f32.mrb[7].mxu0 }
 0x129   : > { %v1137_v18 = vmax.f32 %v1038_v14, 0.0  ;;  %v893_v19 = vadd.f32 %v892_v16, %v667_v15  ;;  %v894_v20 = vpop.f32.mrb[7].mxu1 }
 0x12b   : > { %v1039_v21 = vadd.f32 %v2264_v58, %v893_v19  ;;  %1624 = vmatprep.mubr.f32.mxu0 %v1137_v18  ;;  %v672_v22 = vpop.f32.mrb[8].mxu0 }
 0x12c   : > { %v897_v23 = vpop.f32.mrb[8].mxu1  ;;  %v674_v24 = vpop.f32.mrb[9].mxu0 }
 0x12d   : > { %v1138_v25 = vmax.f32 %v1039_v21, 0.0  ;;  %v898_v26 = vadd.f32 %v897_v23, %v672_v22  ;;  %v899_v27 = vpop.f32.mrb[9].mxu1 }
 0x12f   : > { %v1040_v28 = vadd.f32 %v2264_v58, %v898_v26  ;;  %1625 = vmatmul.mubr.f32.gmra.mrb[66].mxu0 %v1138_v25  ;;  %v677_v29 = vpop.f32.mrb[10].mxu0 }
 0x130   : > { %v902_v30 = vpop.f32.mrb[10].mxu1  ;;  %v679_v31 = vpop.f32.mrb[11].mxu0 }
 0x131   : > { %v1139_v32 = vmax.f32 %v1040_v28, 0.0  ;;  %v903_v33 = vadd.f32 %v902_v30, %v677_v29  ;;  %v904_v34 = vpop.f32.mrb[11].mxu1 }
 0x133   : > { %v1041_v35 = vadd.f32 %v2264_v58, %v903_v33  ;;  %1627 = vmatprep.mubr.f32.mxu0 %v1139_v32  ;;  %v682_v36 = vpop.f32.mrb[12].mxu0 }
 0x134   : > { %v907_v37 = vpop.f32.mrb[12].mxu1  ;;  %v684_v38 = vpop.f32.mrb[13].mxu0 }
 0x135   : > { %v1140_v39 = vmax.f32 %v1041_v35, 0.0  ;;  %v908_v40 = vadd.f32 %v907_v37, %v682_v36  ;;  %v909_v43 = vpop.f32.mrb[13].mxu1 }
 0x137   : > { %v1042_v44 = vadd.f32 %v2264_v58, %v908_v40  ;;  %1628 = vmatmul.mubr.f32.gmra.mrb[68].mxu0 %v1140_v39  ;;  %v687_v45 = vpop.f32.mrb[14].mxu0 }
 0x138   : > { %v912_v46 = vpop.f32.mrb[14].mxu1  ;;  %v689_v47 = vpop.f32.mrb[15].mxu0 }
 0x139   : > { %v1141_v3 = vmax.f32 %v1042_v44, 0.0  ;;  %v913_v48 = vadd.f32 %v912_v46, %v687_v45  ;;  %v914_v41 = vpop.f32.mrb[15].mxu1 }
 0x13b   : > { %v1043_v42 = vadd.f32 %v2264_v58, %v913_v48  ;;  %1630 = vmatprep.mubr.f32.mxu0 %v1141_v3  ;;  %v692_v49 = vpop.f32.mrb[16].mxu0 }
 0x13c   : > { %v917_v50 = vpop.f32.mrb[16].mxu1  ;;  %v694_v51 = vpop.f32.mrb[17].mxu0 }
 0x13d   : > { %v1142_v52 = vmax.f32 %v1043_v42, 0.0  ;;  %v918_v53 = vadd.f32 %v917_v50, %v692_v49  ;;  %v919_v54 = vpop.f32.mrb[17].mxu1 }
 0x13f   : > { %v1044_v55 = vadd.f32 %v2264_v58, %v918_v53  ;;  %1631 = vmatmul.mubr.f32.gmra.mrb[70].mxu0 %v1142_v52  ;;  %v697_v56 = vpop.f32.mrb[18].mxu0 }
 0x140   : > { %v922_v57 = vpop.f32.mrb[18].mxu1  ;;  %v699_v59 = vpop.f32.mrb[19].mxu0 }
 0x141   : > { %v1143_v60 = vmax.f32 %v1044_v55, 0.0  ;;  %v923_v61 = vadd.f32 %v922_v57, %v697_v56  ;;  %v924_v62 = vpop.f32.mrb[19].mxu1 }
 0x143   : > { %v1045_v63 = vadd.f32 %v2264_v58, %v923_v61  ;;  %1633 = vmatprep.mubr.f32.mxu0 %v1143_v60  ;;  %v702_v0 = vpop.f32.mrb[20].mxu0 }
 0x144   : > { %v927_v1 = vpop.f32.mrb[20].mxu1  ;;  %v704_v2 = vpop.f32.mrb[21].mxu0 }
 0x145   : > { %v1144_v4 = vmax.f32 %v1045_v63, 0.0  ;;  %v928_v5 = vadd.f32 %v927_v1, %v702_v0  ;;  %v929_v6 = vpop.f32.mrb[21].mxu1 }
 0x147   : > { %v1046_v7 = vadd.f32 %v2264_v58, %v928_v5  ;;  %1634 = vmatmul.mubr.f32.gmra.mrb[72].mxu0 %v1144_v4  ;;  %v707_v8 = vpop.f32.mrb[22].mxu0 }
 0x148   : > { %v932_v9 = vpop.f32.mrb[22].mxu1  ;;  %v709_v10 = vpop.f32.mrb[23].mxu0 }
 0x149   : > { %v1145_v11 = vmax.f32 %v1046_v7, 0.0  ;;  %v933_v12 = vadd.f32 %v932_v9, %v707_v8  ;;  %v934_v13 = vpop.f32.mrb[23].mxu1 }
 0x14b   : > { %v1047_v14 = vadd.f32 %v2264_v58, %v933_v12  ;;  %1636 = vmatprep.mubr.f32.mxu0 %v1145_v11  ;;  %v712_v15 = vpop.f32.mrb[24].mxu0 }
 0x14c   : > { %v937_v16 = vpop.f32.mrb[24].mxu1  ;;  %v714_v17 = vpop.f32.mrb[25].mxu0 }
 0x14d   : > { %v1146_v18 = vmax.f32 %v1047_v14, 0.0  ;;  %v938_v19 = vadd.f32 %v937_v16, %v712_v15  ;;  %v939_v20 = vpop.f32.mrb[25].mxu1 }
 0x14f   : > { %v1048_v21 = vadd.f32 %v2264_v58, %v938_v19  ;;  %1637 = vmatmul.mubr.f32.gmra.mrb[74].mxu0 %v1146_v18  ;;  %v717_v22 = vpop.f32.mrb[26].mxu0 }
 0x150   : > { %v942_v23 = vpop.f32.mrb[26].mxu1  ;;  %v719_v24 = vpop.f32.mrb[27].mxu0 }
 0x151   : > { %v1147_v25 = vmax.f32 %v1048_v21, 0.0  ;;  %v943_v26 = vadd.f32 %v942_v23, %v717_v22  ;;  %v944_v27 = vpop.f32.mrb[27].mxu1 }
 0x153   : > { %v1049_v28 = vadd.f32 %v2264_v58, %v943_v26  ;;  %1639 = vmatprep.mubr.f32.mxu0 %v1147_v25  ;;  %v722_v29 = vpop.f32.mrb[28].mxu0 }
 0x154   : > { %v947_v30 = vpop.f32.mrb[28].mxu1  ;;  %v724_v31 = vpop.f32.mrb[29].mxu0 }
 0x155   : > { %v1148_v32 = vmax.f32 %v1049_v28, 0.0  ;;  %v948_v33 = vadd.f32 %v947_v30, %v722_v29  ;;  %v949_v34 = vpop.f32.mrb[29].mxu1 }
 0x157   : > { %v1050_v35 = vadd.f32 %v2264_v58, %v948_v33  ;;  %1640 = vmatmul.mubr.f32.gmra.mrb[76].mxu0 %v1148_v32  ;;  %v727_v36 = vpop.f32.mrb[30].mxu0 }
 0x158   : > { %v952_v37 = vpop.f32.mrb[30].mxu1  ;;  %v729_v38 = vpop.f32.mrb[31].mxu0 }
 0x159   : > { %v1149_v39 = vmax.f32 %v1050_v35, 0.0  ;;  %v953_v40 = vadd.f32 %v952_v37, %v727_v36  ;;  %v954_v43 = vpop.f32.mrb[31].mxu1 }
 0x15b   : > { %v1051_v44 = vadd.f32 %v2264_v58, %v953_v40  ;;  %1642 = vmatprep.mubr.f32.mxu0 %v1149_v39  ;;  %v732_v45 = vpop.f32.mrb[32].mxu0 }
 0x15c   : > { %v957_v46 = vpop.f32.mrb[32].mxu1  ;;  %v734_v47 = vpop.f32.mrb[33].mxu0 }
 0x15d   : > { %v1150_v3 = vmax.f32 %v1051_v44, 0.0  ;;  %v958_v48 = vadd.f32 %v957_v46, %v732_v45  ;;  %v959_v41 = vpop.f32.mrb[33].mxu1 }
 0x15f   : > { %v1052_v42 = vadd.f32 %v2264_v58, %v958_v48  ;;  %1643 = vmatmul.mubr.f32.gmra.mrb[78].mxu0 %v1150_v3  ;;  %v737_v49 = vpop.f32.mrb[34].mxu0 }
 0x160   : > { %v962_v50 = vpop.f32.mrb[34].mxu1  ;;  %v739_v51 = vpop.f32.mrb[35].mxu0 }
 0x161   : > { %v1151_v52 = vmax.f32 %v1052_v42, 0.0  ;;  %v963_v53 = vadd.f32 %v962_v50, %v737_v49  ;;  %v964_v54 = vpop.f32.mrb[35].mxu1 }
 0x163   : > { %v1053_v55 = vadd.f32 %v2264_v58, %v963_v53  ;;  %1645 = vmatprep.mubr.f32.mxu1 %v1151_v52  ;;  %v742_v56 = vpop.f32.mrb[36].mxu0 }
 0x164   : > { %v967_v57 = vpop.f32.mrb[36].mxu1  ;;  %v744_v59 = vpop.f32.mrb[37].mxu0 }
 0x165   : > { %v1152_v60 = vmax.f32 %v1053_v55, 0.0  ;;  %v968_v61 = vadd.f32 %v967_v57, %v742_v56  ;;  %v969_v62 = vpop.f32.mrb[37].mxu1 }
 0x167   : > { %v1054_v63 = vadd.f32 %v2264_v58, %v968_v61  ;;  %1646 = vmatmul.mubr.f32.vlgmr.msra.gmra.mrb[64].mxu1 %v1152_v60  ;;  %v747_v0 = vpop.f32.mrb[38].mxu0 }
 0x168   : > { %v972_v1 = vpop.f32.mrb[38].mxu1  ;;  %v749_v2 = vpop.f32.mrb[39].mxu0 }
 0x169   : > { %v1153_v4 = vmax.f32 %v1054_v63, 0.0  ;;  %v973_v5 = vadd.f32 %v972_v1, %v747_v0  ;;  %v974_v6 = vpop.f32.mrb[39].mxu1 }
 0x16b   : > { %v1055_v7 = vadd.f32 %v2264_v58, %v973_v5  ;;  %1648 = vmatprep.mubr.f32.mxu1 %v1153_v4  ;;  %v752_v8 = vpop.f32.mrb[40].mxu0 }
 0x16c   : > { %v977_v9 = vpop.f32.mrb[40].mxu1  ;;  %v754_v10 = vpop.f32.mrb[41].mxu0 }
 0x16d   : > { %v1154_v11 = vmax.f32 %v1055_v7, 0.0  ;;  %v978_v12 = vadd.f32 %v977_v9, %v752_v8  ;;  %v979_v13 = vpop.f32.mrb[41].mxu1 }
 0x16f   : > { %v1056_v14 = vadd.f32 %v2264_v58, %v978_v12  ;;  %1649 = vmatmul.mubr.f32.gmra.mrb[66].mxu1 %v1154_v11  ;;  %v757_v15 = vpop.f32.mrb[42].mxu0 }
 0x170   : > { %v982_v16 = vpop.f32.mrb[42].mxu1  ;;  %v759_v17 = vpop.f32.mrb[43].mxu0 }
 0x171   : > { %v1155_v18 = vmax.f32 %v1056_v14, 0.0  ;;  %v983_v19 = vadd.f32 %v982_v16, %v757_v15  ;;  %v984_v20 = vpop.f32.mrb[43].mxu1 }
 0x173   : > { %v1057_v21 = vadd.f32 %v2264_v58, %v983_v19  ;;  %1651 = vmatprep.mubr.f32.mxu1 %v1155_v18  ;;  %v762_v22 = vpop.f32.mrb[44].mxu0 }
 0x174   : > { %v987_v23 = vpop.f32.mrb[44].mxu1  ;;  %v764_v24 = vpop.f32.mrb[45].mxu0 }
 0x175   : > { %v1156_v25 = vmax.f32 %v1057_v21, 0.0  ;;  %v988_v26 = vadd.f32 %v987_v23, %v762_v22  ;;  %v989_v27 = vpop.f32.mrb[45].mxu1 }
 0x177   : > { %v1058_v28 = vadd.f32 %v2264_v58, %v988_v26  ;;  %1652 = vmatmul.mubr.f32.gmra.mrb[68].mxu1 %v1156_v25  ;;  %v767_v29 = vpop.f32.mrb[46].mxu0 }
 0x178   : > { %v992_v30 = vpop.f32.mrb[46].mxu1  ;;  %v769_v31 = vpop.f32.mrb[47].mxu0 }
 0x179   : > { %v1157_v32 = vmax.f32 %v1058_v28, 0.0  ;;  %v993_v33 = vadd.f32 %v992_v30, %v767_v29  ;;  %v994_v34 = vpop.f32.mrb[47].mxu1 }
 0x17b   : > { %v1059_v35 = vadd.f32 %v2264_v58, %v993_v33  ;;  %1654 = vmatprep.mubr.f32.mxu1 %v1157_v32  ;;  %v772_v36 = vpop.f32.mrb[48].mxu0 }
 0x17c   : > { %v997_v37 = vpop.f32.mrb[48].mxu1  ;;  %v774_v38 = vpop.f32.mrb[49].mxu0 }
 0x17d   : > { %v1158_v39 = vmax.f32 %v1059_v35, 0.0  ;;  %v998_v40 = vadd.f32 %v997_v37, %v772_v36  ;;  %v999_v43 = vpop.f32.mrb[49].mxu1 }
 0x17f   : > { %v1060_v44 = vadd.f32 %v2264_v58, %v998_v40  ;;  %1655 = vmatmul.mubr.f32.gmra.mrb[70].mxu1 %v1158_v39  ;;  %v777_v45 = vpop.f32.mrb[50].mxu0 }
 0x180   : > { %v1002_v46 = vpop.f32.mrb[50].mxu1  ;;  %v779_v47 = vpop.f32.mrb[51].mxu0 }
 0x181   : > { %v1159_v3 = vmax.f32 %v1060_v44, 0.0  ;;  %v1003_v48 = vadd.f32 %v1002_v46, %v777_v45  ;;  %v1004_v41 = vpop.f32.mrb[51].mxu1 }
 0x183   : > { %v1061_v42 = vadd.f32 %v2264_v58, %v1003_v48  ;;  %1657 = vmatprep.mubr.f32.mxu1 %v1159_v3  ;;  %v782_v49 = vpop.f32.mrb[52].mxu0 }
 0x184   : > { %v1007_v50 = vpop.f32.mrb[52].mxu1  ;;  %v784_v51 = vpop.f32.mrb[53].mxu0 }
 0x185   : > { %v1160_v52 = vmax.f32 %v1061_v42, 0.0  ;;  %v1008_v53 = vadd.f32 %v1007_v50, %v782_v49  ;;  %v1009_v54 = vpop.f32.mrb[53].mxu1 }
 0x187   : > { %v1062_v55 = vadd.f32 %v2264_v58, %v1008_v53  ;;  %1658 = vmatmul.mubr.f32.gmra.mrb[72].mxu1 %v1160_v52  ;;  %v787_v56 = vpop.f32.mrb[54].mxu0 }
 0x188   : > { %v1012_v57 = vpop.f32.mrb[54].mxu1  ;;  %v789_v59 = vpop.f32.mrb[55].mxu0 }
 0x189   : > { %v1161_v60 = vmax.f32 %v1062_v55, 0.0  ;;  %v1013_v61 = vadd.f32 %v1012_v57, %v787_v56  ;;  %v1014_v62 = vpop.f32.mrb[55].mxu1 }
 0x18b   : > { %v1063_v63 = vadd.f32 %v2264_v58, %v1013_v61  ;;  %1660 = vmatprep.mubr.f32.mxu1 %v1161_v60  ;;  %v792_v0 = vpop.f32.mrb[56].mxu0 }
 0x18c   : > { %v1017_v1 = vpop.f32.mrb[56].mxu1  ;;  %v794_v2 = vpop.f32.mrb[57].mxu0 }
 0x18d   : > { %v1162_v4 = vmax.f32 %v1063_v63, 0.0  ;;  %v1018_v5 = vadd.f32 %v1017_v1, %v792_v0  ;;  %v1019_v6 = vpop.f32.mrb[57].mxu1 }
 0x18f   : > { %v1064_v7 = vadd.f32 %v2264_v58, %v1018_v5  ;;  %1661 = vmatmul.mubr.f32.gmra.mrb[74].mxu1 %v1162_v4  ;;  %v797_v8 = vpop.f32.mrb[58].mxu0 }
 0x190   : > { %v1022_v9 = vpop.f32.mrb[58].mxu1  ;;  %v799_v10 = vpop.f32.mrb[59].mxu0 }
 0x191   : > { %v1163_v11 = vmax.f32 %v1064_v7, 0.0  ;;  %v1023_v12 = vadd.f32 %v1022_v9, %v797_v8  ;;  %v1024_v13 = vpop.f32.mrb[59].mxu1 }
 0x193   : > { %v1065_v14 = vadd.f32 %v2264_v58, %v1023_v12  ;;  %1663 = vmatprep.mubr.f32.mxu1 %v1163_v11  ;;  %v802_v15 = vpop.f32.mrb[60].mxu0 }
 0x194   : > { %v1027_v16 = vpop.f32.mrb[60].mxu1  ;;  %v804_v17 = vpop.f32.mrb[61].mxu0 }
 0x195   : > { %v1164_v18 = vmax.f32 %v1065_v14, 0.0  ;;  %v1028_v19 = vadd.f32 %v1027_v16, %v802_v15  ;;  %v1029_v20 = vpop.f32.mrb[61].mxu1 }
 0x197   : > { %v1066_v21 = vadd.f32 %v2264_v58, %v1028_v19  ;;  %1664 = vmatmul.mubr.f32.gmra.mrb[76].mxu1 %v1164_v18  ;;  %v807_v22 = vpop.f32.mrb[62].mxu0 }
 0x198   : > { %v1032_v23 = vpop.f32.mrb[62].mxu1  ;;  %v809_v24 = vpop.f32.mrb[63].mxu0 }
 0x199   : > { %v1165_v25 = vmax.f32 %v1066_v21, 0.0  ;;  %v1033_v26 = vadd.f32 %v1032_v23, %v807_v22  ;;  %v1034_v27 = vpop.f32.mrb[63].mxu1 }
 0x19b   : > { %v1067_v28 = vadd.f32 %v2264_v58, %v1033_v26  ;;  %1666 = vmatprep.mubr.f32.mxu1 %v1165_v25 }
 0x19d   : > { %v1166_v29 = vmax.f32 %v1067_v28, 0.0 }
 0x19f   : > { %1667 = vmatmul.mubr.f32.gmra.mrb[78].mxu1 %v1166_v29 }
 0x1fa   : > { %v1623_v30 = vpop.f32.mrb[64].mxu0 }
 0x1fb   : > { %1409 = vst [vmem:[%s2302_s12 + $0x8] sm:$0xff] %v1623_v30  ;;  %v1249_v58 = vpop.f32.mrb[65].mxu0 }
 0x1fc   : > { %1408 = vst [vmem:[%s2302_s12] sm:$0xff] %v1249_v58 }
 0x202   : > { %v1626_v31 = vpop.f32.mrb[66].mxu0 }
 0x203   : > { %1411 = vst [vmem:[%s2302_s12 + $0x18] sm:$0xff] %v1626_v31  ;;  %v1259_v32 = vpop.f32.mrb[67].mxu0 }
 0x204   : > { %1410 = vst [vmem:[%s2302_s12 + $0x10] sm:$0xff] %v1259_v32 }
 0x20a   : > { %v1629_v33 = vpop.f32.mrb[68].mxu0 }
 0x20b   : > { %1413 = vst [vmem:[%s2302_s12 + $0x28] sm:$0xff] %v1629_v33  ;;  %v1269_v34 = vpop.f32.mrb[69].mxu0 }
 0x20c   : > { %1412 = vst [vmem:[%s2302_s12 + $0x20] sm:$0xff] %v1269_v34 }
 0x212   : > { %v1632_v35 = vpop.f32.mrb[70].mxu0 }
 0x213   : > { %1415 = vst [vmem:[%s2302_s12 + $0x38] sm:$0xff] %v1632_v35  ;;  %v1279_v36 = vpop.f32.mrb[71].mxu0 }
 0x214   : > { %1414 = vst [vmem:[%s2302_s12 + $0x30] sm:$0xff] %v1279_v36 }
 0x21a   : > { %v1635_v37 = vpop.f32.mrb[72].mxu0 }
 0x21b   : > { %1417 = vst [vmem:[%s2302_s12 + $0x48] sm:$0xff] %v1635_v37  ;;  %v1289_v38 = vpop.f32.mrb[73].mxu0 }
 0x21c   : > { %1416 = vst [vmem:[%s2302_s12 + $0x40] sm:$0xff] %v1289_v38 }
 0x222   : > { %v1638_v39 = vpop.f32.mrb[74].mxu0 }
 0x223   : > { %1419 = vst [vmem:[%s2302_s12 + $0x58] sm:$0xff] %v1638_v39  ;;  %v1299_v40 = vpop.f32.mrb[75].mxu0 }
 0x224   : > { %1418 = vst [vmem:[%s2302_s12 + $0x50] sm:$0xff] %v1299_v40 }
 0x22a   : > { %v1641_v43 = vpop.f32.mrb[76].mxu0 }
 0x22b   : > { %1421 = vst [vmem:[%s2302_s12 + $0x68] sm:$0xff] %v1641_v43  ;;  %v1309_v44 = vpop.f32.mrb[77].mxu0 }
 0x22c   : > { %1420 = vst [vmem:[%s2302_s12 + $0x60] sm:$0xff] %v1309_v44 }
 0x232   : > { %v1644_v45 = vpop.f32.mrb[78].mxu0 }
 0x233   : > { %1423 = vst [vmem:[%s2302_s12 + $0x78] sm:$0xff] %v1644_v45  ;;  %v1319_v46 = vpop.f32.mrb[79].mxu0 }
 0x234   : > { %1422 = vst [vmem:[%s2302_s12 + $0x70] sm:$0xff] %v1319_v46 }
 0x23a   : > { %v1647_v47 = vpop.f32.mrb[64].mxu1 }
 0x23b   : > { %1425 = vst [vmem:[%s2302_s12 + $0x88] sm:$0xff] %v1647_v47  ;;  %v1329_v3 = vpop.f32.mrb[65].mxu1 }
 0x23c   : > { %1424 = vst [vmem:[%s2302_s12 + $0x80] sm:$0xff] %v1329_v3 }
 0x242   : > { %v1650_v48 = vpop.f32.mrb[66].mxu1 }
 0x243   : > { %1427 = vst [vmem:[%s2302_s12 + $0x98] sm:$0xff] %v1650_v48  ;;  %v1339_v41 = vpop.f32.mrb[67].mxu1 }
 0x244   : > { %1426 = vst [vmem:[%s2302_s12 + $0x90] sm:$0xff] %v1339_v41 }
 0x24a   : > { %v1653_v42 = vpop.f32.mrb[68].mxu1 }
 0x24b   : > { %1429 = vst [vmem:[%s2302_s12 + $0xa8] sm:$0xff] %v1653_v42  ;;  %v1349_v49 = vpop.f32.mrb[69].mxu1 }
 0x24c   : > { %1428 = vst [vmem:[%s2302_s12 + $0xa0] sm:$0xff] %v1349_v49 }
 0x252   : > { %v1656_v50 = vpop.f32.mrb[70].mxu1 }
 0x253   : > { %1431 = vst [vmem:[%s2302_s12 + $0xb8] sm:$0xff] %v1656_v50  ;;  %v1359_v51 = vpop.f32.mrb[71].mxu1 }
 0x254   : > { %1430 = vst [vmem:[%s2302_s12 + $0xb0] sm:$0xff] %v1359_v51 }
 0x25a   : > { %v1659_v52 = vpop.f32.mrb[72].mxu1 }
 0x25b   : > { %1433 = vst [vmem:[%s2302_s12 + $0xc8] sm:$0xff] %v1659_v52  ;;  %v1369_v53 = vpop.f32.mrb[73].mxu1 }
 0x25c   : > { %1432 = vst [vmem:[%s2302_s12 + $0xc0] sm:$0xff] %v1369_v53 }
 0x262   : > { %v1662_v54 = vpop.f32.mrb[74].mxu1 }
 0x263   : > { %1435 = vst [vmem:[%s2302_s12 + $0xd8] sm:$0xff] %v1662_v54  ;;  %v1379_v55 = vpop.f32.mrb[75].mxu1 }
 0x264   : > { %1434 = vst [vmem:[%s2302_s12 + $0xd0] sm:$0xff] %v1379_v55 }
 0x26a   : > { %v1665_v56 = vpop.f32.mrb[76].mxu1 }
 0x26b   : > { %1437 = vst [vmem:[%s2302_s12 + $0xe8] sm:$0xff] %v1665_v56  ;;  %v1389_v57 = vpop.f32.mrb[77].mxu1 }
 0x26c   : > { %1436 = vst [vmem:[%s2302_s12 + $0xe0] sm:$0xff] %v1389_v57 }
 0x272   : > { %v1668_v59 = vpop.f32.mrb[78].mxu1 }
 0x273   : > { %1439 = vst [vmem:[%s2302_s12 + $0xf8] sm:$0xff] %v1668_v59  ;;  %v1399_v60 = vpop.f32.mrb[79].mxu1 }
 0x274   : > { %1438 = vst [vmem:[%s2302_s12 + $0xf0] sm:$0xff] %v1399_v60 }
 0x275 PF: > { %s14_s17 = sadd.s32 1, %s1860_s17   ;;  %s2350_s15 = smov %s1856_s16 }
 0x276   : > { %p11_p5 = scmp.ge.s32.totalorder %s14_s17, 4   ;;  %s2351_s16 = smov %s2353_s18 }
 0x278   :  { %13 = sbr.rel (!%p11_p5) target bundleno = 2 (0x2), region = 77 }

// kernel: gcn_net_forward.3
= control target key start
LH: loop header
LB: loop body
LE: loop exit
PB: predicated region body
PF: predicated region fallthrough
CT: control target
= control target key end

     0   :  { %s2785_s9 = smov 0   ;;  %s3898_s0 = inlined_call_operand.vmem [shape: f32[512,1536], index: 0, kind: input, shape index: {}]   ;;  %s3899_s1 = inlined_call_operand.vmem [shape: f32[1536,128], index: 1, kind: input, shape index: {}]   ;;  %s3900_s2 = inlined_call_operand.vmem [shape: f32[512,128], index: 2, kind: output, shape index: {}]  }
   0x1 LB: > { %s2164_s10 = sadd.s32 4294967295, %s2767_s9   ;;  %p2168_p0 = scmp.ge.s32.totalorder %s2767_s9, 1  ;;  %s2767_s9 = sphi %s2785_s9, %s12_s9  }
   0x2   : > { %p114_p1 = scmp.lt.s32.totalorder %s2767_s9, 3 }
   0x4   : > { %p115_p2 = pnand %p2168_p0, %p114_p1 }
   0x5   : > { %v534_v0 = vld [vmem:[%s3899_s1] sm:$0xff] (!%p115_p2)  ;;  %v535_v1 = vld [vmem:[%s3899_s1 + $0x8] sm:$0xff] (!%p115_p2)  ;;  %v2769_v3 = vmov (!%p115_p2), 0.0|0.0   ;;  %v536_v6 = vld [vmem:[%s3899_s1 + $0x10] sm:$0xff] (!%p115_p2)  ;;  %s2169_s27 = sshll.u32 (!%p115_p2), %s2164_s10, 5 }
   0x6   : > { %118 = sbr.rel (%p115_p2) target bundleno = 667 (0x29b), region = 28  ;;  %v630_v2 = vld [vmem:[%s3899_s1 + $0x300] sm:$0xff] (!%p115_p2)  ;;  %2175 = vmatprep.subr.bf16.mxu1 (!%p115_p2), %v2769_v3  ;;  %2319 = vmatprep.subr.bf16.mxu0 (!%p115_p2), %v2769_v3  ;;  %v2176_v4 = vpack.c.bf16 (!%p115_p2), %v535_v1, %v534_v0  ;;  %v631_v5 = vld [vmem:[%s3899_s1 + $0x308] sm:$0xff] (!%p115_p2)  ;;  %v537_v7 = vld [vmem:[%s3899_s1 + $0x18] sm:$0xff] (!%p115_p2)  ;;  %p138_p3 = scmp.lt.s32.totalorder (!%p115_p2), %s2169_s27, 63 }
   0x7   : > { %v2320_v8 = vpack.c.bf16 (!%p115_p2), %v631_v5, %v630_v2  ;;  %v632_v9 = vld [vmem:[%s3899_s1 + $0x310] sm:$0xff] (!%p115_p2)  ;;  %v633_v10 = vld [vmem:[%s3899_s1 + $0x318] sm:$0xff] (!%p115_p2)  ;;  %v2179_v11 = vpack.c.bf16 (!%p115_p2), %v537_v7, %v536_v6  ;;  %v538_v13 = vld [vmem:[%s3899_s1 + $0x20] sm:$0xff] (!%p115_p2) }
   0x8   : > { %2177 = vmatpush1.bf16.msra.mxu1 (!%p115_p2), %v2176_v4  ;;  %v2323_v12 = vpack.c.bf16 (!%p115_p2), %v633_v10, %v632_v9  ;;  %v539_v14 = vld [vmem:[%s3899_s1 + $0x28] sm:$0xff] (!%p115_p2)  ;;  %v634_v15 = vld [vmem:[%s3899_s1 + $0x320] sm:$0xff] (!%p115_p2)  ;;  %v540_v19 = vld [vmem:[%s3899_s1 + $0x30] sm:$0xff] (!%p115_p2) }
   0x9   : > { %2321 = vmatpush1.bf16.msra.mxu0 (!%p115_p2), %v2320_v8  ;;  %2178 = vmatprep.subr.bf16.mxu1 (!%p115_p2), %v2769_v3  ;;  %v635_v16 = vld [vmem:[%s3899_s1 + $0x328] sm:$0xff] (!%p115_p2)  ;;  %v2182_v17 = vpack.c.bf16 (!%p115_p2), %v539_v14, %v538_v13  ;;  %v541_v20 = vld [vmem:[%s3899_s1 + $0x38] sm:$0xff] (!%p115_p2)  ;;  %v636_v21 = vld [vmem:[%s3899_s1 + $0x330] sm:$0xff] (!%p115_p2) }
   0xa   : > { %2322 = vmatprep.subr.bf16.mxu0 (!%p115_p2), %v2769_v3  ;;  %v2326_v18 = vpack.c.bf16 (!%p115_p2), %v635_v16, %v634_v15  ;;  %v637_v22 = vld [vmem:[%s3899_s1 + $0x338] sm:$0xff] (!%p115_p2)  ;;  %v2185_v23 = vpack.c.bf16 (!%p115_p2), %v541_v20, %v540_v19  ;;  %v542_v25 = vld [vmem:[%s3899_s1 + $0x40] sm:$0xff] (!%p115_p2)  ;;  %v543_v26 = vld [vmem:[%s3899_s1 + $0x48] sm:$0xff] (!%p115_p2) }
   0xb   : > { %v2329_v24 = vpack.c.bf16 (!%p115_p2), %v637_v22, %v636_v21  ;;  %v638_v27 = vld [vmem:[%s3899_s1 + $0x340] sm:$0xff] (!%p115_p2)  ;;  %v639_v28 = vld [vmem:[%s3899_s1 + $0x348] sm:$0xff] (!%p115_p2)  ;;  %v2188_v29 = vpack.c.bf16 (!%p115_p2), %v543_v26, %v542_v25  ;;  %v544_v31 = vld [vmem:[%s3899_s1 + $0x50] sm:$0xff] (!%p115_p2) }
   0xc   : > { %2180 = vmatpush1.bf16.msra.mxu1 (!%p115_p2), %v2179_v11  ;;  %v2332_v30 = vpack.c.bf16 (!%p115_p2), %v639_v28, %v638_v27  ;;  %v545_v32 = vld [vmem:[%s3899_s1 + $0x58] sm:$0xff] (!%p115_p2)  ;;  %v640_v33 = vld [vmem:[%s3899_s1 + $0x350] sm:$0xff] (!%p115_p2)  ;;  %v546_v37 = vld [vmem:[%s3899_s1 + $0x60] sm:$0xff] (!%p115_p2) }
   0xd   : > { %2324 = vmatpush1.bf16.msra.mxu0 %v2323_v12  ;;  %2181 = vmatprep.subr.bf16.mxu1 %v2769_v3  ;;  %s3902_s27 = smov (!%p138_p3, %s2169_s27), 63  ;;  %v641_v34 = vld [vmem:[%s3899_s1 + $0x358] sm:$0xff]  ;;  %v2191_v35 = vpack.c.bf16 %v545_v32, %v544_v31  ;;  %v547_v38 = vld [vmem:[%s3899_s1 + $0x68] sm:$0xff]  ;;  %v642_v39 = vld [vmem:[%s3899_s1 + $0x360] sm:$0xff] }
   0xe   : > { %2325 = vmatprep.subr.bf16.mxu0 %v2769_v3  ;;  %s2751_s25 = smul.u32 96, %s3902_s27  ;;  %v2335_v36 = vpack.c.bf16 %v641_v34, %v640_v33  ;;  %v643_v40 = vld [vmem:[%s3899_s1 + $0x368] sm:$0xff]  ;;  %v2194_v43 = vpack.c.bf16 %v547_v38, %v546_v37  ;;  %v548_v45 = vld [vmem:[%s3899_s1 + $0x70] sm:$0xff]  ;;  %v549_v46 = vld [vmem:[%s3899_s1 + $0x78] sm:$0xff]  ;;  %s2172_s22 = sshll.u32 %s3902_s27, 3 }
   0xf   : > { %v2338_v44 = vpack.c.bf16 %v643_v40, %v642_v39  ;;  %v644_v47 = vld [vmem:[%s3899_s1 + $0x370] sm:$0xff]  ;;  %v645_v48 = vld [vmem:[%s3899_s1 + $0x378] sm:$0xff]  ;;  %v2197_v49 = vpack.c.bf16 %v549_v46, %v548_v45  ;;  %v550_v51 = vld [vmem:[%s3899_s1 + $0x80] sm:$0xff] }
  0x10   : > { %2183 = vmatpush1.bf16.msra.mxu1 %v2182_v17  ;;  %s2881_s10 = scalar_lea.vmem %s3898_s0, %s2751_s25  ;;  %v2341_v50 = vpack.c.bf16 %v645_v48, %v644_v47  ;;  %v551_v52 = vld [vmem:[%s3899_s1 + $0x88] sm:$0xff]  ;;  %v646_v53 = vld [vmem:[%s3899_s1 + $0x380] sm:$0xff]  ;;  %v552_v57 = vld [vmem:[%s3899_s1 + $0x90] sm:$0xff]  ;;  %s3861_s25 = scalar_lea.vmem %s3900_s2, %s2172_s22 }
  0x11   : > { %2327 = vmatpush1.bf16.msra.mxu0 %v2326_v18  ;;  %2184 = vmatprep.subr.bf16.mxu1 %v2769_v3  ;;  %v151_v41 = vld [vmem:[%s2881_s10 + $0x8] sm:$0xff]  ;;  %v157_v42 = vld [vmem:[%s2881_s10 + $0x38] sm:$0xff]  ;;  %v2200_v55 = vpack.c.bf16 %v551_v52, %v550_v51  ;;  %v648_v59 = vld [vmem:[%s3899_s1 + $0x390] sm:$0xff] }
  0x12   : > { %2328 = vmatprep.subr.bf16.mxu0 %v2769_v3  ;;  %790 = vmatprep.mubr.f32.mxu1 %v151_v41  ;;  %v647_v54 = vld [vmem:[%s3899_s1 + $0x388] sm:$0xff]  ;;  %v553_v58 = vld [vmem:[%s3899_s1 + $0x98] sm:$0xff]  ;;  %v554_v63 = vld [vmem:[%s3899_s1 + $0xa0] sm:$0xff] }
  0x13   : > { %1465 = vmatprep.mubr.f32.mxu0 %v157_v42  ;;  %v2344_v56 = vpack.c.bf16 %v647_v54, %v646_v53  ;;  %v649_v60 = vld [vmem:[%s3899_s1 + $0x398] sm:$0xff]  ;;  %v2203_v61 = vpack.c.bf16 %v553_v58, %v552_v57  ;;  %v555_v0 = vld [vmem:[%s3899_s1 + $0xa8] sm:$0xff]  ;;  %v650_v1 = vld [vmem:[%s3899_s1 + $0x3a0] sm:$0xff] }
  0x14   : > { %2186 = vmatpush1.bf16.msra.mxu1 %v2185_v23  ;;  %v2347_v62 = vpack.c.bf16 %v649_v60, %v648_v59  ;;  %v651_v2 = vld [vmem:[%s3899_s1 + $0x3a8] sm:$0xff]  ;;  %v2206_v4 = vpack.c.bf16 %v555_v0, %v554_v63  ;;  %v556_v6 = vld [vmem:[%s3899_s1 + $0xb0] sm:$0xff]  ;;  %v557_v7 = vld [vmem:[%s3899_s1 + $0xb8] sm:$0xff] }
  0x15   : > { %2330 = vmatpush1.bf16.msra.mxu0 %v2329_v24  ;;  %2187 = vmatprep.subr.bf16.mxu1 %v2769_v3  ;;  %v2350_v5 = vpack.c.bf16 %v651_v2, %v650_v1  ;;  %v652_v8 = vld [vmem:[%s3899_s1 + $0x3b0] sm:$0xff]  ;;  %v653_v9 = vld [vmem:[%s3899_s1 + $0x3b8] sm:$0xff]  ;;  %v2209_v10 = vpack.c.bf16 %v557_v7, %v556_v6  ;;  %v558_v12 = vld [vmem:[%s3899_s1 + $0xc0] sm:$0xff] }
  0x16   : > { %2331 = vmatprep.subr.bf16.mxu0 %v2769_v3  ;;  %v2353_v11 = vpack.c.bf16 %v653_v9, %v652_v8  ;;  %v559_v13 = vld [vmem:[%s3899_s1 + $0xc8] sm:$0xff]  ;;  %v654_v14 = vld [vmem:[%s3899_s1 + $0x3c0] sm:$0xff]  ;;  %v560_v18 = vld [vmem:[%s3899_s1 + $0xd0] sm:$0xff] }
  0x17   : > { %v655_v15 = vld [vmem:[%s3899_s1 + $0x3c8] sm:$0xff]  ;;  %v2212_v16 = vpack.c.bf16 %v559_v13, %v558_v12  ;;  %v561_v19 = vld [vmem:[%s3899_s1 + $0xd8] sm:$0xff]  ;;  %v656_v20 = vld [vmem:[%s3899_s1 + $0x3d0] sm:$0xff] }
  0x18   : > { %2189 = vmatpush1.bf16.msra.mxu1 %v2188_v29  ;;  %v2356_v17 = vpack.c.bf16 %v655_v15, %v654_v14  ;;  %v657_v21 = vld [vmem:[%s3899_s1 + $0x3d8] sm:$0xff]  ;;  %v2215_v22 = vpack.c.bf16 %v561_v19, %v560_v18  ;;  %v562_v24 = vld [vmem:[%s3899_s1 + $0xe0] sm:$0xff]  ;;  %v563_v25 = vld [vmem:[%s3899_s1 + $0xe8] sm:$0xff] }
  0x19   : > { %2333 = vmatpush1.bf16.msra.mxu0 %v2332_v30  ;;  %2190 = vmatprep.subr.bf16.mxu1 %v2769_v3  ;;  %v2359_v23 = vpack.c.bf16 %v657_v21, %v656_v20  ;;  %v658_v26 = vld [vmem:[%s3899_s1 + $0x3e0] sm:$0xff]  ;;  %v659_v27 = vld [vmem:[%s3899_s1 + $0x3e8] sm:$0xff]  ;;  %v2218_v28 = vpack.c.bf16 %v563_v25, %v562_v24  ;;  %v564_v30 = vld [vmem:[%s3899_s1 + $0xf0] sm:$0xff] }
  0x1a   : > { %2334 = vmatprep.subr.bf16.mxu0 %v2769_v3  ;;  %v2362_v29 = vpack.c.bf16 %v659_v27, %v658_v26  ;;  %v565_v31 = vld [vmem:[%s3899_s1 + $0xf8] sm:$0xff]  ;;  %v660_v32 = vld [vmem:[%s3899_s1 + $0x3f0] sm:$0xff]  ;;  %v567_v37 = vld [vmem:[%s3899_s1 + $0x108] sm:$0xff] }
  0x1b   : > { %v661_v33 = vld [vmem:[%s3899_s1 + $0x3f8] sm:$0xff]  ;;  %v2221_v34 = vpack.c.bf16 %v565_v31, %v564_v30  ;;  %v662_v38 = vld [vmem:[%s3899_s1 + $0x400] sm:$0xff]  ;;  %v663_v39 = vld [vmem:[%s3899_s1 + $0x408] sm:$0xff] }
  0x1c   : > { %2192 = vmatpush1.bf16.msra.mxu1 %v2191_v35  ;;  %v2365_v35 = vpack.c.bf16 %v661_v33, %v660_v32  ;;  %v150_v40 = vld [vmem:[%s2881_s10] sm:$0xff]  ;;  %v156_v42 = vld [vmem:[%s2881_s10 + $0x30] sm:$0xff]  ;;  %v569_v46 = vld [vmem:[%s3899_s1 + $0x118] sm:$0xff] }
  0x1d   : > { %2336 = vmatpush1.bf16.msra.mxu0 %v2335_v36  ;;  %2193 = vmatprep.subr.bf16.mxu1 %v2769_v3  ;;  %v566_v36 = vld [vmem:[%s3899_s1 + $0x100] sm:$0xff]  ;;  %v568_v45 = vld [vmem:[%s3899_s1 + $0x110] sm:$0xff]  ;;  %v169_v47 = vld [vmem:[%s2881_s10 + $0x98] sm:$0xff] }
  0x1e   : > { %2337 = vmatprep.subr.bf16.mxu0 %v2769_v3  ;;  %v2224_v41 = vpack.c.bf16 %v567_v37, %v566_v36  ;;  %v664_v48 = vld [vmem:[%s3899_s1 + $0x410] sm:$0xff]  ;;  %v175_v52 = vld [vmem:[%s2881_s10 + $0xc8] sm:$0xff]  ;;  %v2227_v53 = vpack.c.bf16 %v569_v46, %v568_v45  ;;  %v181_v54 = vld [vmem:[%s2881_s10 + $0xf8] sm:$0xff] }
  0x1f   : > { %v168_v51 = vld [vmem:[%s2881_s10 + $0x90] sm:$0xff]  ;;  %v571_v57 = vld [vmem:[%s3899_s1 + $0x128] sm:$0xff]  ;;  %v666_v58 = vld [vmem:[%s3899_s1 + $0x420] sm:$0xff] }
  0x20   : > { %2195 = vmatpush1.bf16.msra.mxu1 %v2194_v43  ;;  %v2368_v43 = vpack.c.bf16 %v663_v39, %v662_v38  ;;  %v667_v59 = vld [vmem:[%s3899_s1 + $0x428] sm:$0xff]  ;;  %v174_v60 = vld [vmem:[%s2881_s10 + $0xc0] sm:$0xff]  ;;  %v193_v0 = vld [vmem:[%s2881_s10 + $0x158] sm:$0xff] }
  0x21   : > { %2339 = vmatpush1.bf16.msra.mxu0 %v2338_v44  ;;  %2196 = vmatprep.subr.bf16.mxu1 %v2769_v3  ;;  %v163_v44 = vld [vmem:[%s2881_s10 + $0x68] sm:$0xff]  ;;  %v2374_v1 = vpack.c.bf16 %v667_v59, %v666_v58  ;;  %v572_v2 = vld [vmem:[%s3899_s1 + $0x130] sm:$0xff]  ;;  %v669_v6 = vld [vmem:[%s3899_s1 + $0x438] sm:$0xff] }
  0x22   : > { %2340 = vmatprep.subr.bf16.mxu0 %v2769_v3  ;;  %v186_v7 = vld [vmem:[%s2881_s10 + $0x120] sm:$0xff]  ;;  %v192_v8 = vld [vmem:[%s2881_s10 + $0x150] sm:$0xff]  ;;  %v199_v9 = vld [vmem:[%s2881_s10 + $0x188] sm:$0xff] }
  0x23   : > { %v574_v13 = vld [vmem:[%s3899_s1 + $0x140] sm:$0xff]  ;;  %v575_v14 = vld [vmem:[%s3899_s1 + $0x148] sm:$0xff]  ;;  %v204_v18 = vld [vmem:[%s2881_s10 + $0x1b0] sm:$0xff] }
  0x24   : > { %2198 = vmatpush1.bf16.msra.mxu1 %v2197_v49  ;;  %v665_v49 = vld [vmem:[%s3899_s1 + $0x418] sm:$0xff]  ;;  %v670_v15 = vld [vmem:[%s3899_s1 + $0x440] sm:$0xff]  ;;  %v211_v19 = vld [vmem:[%s2881_s10 + $0x1e8] sm:$0xff]  ;;  %v2236_v20 = vpack.c.bf16 %v575_v14, %v574_v13 }
  0x25   : > { %2342 = vmatpush1.bf16.msra.mxu0 %v2341_v50  ;;  %2199 = vmatprep.subr.bf16.mxu1 %v2769_v3  ;;  %v162_v50 = vld [vmem:[%s2881_s10 + $0x60] sm:$0xff]  ;;  %v217_v21 = vld [vmem:[%s2881_s10 + $0x218] sm:$0xff]  ;;  %v672_v25 = vld [vmem:[%s3899_s1 + $0x450] sm:$0xff] }
  0x26   : > { %2343 = vmatprep.subr.bf16.mxu0 %v2769_v3  ;;  %v577_v24 = vld [vmem:[%s3899_s1 + $0x158] sm:$0xff]  ;;  %v210_v27 = vld [vmem:[%s2881_s10 + $0x1e0] sm:$0xff]  ;;  %v675_v36 = vld [vmem:[%s3899_s1 + $0x468] sm:$0xff] }
  0x27   : > { %v673_v26 = vld [vmem:[%s3899_s1 + $0x458] sm:$0xff]  ;;  %v578_v33 = vld [vmem:[%s3899_s1 + $0x160] sm:$0xff]  ;;  %v228_v38 = vld [vmem:[%s2881_s10 + $0x270] sm:$0xff] }
  0x28   : > { %2201 = vmatpush1.bf16.msra.mxu1 %v2200_v55  ;;  %v2371_v55 = vpack.c.bf16 %v665_v49, %v664_v48  ;;  %v229_v31 = vld [vmem:[%s2881_s10 + $0x278] sm:$0xff]  ;;  %v2383_v32 = vpack.c.bf16 %v673_v26, %v672_v25  ;;  %v222_v37 = vld [vmem:[%s2881_s10 + $0x240] sm:$0xff]  ;;  %v235_v39 = vld [vmem:[%s2881_s10 + $0x2a8] sm:$0xff] }
  0x29   : > { %2345 = vmatpush1.bf16.msra.mxu0 %v2344_v56  ;;  %2202 = vmatprep.subr.bf16.mxu1 %v2769_v3  ;;  %v570_v56 = vld [vmem:[%s3899_s1 + $0x120] sm:$0xff]  ;;  %v676_v45 = vld [vmem:[%s3899_s1 + $0x470] sm:$0xff]  ;;  %v677_v46 = vld [vmem:[%s3899_s1 + $0x478] sm:$0xff] }
  0x2a   : > { %2346 = vmatprep.subr.bf16.mxu0 %v2769_v3  ;;  %v2230_v63 = vpack.c.bf16 %v571_v57, %v570_v56  ;;  %v240_v48 = vld [vmem:[%s2881_s10 + $0x2d0] sm:$0xff]  ;;  %v247_v49 = vld [vmem:[%s2881_s10 + $0x308] sm:$0xff]  ;;  %v246_v57 = vld [vmem:[%s2881_s10 + $0x300] sm:$0xff] }
  0x2b   : > { %v679_v56 = vld [vmem:[%s3899_s1 + $0x488] sm:$0xff]  ;;  %v252_v58 = vld [vmem:[%s2881_s10 + $0x330] sm:$0xff]  ;;  %v270_v14 = vld [vmem:[%s2881_s10 + $0x3c0] sm:$0xff] }
  0x2c   : > { %2204 = vmatpush1.bf16.msra.mxu1 %v2203_v61  ;;  %v180_v61 = vld [vmem:[%s2881_s10 + $0xf0] sm:$0xff]  ;;  %v259_v59 = vld [vmem:[%s2881_s10 + $0x368] sm:$0xff] }
  0x2d   : > { %2348 = vmatpush1.bf16.msra.mxu0 %v2347_v62  ;;  %2205 = vmatprep.subr.bf16.mxu1 %v2769_v3  ;;  %v187_v62 = vld [vmem:[%s2881_s10 + $0x128] sm:$0xff]  ;;  %v288_v25 = vld [vmem:[%s2881_s10 + $0x450] sm:$0xff] }
  0x2e   : > { %2349 = vmatprep.subr.bf16.mxu0 %v2769_v3  ;;  %v683_v13 = vld [vmem:[%s3899_s1 + $0x4a8] sm:$0xff] }
  0x2f   : > { %v295_v26 = vld [vmem:[%s2881_s10 + $0x488] sm:$0xff] }
  0x30   : > { %2207 = vmatpush1.bf16.msra.mxu1 %v2206_v4  ;;  %v573_v4 = vld [vmem:[%s3899_s1 + $0x138] sm:$0xff] }
  0x31   : > { %2351 = vmatpush1.bf16.msra.mxu0 %v2350_v5  ;;  %2208 = vmatprep.subr.bf16.mxu1 %v2769_v3  ;;  %v668_v5 = vld [vmem:[%s3899_s1 + $0x430] sm:$0xff] }
  0x32   : > { %2352 = vmatprep.subr.bf16.mxu0 %v2769_v3  ;;  %v2377_v12 = vpack.c.bf16 %v669_v6, %v668_v5  ;;  %v264_v5 = vld [vmem:[%s2881_s10 + $0x390] sm:$0xff]  ;;  %v271_v6 = vld [vmem:[%s2881_s10 + $0x3c8] sm:$0xff] }
  0x34   : > { %2210 = vmatpush1.bf16.msra.mxu1 %v2209_v10  ;;  %v2233_v10 = vpack.c.bf16 %v573_v4, %v572_v2  ;;  %v681_v2 = vld [vmem:[%s3899_s1 + $0x498] sm:$0xff]  ;;  %v258_v4 = vld [vmem:[%s2881_s10 + $0x360] sm:$0xff] }
  0x35   : > { %2354 = vmatpush1.bf16.msra.mxu0 %v2353_v11  ;;  %2211 = vmatprep.subr.bf16.mxu1 %v2769_v3  ;;  %v205_v11 = vld [vmem:[%s2881_s10 + $0x1b8] sm:$0xff] }
  0x36   : > { %2355 = vmatprep.subr.bf16.mxu0 %v2769_v3 }
  0x38   : > { %2213 = vmatpush1.bf16.msra.mxu1 %v2212_v16  ;;  %v671_v16 = vld [vmem:[%s3899_s1 + $0x448] sm:$0xff] }
  0x39   : > { %2357 = vmatpush1.bf16.msra.mxu0 %v2356_v17  ;;  %2214 = vmatprep.subr.bf16.mxu1 %v2769_v3  ;;  %v198_v17 = vld [vmem:[%s2881_s10 + $0x180] sm:$0xff] }
  0x3a   : > { %2358 = vmatprep.subr.bf16.mxu0 %v2769_v3 }
  0x3c   : > { %2216 = vmatpush1.bf16.msra.mxu1 %v2215_v22  ;;  %v2380_v22 = vpack.c.bf16 %v671_v16, %v670_v15  ;;  %v276_v15 = vld [vmem:[%s2881_s10 + $0x3f0] sm:$0xff]  ;;  %v283_v16 = vld [vmem:[%s2881_s10 + $0x428] sm:$0xff] }
  0x3d   : > { %2360 = vmatpush1.bf16.msra.mxu0 %v2359_v23  ;;  %2217 = vmatprep.subr.bf16.mxu1 %v2769_v3  ;;  %v576_v23 = vld [vmem:[%s3899_s1 + $0x150] sm:$0xff] }
  0x3e   : > { %2361 = vmatprep.subr.bf16.mxu0 %v2769_v3  ;;  %v2239_v30 = vpack.c.bf16 %v577_v24, %v576_v23  ;;  %v685_v23 = vld [vmem:[%s3899_s1 + $0x4b8] sm:$0xff]  ;;  %v282_v24 = vld [vmem:[%s2881_s10 + $0x420] sm:$0xff] }
  0x40   : > { %2219 = vmatpush1.bf16.msra.mxu1 %v2218_v28  ;;  %v216_v28 = vld [vmem:[%s2881_s10 + $0x210] sm:$0xff] }
  0x41   : > { %2363 = vmatpush1.bf16.msra.mxu0 %v2362_v29  ;;  %2220 = vmatprep.subr.bf16.mxu1 %v2769_v3  ;;  %v223_v29 = vld [vmem:[%s2881_s10 + $0x248] sm:$0xff] }
  0x42   : > { %2364 = vmatprep.subr.bf16.mxu0 %v2769_v3 }
  0x44   : > { %2222 = vmatpush1.bf16.msra.mxu1 %v2221_v34  ;;  %v579_v34 = vld [vmem:[%s3899_s1 + $0x168] sm:$0xff] }
  0x45   : > { %2366 = vmatpush1.bf16.msra.mxu0 %v2365_v35  ;;  %2223 = vmatprep.subr.bf16.mxu1 %v2769_v3  ;;  %v674_v35 = vld [vmem:[%s3899_s1 + $0x460] sm:$0xff] }
  0x46   : > { %2367 = vmatprep.subr.bf16.mxu0 %v2769_v3 }
  0x47   : > { %791 = vmatmul.mubr.f32.vlgmr.msra.gmra.mrb[0].mxu1 %v150_v40  ;;  %v2242_v40 = vpack.c.bf16 %v579_v34, %v578_v33  ;;  %v687_v33 = vld [vmem:[%s3899_s1 + $0x4c8] sm:$0xff]  ;;  %v294_v34 = vld [vmem:[%s2881_s10 + $0x480] sm:$0xff] }
  0x48   : > { %1466 = vmatmul.mubr.f32.vlgmr.msra.gmra.mrb[0].mxu0 %v156_v42  ;;  %2225 = vmatpush1.bf16.msra.mxu1 %v2224_v41  ;;  %v241_v41 = vld [vmem:[%s2881_s10 + $0x2d8] sm:$0xff]  ;;  %v2386_v42 = vpack.c.bf16 %v675_v36, %v674_v35  ;;  %v300_v35 = vld [vmem:[%s2881_s10 + $0x4b0] sm:$0xff]  ;;  %v307_v36 = vld [vmem:[%s2881_s10 + $0x4e8] sm:$0xff] }
  0x49   : > { %2369 = vmatpush1.bf16.msra.mxu0 %v2368_v43  ;;  %795 = vmatprep.mubr.f32.mxu1 %v163_v44  ;;  %v580_v43 = vld [vmem:[%s3899_s1 + $0x170] sm:$0xff]  ;;  %v581_v44 = vld [vmem:[%s3899_s1 + $0x178] sm:$0xff] }
  0x4a   : > { %1470 = vmatprep.mubr.f32.mxu0 %v169_v47  ;;  %2226 = vmatprep.subr.bf16.mxu1 %v2769_v3  ;;  %v234_v47 = vld [vmem:[%s2881_s10 + $0x2a0] sm:$0xff] }
  0x4b   : > { %796 = vmatmul.mubr.f32.gmra.mrb[2].mxu1 %v162_v50  ;;  %2370 = vmatprep.subr.bf16.mxu0 %v2769_v3  ;;  %v2245_v50 = vpack.c.bf16 %v581_v44, %v580_v43  ;;  %v689_v43 = vld [vmem:[%s3899_s1 + $0x4d8] sm:$0xff]  ;;  %v306_v44 = vld [vmem:[%s2881_s10 + $0x4e0] sm:$0xff] }
  0x4c   : > { %1471 = vmatmul.mubr.f32.gmra.mrb[2].mxu0 %v168_v51  ;;  %800 = vmatprep.mubr.f32.mxu1 %v175_v52  ;;  %v253_v51 = vld [vmem:[%s2881_s10 + $0x338] sm:$0xff]  ;;  %v2389_v52 = vpack.c.bf16 %v677_v46, %v676_v45  ;;  %v312_v45 = vld [vmem:[%s2881_s10 + $0x510] sm:$0xff]  ;;  %v319_v46 = vld [vmem:[%s2881_s10 + $0x548] sm:$0xff] }
  0x4d   : > { %1475 = vmatprep.mubr.f32.mxu0 %v181_v54  ;;  %2228 = vmatpush1.bf16.msra.mxu1 %v2227_v53  ;;  %v582_v53 = vld [vmem:[%s3899_s1 + $0x180] sm:$0xff]  ;;  %v583_v54 = vld [vmem:[%s3899_s1 + $0x188] sm:$0xff] }
  0x4e   : > { %2372 = vmatpush1.bf16.msra.mxu0 %v2371_v55  ;;  %2229 = vmatprep.subr.bf16.mxu1 %v2769_v3  ;;  %v678_v55 = vld [vmem:[%s3899_s1 + $0x480] sm:$0xff] }
  0x4f   : > { %801 = vmatmul.mubr.f32.gmra.mrb[4].mxu1 %v174_v60  ;;  %2373 = vmatprep.subr.bf16.mxu0 %v2769_v3  ;;  %v2248_v60 = vpack.c.bf16 %v583_v54, %v582_v53  ;;  %v691_v53 = vld [vmem:[%s3899_s1 + $0x4e8] sm:$0xff]  ;;  %v318_v54 = vld [vmem:[%s2881_s10 + $0x540] sm:$0xff] }
  0x50   : > { %1476 = vmatmul.mubr.f32.gmra.mrb[4].mxu0 %v180_v61  ;;  %805 = vmatprep.mubr.f32.mxu1 %v187_v62  ;;  %v265_v61 = vld [vmem:[%s2881_s10 + $0x398] sm:$0xff]  ;;  %v2392_v62 = vpack.c.bf16 %v679_v56, %v678_v55  ;;  %v324_v55 = vld [vmem:[%s2881_s10 + $0x570] sm:$0xff]  ;;  %v331_v56 = vld [vmem:[%s2881_s10 + $0x5a8] sm:$0xff] }
  0x51   : > { %1480 = vmatprep.mubr.f32.mxu0 %v193_v0  ;;  %2231 = vmatpush1.bf16.msra.mxu1 %v2230_v63  ;;  %v584_v63 = vld [vmem:[%s3899_s1 + $0x190] sm:$0xff]  ;;  %v585_v0 = vld [vmem:[%s3899_s1 + $0x198] sm:$0xff] }
  0x52   : > { %2375 = vmatpush1.bf16.msra.mxu0 %v2374_v1  ;;  %2232 = vmatprep.subr.bf16.mxu1 %v2769_v3  ;;  %v680_v1 = vld [vmem:[%s3899_s1 + $0x490] sm:$0xff] }
  0x53   : > { %806 = vmatmul.mubr.f32.gmra.mrb[6].mxu1 %v186_v7  ;;  %2376 = vmatprep.subr.bf16.mxu0 %v2769_v3  ;;  %v2251_v7 = vpack.c.bf16 %v585_v0, %v584_v63  ;;  %v693_v63 = vld [vmem:[%s3899_s1 + $0x4f8] sm:$0xff]  ;;  %v330_v0 = vld [vmem:[%s2881_s10 + $0x5a0] sm:$0xff] }
  0x54   : > { %1481 = vmatmul.mubr.f32.gmra.mrb[6].mxu0 %v192_v8  ;;  %810 = vmatprep.mubr.f32.mxu1 %v199_v9  ;;  %v277_v8 = vld [vmem:[%s2881_s10 + $0x3f8] sm:$0xff]  ;;  %v2395_v9 = vpack.c.bf16 %v681_v2, %v680_v1  ;;  %v336_v1 = vld [vmem:[%s2881_s10 + $0x5d0] sm:$0xff]  ;;  %v343_v2 = vld [vmem:[%s2881_s10 + $0x608] sm:$0xff] }
  0x55   : > { %1485 = vmatprep.mubr.f32.mxu0 %v205_v11  ;;  %2234 = vmatpush1.bf16.msra.mxu1 %v2233_v10  ;;  %v586_v10 = vld [vmem:[%s3899_s1 + $0x1a0] sm:$0xff]  ;;  %v587_v11 = vld [vmem:[%s3899_s1 + $0x1a8] sm:$0xff] }
  0x56   : > { %2378 = vmatpush1.bf16.msra.mxu0 %v2377_v12  ;;  %2235 = vmatprep.subr.bf16.mxu1 %v2769_v3  ;;  %v682_v12 = vld [vmem:[%s3899_s1 + $0x4a0] sm:$0xff] }
  0x57   : > { %811 = vmatmul.mubr.f32.gmra.mrb[8].mxu1 %v198_v17  ;;  %2379 = vmatprep.subr.bf16.mxu0 %v2769_v3  ;;  %v2254_v17 = vpack.c.bf16 %v587_v11, %v586_v10  ;;  %v361_v10 = vld [vmem:[%s2881_s10 + $0x698] sm:$0xff]  ;;  %v354_v11 = vld [vmem:[%s2881_s10 + $0x660] sm:$0xff] }
  0x58   : > { %1486 = vmatmul.mubr.f32.gmra.mrb[8].mxu0 %v204_v18  ;;  %815 = vmatprep.mubr.f32.mxu1 %v211_v19  ;;  %v289_v18 = vld [vmem:[%s2881_s10 + $0x458] sm:$0xff]  ;;  %v2398_v19 = vpack.c.bf16 %v683_v13, %v682_v12  ;;  %v360_v12 = vld [vmem:[%s2881_s10 + $0x690] sm:$0xff]  ;;  %v367_v13 = vld [vmem:[%s2881_s10 + $0x6c8] sm:$0xff] }
  0x59   : > { %1490 = vmatprep.mubr.f32.mxu0 %v217_v21  ;;  %2237 = vmatpush1.bf16.msra.mxu1 %v2236_v20  ;;  %v588_v20 = vld [vmem:[%s3899_s1 + $0x1b0] sm:$0xff]  ;;  %v589_v21 = vld [vmem:[%s3899_s1 + $0x1b8] sm:$0xff] }
  0x5a   : > { %2381 = vmatpush1.bf16.msra.mxu0 %v2380_v22  ;;  %2238 = vmatprep.subr.bf16.mxu1 %v2769_v3  ;;  %v684_v22 = vld [vmem:[%s3899_s1 + $0x4b0] sm:$0xff] }
  0x5b   : > { %816 = vmatmul.mubr.f32.gmra.mrb[10].mxu1 %v210_v27  ;;  %2382 = vmatprep.subr.bf16.mxu0 %v2769_v3  ;;  %v2257_v27 = vpack.c.bf16 %v589_v21, %v588_v20  ;;  %v384_v20 = vld [vmem:[%s2881_s10 + $0x750] sm:$0xff]  ;;  %v391_v21 = vld [vmem:[%s2881_s10 + $0x788] sm:$0xff] }
  0x5c   : > { %1491 = vmatmul.mubr.f32.gmra.mrb[10].mxu0 %v216_v28  ;;  %820 = vmatprep.mubr.f32.mxu1 %v223_v29  ;;  %v301_v28 = vld [vmem:[%s2881_s10 + $0x4b8] sm:$0xff]  ;;  %v2401_v29 = vpack.c.bf16 %v685_v23, %v684_v22  ;;  %v390_v23 = vld [vmem:[%s2881_s10 + $0x780] sm:$0xff] }
  0x5d   : > { %1495 = vmatprep.mubr.f32.mxu0 %v229_v31  ;;  %2240 = vmatpush1.bf16.msra.mxu1 %v2239_v30  ;;  %v590_v30 = vld [vmem:[%s3899_s1 + $0x1c0] sm:$0xff]  ;;  %v591_v31 = vld [vmem:[%s3899_s1 + $0x1c8] sm:$0xff]  ;;  %v397_v22 = vld [vmem:[%s2881_s10 + $0x7b8] sm:$0xff] }
  0x5e   : > { %2384 = vmatpush1.bf16.msra.mxu0 %v2383_v32  ;;  %2241 = vmatprep.subr.bf16.mxu1 %v2769_v3  ;;  %v686_v32 = vld [vmem:[%s3899_s1 + $0x4c0] sm:$0xff] }
  0x5f   : > { %821 = vmatmul.mubr.f32.gmra.mrb[12].mxu1 %v222_v37  ;;  %2385 = vmatprep.subr.bf16.mxu0 %v2769_v3  ;;  %v2260_v37 = vpack.c.bf16 %v591_v31, %v590_v30  ;;  %v421_v30 = vld [vmem:[%s2881_s10 + $0x878] sm:$0xff]  ;;  %v414_v31 = vld [vmem:[%s2881_s10 + $0x840] sm:$0xff] }
  0x60   : > { %1496 = vmatmul.mubr.f32.gmra.mrb[12].mxu0 %v228_v38  ;;  %825 = vmatprep.mubr.f32.mxu1 %v235_v39  ;;  %v313_v38 = vld [vmem:[%s2881_s10 + $0x518] sm:$0xff]  ;;  %v2404_v39 = vpack.c.bf16 %v687_v33, %v686_v32  ;;  %v420_v32 = vld [vmem:[%s2881_s10 + $0x870] sm:$0xff]  ;;  %v427_v33 = vld [vmem:[%s2881_s10 + $0x8a8] sm:$0xff] }
  0x61   : > { %1500 = vmatprep.mubr.f32.mxu0 %v241_v41  ;;  %2243 = vmatpush1.bf16.msra.mxu1 %v2242_v40  ;;  %v592_v40 = vld [vmem:[%s3899_s1 + $0x1d0] sm:$0xff]  ;;  %v593_v41 = vld [vmem:[%s3899_s1 + $0x1d8] sm:$0xff] }
  0x62   : > { %2387 = vmatpush1.bf16.msra.mxu0 %v2386_v42  ;;  %2244 = vmatprep.subr.bf16.mxu1 %v2769_v3  ;;  %v688_v42 = vld [vmem:[%s3899_s1 + $0x4d0] sm:$0xff] }
  0x63   : > { %826 = vmatmul.mubr.f32.gmra.mrb[14].mxu1 %v234_v47  ;;  %2388 = vmatprep.subr.bf16.mxu0 %v2769_v3  ;;  %v2263_v47 = vpack.c.bf16 %v593_v41, %v592_v40  ;;  %v444_v40 = vld [vmem:[%s2881_s10 + $0x930] sm:$0xff]  ;;  %v451_v41 = vld [vmem:[%s2881_s10 + $0x968] sm:$0xff] }
  0x64   : > { %1501 = vmatmul.mubr.f32.gmra.mrb[14].mxu0 %v240_v48  ;;  %830 = vmatprep.mubr.f32.mxu1 %v247_v49  ;;  %v325_v48 = vld [vmem:[%s2881_s10 + $0x578] sm:$0xff]  ;;  %v2407_v49 = vpack.c.bf16 %v689_v43, %v688_v42  ;;  %v450_v43 = vld [vmem:[%s2881_s10 + $0x960] sm:$0xff] }
  0x65   : > { %1505 = vmatprep.mubr.f32.mxu0 %v253_v51  ;;  %2246 = vmatpush1.bf16.msra.mxu1 %v2245_v50  ;;  %v594_v50 = vld [vmem:[%s3899_s1 + $0x1e0] sm:$0xff]  ;;  %v595_v51 = vld [vmem:[%s3899_s1 + $0x1e8] sm:$0xff]  ;;  %v457_v42 = vld [vmem:[%s2881_s10 + $0x998] sm:$0xff] }
  0x66   : > { %2390 = vmatpush1.bf16.msra.mxu0 %v2389_v52  ;;  %2247 = vmatprep.subr.bf16.mxu1 %v2769_v3  ;;  %v690_v52 = vld [vmem:[%s3899_s1 + $0x4e0] sm:$0xff] }
  0x67   : > { %831 = vmatmul.mubr.f32.gmra.mrb[16].mxu1 %v246_v57  ;;  %2391 = vmatprep.subr.bf16.mxu0 %v2769_v3  ;;  %v2266_v57 = vpack.c.bf16 %v595_v51, %v594_v50  ;;  %v481_v50 = vld [vmem:[%s2881_s10 + $0xa58] sm:$0xff]  ;;  %v474_v51 = vld [vmem:[%s2881_s10 + $0xa20] sm:$0xff] }
  0x68   : > { %1506 = vmatmul.mubr.f32.gmra.mrb[16].mxu0 %v252_v58  ;;  %835 = vmatprep.mubr.f32.mxu1 %v259_v59  ;;  %v337_v58 = vld [vmem:[%s2881_s10 + $0x5d8] sm:$0xff]  ;;  %v2410_v59 = vpack.c.bf16 %v691_v53, %v690_v52  ;;  %v480_v52 = vld [vmem:[%s2881_s10 + $0xa50] sm:$0xff]  ;;  %v487_v53 = vld [vmem:[%s2881_s10 + $0xa88] sm:$0xff] }
  0x69   : > { %1510 = vmatprep.mubr.f32.mxu0 %v265_v61  ;;  %2249 = vmatpush1.bf16.msra.mxu1 %v2248_v60  ;;  %v596_v60 = vld [vmem:[%s3899_s1 + $0x1f0] sm:$0xff]  ;;  %v597_v61 = vld [vmem:[%s3899_s1 + $0x1f8] sm:$0xff] }
  0x6a   : > { %2393 = vmatpush1.bf16.msra.mxu0 %v2392_v62  ;;  %2250 = vmatprep.subr.bf16.mxu1 %v2769_v3  ;;  %v692_v62 = vld [vmem:[%s3899_s1 + $0x4f0] sm:$0xff] }
  0x6b   : > { %836 = vmatmul.mubr.f32.gmra.mrb[18].mxu1 %v258_v4  ;;  %2394 = vmatprep.subr.bf16.mxu0 %v2769_v3  ;;  %v2269_v4 = vpack.c.bf16 %v597_v61, %v596_v60  ;;  %v504_v60 = vld [vmem:[%s2881_s10 + $0xb10] sm:$0xff]  ;;  %v511_v61 = vld [vmem:[%s2881_s10 + $0xb48] sm:$0xff] }
  0x6c   : > { %1511 = vmatmul.mubr.f32.gmra.mrb[18].mxu0 %v264_v5  ;;  %840 = vmatprep.mubr.f32.mxu1 %v271_v6  ;;  %v349_v5 = vld [vmem:[%s2881_s10 + $0x638] sm:$0xff]  ;;  %v2413_v6 = vpack.c.bf16 %v693_v63, %v692_v62  ;;  %v510_v63 = vld [vmem:[%s2881_s10 + $0xb40] sm:$0xff] }
  0x6d   : > { %1515 = vmatprep.mubr.f32.mxu0 %v277_v8  ;;  %2252 = vmatpush1.bf16.msra.mxu1 %v2251_v7  ;;  %v342_v7 = vld [vmem:[%s2881_s10 + $0x600] sm:$0xff]  ;;  %v348_v8 = vld [vmem:[%s2881_s10 + $0x630] sm:$0xff]  ;;  %v517_v62 = vld [vmem:[%s2881_s10 + $0xb78] sm:$0xff] }
  0x6e   : > { %2396 = vmatpush1.bf16.msra.mxu0 %v2395_v9  ;;  %2253 = vmatprep.subr.bf16.mxu1 %v2769_v3  ;;  %v355_v9 = vld [vmem:[%s2881_s10 + $0x668] sm:$0xff] }
  0x6f   : > { %841 = vmatmul.mubr.f32.gmra.mrb[20].mxu1 %v270_v14  ;;  %2397 = vmatprep.subr.bf16.mxu0 %v2769_v3  ;;  %v373_v14 = vld [vmem:[%s2881_s10 + $0x6f8] sm:$0xff] }
  0x70   : > { %1516 = vmatmul.mubr.f32.gmra.mrb[20].mxu0 %v276_v15  ;;  %845 = vmatprep.mubr.f32.mxu1 %v283_v16  ;;  %v366_v15 = vld [vmem:[%s2881_s10 + $0x6c0] sm:$0xff]  ;;  %v372_v16 = vld [vmem:[%s2881_s10 + $0x6f0] sm:$0xff] }
  0x71   : > { %1520 = vmatprep.mubr.f32.mxu0 %v289_v18  ;;  %2255 = vmatpush1.bf16.msra.mxu1 %v2254_v17  ;;  %v379_v17 = vld [vmem:[%s2881_s10 + $0x728] sm:$0xff]  ;;  %v385_v18 = vld [vmem:[%s2881_s10 + $0x758] sm:$0xff] }
  0x72   : > { %2399 = vmatpush1.bf16.msra.mxu0 %v2398_v19  ;;  %2256 = vmatprep.subr.bf16.mxu1 %v2769_v3  ;;  %v378_v19 = vld [vmem:[%s2881_s10 + $0x720] sm:$0xff] }
  0x73   : > { %846 = vmatmul.mubr.f32.gmra.mrb[22].mxu1 %v282_v24  ;;  %2400 = vmatprep.subr.bf16.mxu0 %v2769_v3  ;;  %v396_v24 = vld [vmem:[%s2881_s10 + $0x7b0] sm:$0xff] }
  0x74   : > { %1521 = vmatmul.mubr.f32.gmra.mrb[22].mxu0 %v288_v25  ;;  %850 = vmatprep.mubr.f32.mxu1 %v295_v26  ;;  %v403_v25 = vld [vmem:[%s2881_s10 + $0x7e8] sm:$0xff]  ;;  %v409_v26 = vld [vmem:[%s2881_s10 + $0x818] sm:$0xff] }
  0x75   : > { %1525 = vmatprep.mubr.f32.mxu0 %v301_v28  ;;  %2258 = vmatpush1.bf16.msra.mxu1 %v2257_v27  ;;  %v402_v27 = vld [vmem:[%s2881_s10 + $0x7e0] sm:$0xff]  ;;  %v408_v28 = vld [vmem:[%s2881_s10 + $0x810] sm:$0xff] }
  0x76   : > { %2402 = vmatpush1.bf16.msra.mxu0 %v2401_v29  ;;  %2259 = vmatprep.subr.bf16.mxu1 %v2769_v3  ;;  %v415_v29 = vld [vmem:[%s2881_s10 + $0x848] sm:$0xff] }
  0x77   : > { %851 = vmatmul.mubr.f32.gmra.mrb[24].mxu1 %v294_v34  ;;  %2403 = vmatprep.subr.bf16.mxu0 %v2769_v3  ;;  %v433_v34 = vld [vmem:[%s2881_s10 + $0x8d8] sm:$0xff] }
  0x78   : > { %1526 = vmatmul.mubr.f32.gmra.mrb[24].mxu0 %v300_v35  ;;  %855 = vmatprep.mubr.f32.mxu1 %v307_v36  ;;  %v426_v35 = vld [vmem:[%s2881_s10 + $0x8a0] sm:$0xff]  ;;  %v432_v36 = vld [vmem:[%s2881_s10 + $0x8d0] sm:$0xff] }
  0x79   : > { %1530 = vmatprep.mubr.f32.mxu0 %v313_v38  ;;  %2261 = vmatpush1.bf16.msra.mxu1 %v2260_v37  ;;  %v439_v37 = vld [vmem:[%s2881_s10 + $0x908] sm:$0xff]  ;;  %v445_v38 = vld [vmem:[%s2881_s10 + $0x938] sm:$0xff] }
  0x7a   : > { %2405 = vmatpush1.bf16.msra.mxu0 %v2404_v39  ;;  %2262 = vmatprep.subr.bf16.mxu1 %v2769_v3  ;;  %v438_v39 = vld [vmem:[%s2881_s10 + $0x900] sm:$0xff] }
  0x7b   : > { %856 = vmatmul.mubr.f32.gmra.mrb[26].mxu1 %v306_v44  ;;  %2406 = vmatprep.subr.bf16.mxu0 %v2769_v3  ;;  %v456_v44 = vld [vmem:[%s2881_s10 + $0x990] sm:$0xff] }
  0x7c   : > { %1531 = vmatmul.mubr.f32.gmra.mrb[26].mxu0 %v312_v45  ;;  %860 = vmatprep.mubr.f32.mxu1 %v319_v46  ;;  %v463_v45 = vld [vmem:[%s2881_s10 + $0x9c8] sm:$0xff]  ;;  %v469_v46 = vld [vmem:[%s2881_s10 + $0x9f8] sm:$0xff] }
  0x7d   : > { %1535 = vmatprep.mubr.f32.mxu0 %v325_v48  ;;  %2264 = vmatpush1.bf16.msra.mxu1 %v2263_v47  ;;  %v462_v47 = vld [vmem:[%s2881_s10 + $0x9c0] sm:$0xff]  ;;  %v468_v48 = vld [vmem:[%s2881_s10 + $0x9f0] sm:$0xff] }
  0x7e   : > { %2408 = vmatpush1.bf16.msra.mxu0 %v2407_v49  ;;  %2265 = vmatprep.subr.bf16.mxu1 %v2769_v3  ;;  %v475_v49 = vld [vmem:[%s2881_s10 + $0xa28] sm:$0xff] }
  0x7f   : > { %861 = vmatmul.mubr.f32.gmra.mrb[28].mxu1 %v318_v54  ;;  %2409 = vmatprep.subr.bf16.mxu0 %v2769_v3  ;;  %v493_v54 = vld [vmem:[%s2881_s10 + $0xab8] sm:$0xff] }
  0x80   : > { %1536 = vmatmul.mubr.f32.gmra.mrb[28].mxu0 %v324_v55  ;;  %865 = vmatprep.mubr.f32.mxu1 %v331_v56  ;;  %v486_v55 = vld [vmem:[%s2881_s10 + $0xa80] sm:$0xff]  ;;  %v492_v56 = vld [vmem:[%s2881_s10 + $0xab0] sm:$0xff] }
  0x81   : > { %1540 = vmatprep.mubr.f32.mxu0 %v337_v58  ;;  %2267 = vmatpush1.bf16.msra.mxu1 %v2266_v57  ;;  %v499_v57 = vld [vmem:[%s2881_s10 + $0xae8] sm:$0xff]  ;;  %v505_v58 = vld [vmem:[%s2881_s10 + $0xb18] sm:$0xff] }
  0x82   : > { %2411 = vmatpush1.bf16.msra.mxu0 %v2410_v59  ;;  %2268 = vmatprep.subr.bf16.mxu1 %v2769_v3  ;;  %v498_v59 = vld [vmem:[%s2881_s10 + $0xae0] sm:$0xff] }
  0x83   : > { %866 = vmatmul.mubr.f32.gmra.mrb[30].mxu1 %v330_v0  ;;  %2412 = vmatprep.subr.bf16.mxu0 %v2769_v3  ;;  %v516_v0 = vld [vmem:[%s2881_s10 + $0xb70] sm:$0xff] }
  0x84   : > { %1541 = vmatmul.mubr.f32.gmra.mrb[30].mxu0 %v336_v1  ;;  %870 = vmatprep.mubr.f32.mxu1 %v343_v2  ;;  %v523_v1 = vld [vmem:[%s2881_s10 + $0xba8] sm:$0xff]  ;;  %v529_v2 = vld [vmem:[%s2881_s10 + $0xbd8] sm:$0xff] }
  0x85   : > { %1545 = vmatprep.mubr.f32.mxu0 %v349_v5  ;;  %2270 = vmatpush1.bf16.msra.mxu1 %v2269_v4  ;;  %v522_v4 = vld [vmem:[%s2881_s10 + $0xba0] sm:$0xff]  ;;  %v528_v5 = vld [vmem:[%s2881_s10 + $0xbd0] sm:$0xff] }
  0x86   : > { %2414 = vmatpush1.bf16.msra.mxu0 %v2413_v6  ;;  %2271 = vmatprep.subr.bf16.mxu1 %v2769_v3  ;;  %v153_v6 = vld [vmem:[%s2881_s10 + $0x18] sm:$0xff] }
  0x87   : > { %871 = vmatmul.mubr.f32.gmra.mrb[32].mxu1 %v342_v7  ;;  %2415 = vmatprep.subr.bf16.mxu0 %v2769_v3  ;;  %v598_v7 = vld [vmem:[%s3899_s1 + $0x200] sm:$0xff] }
  0x88   : > { %1546 = vmatmul.mubr.f32.gmra.mrb[32].mxu0 %v348_v8  ;;  %875 = vmatprep.mubr.f32.mxu1 %v355_v9  ;;  %v599_v8 = vld [vmem:[%s3899_s1 + $0x208] sm:$0xff] }
  0x89   : > { %1550 = vmatprep.mubr.f32.mxu0 %v361_v10  ;;  %v159_v9 = vld [vmem:[%s2881_s10 + $0x48] sm:$0xff]  ;;  %v694_v10 = vld [vmem:[%s3899_s1 + $0x500] sm:$0xff] }
  0x8b   : > { %876 = vmatmul.mubr.f32.gmra.mrb[34].mxu1 %v354_v11  ;;  %v695_v11 = vld [vmem:[%s3899_s1 + $0x508] sm:$0xff] }
  0x8c   : > { %1551 = vmatmul.mubr.f32.gmra.mrb[34].mxu0 %v360_v12  ;;  %880 = vmatprep.mubr.f32.mxu1 %v367_v13  ;;  %v152_v12 = vld [vmem:[%s2881_s10 + $0x10] sm:$0xff]  ;;  %v2272_v13 = vpack.c.bf16 %v599_v8, %v598_v7  ;;  %v706_v7 = vld [vmem:[%s3899_s1 + $0x560] sm:$0xff]  ;;  %v707_v8 = vld [vmem:[%s3899_s1 + $0x568] sm:$0xff] }
  0x8d   : > { %1555 = vmatprep.mubr.f32.mxu0 %v373_v14  ;;  %v158_v14 = vld [vmem:[%s2881_s10 + $0x40] sm:$0xff] }
  0x8f   : > { %881 = vmatmul.mubr.f32.gmra.mrb[36].mxu1 %v366_v15  ;;  %v2416_v15 = vpack.c.bf16 %v695_v11, %v694_v10  ;;  %v230_v10 = vld [vmem:[%s2881_s10 + $0x280] sm:$0xff]  ;;  %v237_v11 = vld [vmem:[%s2881_s10 + $0x2b8] sm:$0xff] }
  0x90   : > { %1556 = vmatmul.mubr.f32.gmra.mrb[36].mxu0 %v372_v16  ;;  %885 = vmatprep.mubr.f32.mxu1 %v379_v17  ;;  %v165_v16 = vld [vmem:[%s2881_s10 + $0x78] sm:$0xff]  ;;  %v600_v17 = vld [vmem:[%s3899_s1 + $0x210] sm:$0xff] }
  0x91   : > { %1560 = vmatprep.mubr.f32.mxu0 %v385_v18  ;;  %v601_v18 = vld [vmem:[%s3899_s1 + $0x218] sm:$0xff] }
  0x93   : > { %886 = vmatmul.mubr.f32.gmra.mrb[38].mxu1 %v378_v19  ;;  %v171_v19 = vld [vmem:[%s2881_s10 + $0xa8] sm:$0xff] }
  0x94   : > { %1561 = vmatmul.mubr.f32.gmra.mrb[38].mxu0 %v384_v20  ;;  %890 = vmatprep.mubr.f32.mxu1 %v391_v21  ;;  %v696_v20 = vld [vmem:[%s3899_s1 + $0x510] sm:$0xff]  ;;  %v697_v21 = vld [vmem:[%s3899_s1 + $0x518] sm:$0xff] }
  0x95   : > { %1565 = vmatprep.mubr.f32.mxu0 %v397_v22  ;;  %v164_v22 = vld [vmem:[%s2881_s10 + $0x70] sm:$0xff] }
  0x97   : > { %891 = vmatmul.mubr.f32.gmra.mrb[40].mxu1 %v390_v23  ;;  %v170_v23 = vld [vmem:[%s2881_s10 + $0xa0] sm:$0xff] }
  0x98   : > { %1566 = vmatmul.mubr.f32.gmra.mrb[40].mxu0 %v396_v24  ;;  %895 = vmatprep.mubr.f32.mxu1 %v403_v25  ;;  %v177_v24 = vld [vmem:[%s2881_s10 + $0xd8] sm:$0xff]  ;;  %v2275_v25 = vpack.c.bf16 %v601_v18, %v600_v17  ;;  %v708_v17 = vld [vmem:[%s3899_s1 + $0x570] sm:$0xff] }
  0x99   : > { %1570 = vmatprep.mubr.f32.mxu0 %v409_v26  ;;  %v183_v26 = vld [vmem:[%s2881_s10 + $0x108] sm:$0xff]  ;;  %v709_v18 = vld [vmem:[%s3899_s1 + $0x578] sm:$0xff] }
  0x9b   : > { %896 = vmatmul.mubr.f32.gmra.mrb[42].mxu1 %v402_v27  ;;  %v2419_v27 = vpack.c.bf16 %v697_v21, %v696_v20  ;;  %v242_v20 = vld [vmem:[%s2881_s10 + $0x2e0] sm:$0xff]  ;;  %v249_v21 = vld [vmem:[%s2881_s10 + $0x318] sm:$0xff] }
  0x9c   : > { %1571 = vmatmul.mubr.f32.gmra.mrb[42].mxu0 %v408_v28  ;;  %900 = vmatprep.mubr.f32.mxu1 %v415_v29  ;;  %v602_v28 = vld [vmem:[%s3899_s1 + $0x220] sm:$0xff]  ;;  %v603_v29 = vld [vmem:[%s3899_s1 + $0x228] sm:$0xff] }
  0x9d   : > { %1575 = vmatprep.mubr.f32.mxu0 %v421_v30  ;;  %v698_v30 = vld [vmem:[%s3899_s1 + $0x520] sm:$0xff] }
  0x9f   : > { %901 = vmatmul.mubr.f32.gmra.mrb[44].mxu1 %v414_v31  ;;  %v699_v31 = vld [vmem:[%s3899_s1 + $0x528] sm:$0xff] }
  0xa0   : > { %1576 = vmatmul.mubr.f32.gmra.mrb[44].mxu0 %v420_v32  ;;  %905 = vmatprep.mubr.f32.mxu1 %v427_v33  ;;  %v176_v32 = vld [vmem:[%s2881_s10 + $0xd0] sm:$0xff]  ;;  %v182_v33 = vld [vmem:[%s2881_s10 + $0x100] sm:$0xff] }
  0xa1   : > { %1580 = vmatprep.mubr.f32.mxu0 %v433_v34  ;;  %v189_v34 = vld [vmem:[%s2881_s10 + $0x138] sm:$0xff] }
  0xa3   : > { %906 = vmatmul.mubr.f32.gmra.mrb[46].mxu1 %v426_v35  ;;  %v2278_v35 = vpack.c.bf16 %v603_v29, %v602_v28  ;;  %v711_v28 = vld [vmem:[%s3899_s1 + $0x588] sm:$0xff]  ;;  %v248_v29 = vld [vmem:[%s2881_s10 + $0x310] sm:$0xff] }
  0xa4   : > { %1581 = vmatmul.mubr.f32.gmra.mrb[46].mxu0 %v432_v36  ;;  %910 = vmatprep.mubr.f32.mxu1 %v439_v37  ;;  %v195_v36 = vld [vmem:[%s2881_s10 + $0x168] sm:$0xff]  ;;  %v2422_v37 = vpack.c.bf16 %v699_v31, %v698_v30  ;;  %v254_v30 = vld [vmem:[%s2881_s10 + $0x340] sm:$0xff]  ;;  %v261_v31 = vld [vmem:[%s2881_s10 + $0x378] sm:$0xff] }
  0xa5   : > { %1585 = vmatprep.mubr.f32.mxu0 %v445_v38  ;;  %v604_v38 = vld [vmem:[%s3899_s1 + $0x230] sm:$0xff] }
  0xa7   : > { %911 = vmatmul.mubr.f32.gmra.mrb[48].mxu1 %v438_v39  ;;  %v605_v39 = vld [vmem:[%s3899_s1 + $0x238] sm:$0xff] }
  0xa8   : > { %1586 = vmatmul.mubr.f32.gmra.mrb[48].mxu0 %v444_v40  ;;  %915 = vmatprep.mubr.f32.mxu1 %v451_v41  ;;  %v700_v40 = vld [vmem:[%s3899_s1 + $0x530] sm:$0xff]  ;;  %v701_v41 = vld [vmem:[%s3899_s1 + $0x538] sm:$0xff] }
  0xa9   : > { %1590 = vmatprep.mubr.f32.mxu0 %v457_v42  ;;  %v188_v42 = vld [vmem:[%s2881_s10 + $0x130] sm:$0xff] }
  0xab   : > { %916 = vmatmul.mubr.f32.gmra.mrb[50].mxu1 %v450_v43  ;;  %v194_v43 = vld [vmem:[%s2881_s10 + $0x160] sm:$0xff] }
  0xac   : > { %1591 = vmatmul.mubr.f32.gmra.mrb[50].mxu0 %v456_v44  ;;  %920 = vmatprep.mubr.f32.mxu1 %v463_v45  ;;  %v201_v44 = vld [vmem:[%s2881_s10 + $0x198] sm:$0xff]  ;;  %v2281_v45 = vpack.c.bf16 %v605_v39, %v604_v38  ;;  %v260_v39 = vld [vmem:[%s2881_s10 + $0x370] sm:$0xff] }
  0xad   : > { %1595 = vmatprep.mubr.f32.mxu0 %v469_v46  ;;  %v207_v46 = vld [vmem:[%s2881_s10 + $0x1c8] sm:$0xff]  ;;  %v713_v38 = vld [vmem:[%s3899_s1 + $0x598] sm:$0xff] }
  0xaf   : > { %921 = vmatmul.mubr.f32.gmra.mrb[52].mxu1 %v462_v47  ;;  %v2425_v47 = vpack.c.bf16 %v701_v41, %v700_v40  ;;  %v266_v40 = vld [vmem:[%s2881_s10 + $0x3a0] sm:$0xff]  ;;  %v273_v41 = vld [vmem:[%s2881_s10 + $0x3d8] sm:$0xff] }
  0xb0   : > { %1596 = vmatmul.mubr.f32.gmra.mrb[52].mxu0 %v468_v48  ;;  %925 = vmatprep.mubr.f32.mxu1 %v475_v49  ;;  %v606_v48 = vld [vmem:[%s3899_s1 + $0x240] sm:$0xff]  ;;  %v607_v49 = vld [vmem:[%s3899_s1 + $0x248] sm:$0xff] }
  0xb1   : > { %1600 = vmatprep.mubr.f32.mxu0 %v481_v50  ;;  %v702_v50 = vld [vmem:[%s3899_s1 + $0x540] sm:$0xff] }
  0xb3   : > { %926 = vmatmul.mubr.f32.gmra.mrb[54].mxu1 %v474_v51  ;;  %v703_v51 = vld [vmem:[%s3899_s1 + $0x548] sm:$0xff] }
  0xb4   : > { %1601 = vmatmul.mubr.f32.gmra.mrb[54].mxu0 %v480_v52  ;;  %930 = vmatprep.mubr.f32.mxu1 %v487_v53  ;;  %v200_v52 = vld [vmem:[%s2881_s10 + $0x190] sm:$0xff]  ;;  %v206_v53 = vld [vmem:[%s2881_s10 + $0x1c0] sm:$0xff] }
  0xb5   : > { %1605 = vmatprep.mubr.f32.mxu0 %v493_v54  ;;  %v213_v54 = vld [vmem:[%s2881_s10 + $0x1f8] sm:$0xff] }
  0xb7   : > { %931 = vmatmul.mubr.f32.gmra.mrb[56].mxu1 %v486_v55  ;;  %v2284_v55 = vpack.c.bf16 %v607_v49, %v606_v48  ;;  %v715_v48 = vld [vmem:[%s3899_s1 + $0x5a8] sm:$0xff]  ;;  %v272_v49 = vld [vmem:[%s2881_s10 + $0x3d0] sm:$0xff] }
  0xb8   : > { %1606 = vmatmul.mubr.f32.gmra.mrb[56].mxu0 %v492_v56  ;;  %935 = vmatprep.mubr.f32.mxu1 %v499_v57  ;;  %v219_v56 = vld [vmem:[%s2881_s10 + $0x228] sm:$0xff]  ;;  %v2428_v57 = vpack.c.bf16 %v703_v51, %v702_v50  ;;  %v278_v50 = vld [vmem:[%s2881_s10 + $0x400] sm:$0xff]  ;;  %v285_v51 = vld [vmem:[%s2881_s10 + $0x438] sm:$0xff] }
  0xb9   : > { %1610 = vmatprep.mubr.f32.mxu0 %v505_v58  ;;  %v608_v58 = vld [vmem:[%s3899_s1 + $0x250] sm:$0xff] }
  0xbb   : > { %936 = vmatmul.mubr.f32.gmra.mrb[58].mxu1 %v498_v59  ;;  %v609_v59 = vld [vmem:[%s3899_s1 + $0x258] sm:$0xff] }
  0xbc   : > { %1611 = vmatmul.mubr.f32.gmra.mrb[58].mxu0 %v504_v60  ;;  %940 = vmatprep.mubr.f32.mxu1 %v511_v61  ;;  %v704_v60 = vld [vmem:[%s3899_s1 + $0x550] sm:$0xff]  ;;  %v705_v61 = vld [vmem:[%s3899_s1 + $0x558] sm:$0xff] }
  0xbd   : > { %1615 = vmatprep.mubr.f32.mxu0 %v517_v62  ;;  %v212_v62 = vld [vmem:[%s2881_s10 + $0x1f0] sm:$0xff] }
  0xbf   : > { %941 = vmatmul.mubr.f32.gmra.mrb[60].mxu1 %v510_v63  ;;  %v218_v63 = vld [vmem:[%s2881_s10 + $0x220] sm:$0xff] }
  0xc0   : > { %1616 = vmatmul.mubr.f32.gmra.mrb[60].mxu0 %v516_v0  ;;  %945 = vmatprep.mubr.f32.mxu1 %v523_v1  ;;  %v225_v0 = vld [vmem:[%s2881_s10 + $0x258] sm:$0xff]  ;;  %v2287_v1 = vpack.c.bf16 %v609_v59, %v608_v58  ;;  %v284_v59 = vld [vmem:[%s2881_s10 + $0x430] sm:$0xff] }
  0xc1   : > { %1620 = vmatprep.mubr.f32.mxu0 %v529_v2  ;;  %v231_v2 = vld [vmem:[%s2881_s10 + $0x288] sm:$0xff]  ;;  %v717_v58 = vld [vmem:[%s3899_s1 + $0x5b8] sm:$0xff] }
  0xc3   : > { %946 = vmatmul.mubr.f32.gmra.mrb[62].mxu1 %v522_v4  ;;  %v2431_v4 = vpack.c.bf16 %v705_v61, %v704_v60  ;;  %v290_v60 = vld [vmem:[%s2881_s10 + $0x460] sm:$0xff]  ;;  %v297_v61 = vld [vmem:[%s2881_s10 + $0x498] sm:$0xff] }
  0xc4   : > { %1621 = vmatmul.mubr.f32.gmra.mrb[62].mxu0 %v528_v5  ;;  %1015 = vmatprep.mubr.f32.mxu1 %v153_v6  ;;  %v610_v5 = vld [vmem:[%s3899_s1 + $0x260] sm:$0xff]  ;;  %v611_v6 = vld [vmem:[%s3899_s1 + $0x268] sm:$0xff] }
  0xc5   : > { %1690 = vmatprep.mubr.f32.mxu0 %v159_v9  ;;  %v224_v9 = vld [vmem:[%s2881_s10 + $0x250] sm:$0xff] }
  0xc7   : > { %1016 = vmatmul.mubr.f32.vlgmr.msra.gmra.mrb[0].mxu1 %v152_v12  ;;  %v2290_v12 = vpack.c.bf16 %v611_v6, %v610_v5  ;;  %v719_v5 = vld [vmem:[%s3899_s1 + $0x5c8] sm:$0xff]  ;;  %v296_v6 = vld [vmem:[%s2881_s10 + $0x490] sm:$0xff] }
  0xc8   : > { %1691 = vmatmul.mubr.f32.vlgmr.msra.gmra.mrb[0].mxu0 %v158_v14  ;;  %2273 = vmatpush1.bf16.msra.mxu1 %v2272_v13  ;;  %v243_v13 = vld [vmem:[%s2881_s10 + $0x2e8] sm:$0xff]  ;;  %v2434_v14 = vpack.c.bf16 %v707_v8, %v706_v7  ;;  %v302_v7 = vld [vmem:[%s2881_s10 + $0x4c0] sm:$0xff]  ;;  %v309_v8 = vld [vmem:[%s2881_s10 + $0x4f8] sm:$0xff] }
  0xc9   : > { %2417 = vmatpush1.bf16.msra.mxu0 %v2416_v15  ;;  %1020 = vmatprep.mubr.f32.mxu1 %v165_v16  ;;  %v612_v15 = vld [vmem:[%s3899_s1 + $0x270] sm:$0xff]  ;;  %v613_v16 = vld [vmem:[%s3899_s1 + $0x278] sm:$0xff] }
  0xca   : > { %1695 = vmatprep.mubr.f32.mxu0 %v171_v19  ;;  %2274 = vmatprep.subr.bf16.mxu1 %v2769_v3  ;;  %v236_v19 = vld [vmem:[%s2881_s10 + $0x2b0] sm:$0xff] }
  0xcb   : > { %1021 = vmatmul.mubr.f32.gmra.mrb[2].mxu1 %v164_v22  ;;  %2418 = vmatprep.subr.bf16.mxu0 %v2769_v3  ;;  %v2293_v22 = vpack.c.bf16 %v613_v16, %v612_v15  ;;  %v721_v15 = vld [vmem:[%s3899_s1 + $0x5d8] sm:$0xff]  ;;  %v308_v16 = vld [vmem:[%s2881_s10 + $0x4f0] sm:$0xff] }
  0xcc   : > { %1696 = vmatmul.mubr.f32.gmra.mrb[2].mxu0 %v170_v23  ;;  %1025 = vmatprep.mubr.f32.mxu1 %v177_v24  ;;  %v255_v23 = vld [vmem:[%s2881_s10 + $0x348] sm:$0xff]  ;;  %v2437_v24 = vpack.c.bf16 %v709_v18, %v708_v17  ;;  %v314_v17 = vld [vmem:[%s2881_s10 + $0x520] sm:$0xff]  ;;  %v321_v18 = vld [vmem:[%s2881_s10 + $0x558] sm:$0xff] }
  0xcd   : > { %1700 = vmatprep.mubr.f32.mxu0 %v183_v26  ;;  %2276 = vmatpush1.bf16.msra.mxu1 %v2275_v25  ;;  %v614_v25 = vld [vmem:[%s3899_s1 + $0x280] sm:$0xff]  ;;  %v615_v26 = vld [vmem:[%s3899_s1 + $0x288] sm:$0xff] }
  0xce   : > { %2420 = vmatpush1.bf16.msra.mxu0 %v2419_v27  ;;  %2277 = vmatprep.subr.bf16.mxu1 %v2769_v3  ;;  %v710_v27 = vld [vmem:[%s3899_s1 + $0x580] sm:$0xff] }
  0xcf   : > { %1026 = vmatmul.mubr.f32.gmra.mrb[4].mxu1 %v176_v32  ;;  %2421 = vmatprep.subr.bf16.mxu0 %v2769_v3  ;;  %v2296_v32 = vpack.c.bf16 %v615_v26, %v614_v25  ;;  %v723_v25 = vld [vmem:[%s3899_s1 + $0x5e8] sm:$0xff]  ;;  %v320_v26 = vld [vmem:[%s2881_s10 + $0x550] sm:$0xff] }
  0xd0   : > { %1701 = vmatmul.mubr.f32.gmra.mrb[4].mxu0 %v182_v33  ;;  %1030 = vmatprep.mubr.f32.mxu1 %v189_v34  ;;  %v267_v33 = vld [vmem:[%s2881_s10 + $0x3a8] sm:$0xff]  ;;  %v2440_v34 = vpack.c.bf16 %v711_v28, %v710_v27  ;;  %v326_v27 = vld [vmem:[%s2881_s10 + $0x580] sm:$0xff]  ;;  %v333_v28 = vld [vmem:[%s2881_s10 + $0x5b8] sm:$0xff] }
  0xd1   : > { %1705 = vmatprep.mubr.f32.mxu0 %v195_v36  ;;  %2279 = vmatpush1.bf16.msra.mxu1 %v2278_v35  ;;  %v616_v35 = vld [vmem:[%s3899_s1 + $0x290] sm:$0xff]  ;;  %v617_v36 = vld [vmem:[%s3899_s1 + $0x298] sm:$0xff] }
  0xd2   : > { %2423 = vmatpush1.bf16.msra.mxu0 %v2422_v37  ;;  %2280 = vmatprep.subr.bf16.mxu1 %v2769_v3  ;;  %v712_v37 = vld [vmem:[%s3899_s1 + $0x590] sm:$0xff] }
  0xd3   : > { %1031 = vmatmul.mubr.f32.gmra.mrb[6].mxu1 %v188_v42  ;;  %2424 = vmatprep.subr.bf16.mxu0 %v2769_v3  ;;  %v2299_v42 = vpack.c.bf16 %v617_v36, %v616_v35  ;;  %v725_v35 = vld [vmem:[%s3899_s1 + $0x5f8] sm:$0xff]  ;;  %v332_v36 = vld [vmem:[%s2881_s10 + $0x5b0] sm:$0xff] }
  0xd4   : > { %1706 = vmatmul.mubr.f32.gmra.mrb[6].mxu0 %v194_v43  ;;  %1035 = vmatprep.mubr.f32.mxu1 %v201_v44  ;;  %v279_v43 = vld [vmem:[%s2881_s10 + $0x408] sm:$0xff]  ;;  %v2443_v44 = vpack.c.bf16 %v713_v38, %v712_v37  ;;  %v338_v37 = vld [vmem:[%s2881_s10 + $0x5e0] sm:$0xff]  ;;  %v345_v38 = vld [vmem:[%s2881_s10 + $0x618] sm:$0xff] }
  0xd5   : > { %1710 = vmatprep.mubr.f32.mxu0 %v207_v46  ;;  %2282 = vmatpush1.bf16.msra.mxu1 %v2281_v45  ;;  %v618_v45 = vld [vmem:[%s3899_s1 + $0x2a0] sm:$0xff]  ;;  %v619_v46 = vld [vmem:[%s3899_s1 + $0x2a8] sm:$0xff] }
  0xd6   : > { %2426 = vmatpush1.bf16.msra.mxu0 %v2425_v47  ;;  %2283 = vmatprep.subr.bf16.mxu1 %v2769_v3  ;;  %v714_v47 = vld [vmem:[%s3899_s1 + $0x5a0] sm:$0xff] }
  0xd7   : > { %1036 = vmatmul.mubr.f32.gmra.mrb[8].mxu1 %v200_v52  ;;  %2427 = vmatprep.subr.bf16.mxu0 %v2769_v3  ;;  %v2302_v52 = vpack.c.bf16 %v619_v46, %v618_v45  ;;  %v363_v45 = vld [vmem:[%s2881_s10 + $0x6a8] sm:$0xff]  ;;  %v356_v46 = vld [vmem:[%s2881_s10 + $0x670] sm:$0xff] }
  0xd8   : > { %1711 = vmatmul.mubr.f32.gmra.mrb[8].mxu0 %v206_v53  ;;  %1040 = vmatprep.mubr.f32.mxu1 %v213_v54  ;;  %v291_v53 = vld [vmem:[%s2881_s10 + $0x468] sm:$0xff]  ;;  %v2446_v54 = vpack.c.bf16 %v715_v48, %v714_v47  ;;  %v369_v47 = vld [vmem:[%s2881_s10 + $0x6d8] sm:$0xff] }
  0xd9   : > { %1715 = vmatprep.mubr.f32.mxu0 %v219_v56  ;;  %2285 = vmatpush1.bf16.msra.mxu1 %v2284_v55  ;;  %v620_v55 = vld [vmem:[%s3899_s1 + $0x2b0] sm:$0xff]  ;;  %v621_v56 = vld [vmem:[%s3899_s1 + $0x2b8] sm:$0xff]  ;;  %v375_v48 = vld [vmem:[%s2881_s10 + $0x708] sm:$0xff] }
  0xda   : > { %2429 = vmatpush1.bf16.msra.mxu0 %v2428_v57  ;;  %2286 = vmatprep.subr.bf16.mxu1 %v2769_v3  ;;  %v716_v57 = vld [vmem:[%s3899_s1 + $0x5b0] sm:$0xff] }
  0xdb   : > { %1041 = vmatmul.mubr.f32.gmra.mrb[10].mxu1 %v212_v62  ;;  %2430 = vmatprep.subr.bf16.mxu0 %v2769_v3  ;;  %v2305_v62 = vpack.c.bf16 %v621_v56, %v620_v55  ;;  %v393_v55 = vld [vmem:[%s2881_s10 + $0x798] sm:$0xff]  ;;  %v399_v56 = vld [vmem:[%s2881_s10 + $0x7c8] sm:$0xff] }
  0xdc   : > { %1716 = vmatmul.mubr.f32.gmra.mrb[10].mxu0 %v218_v63  ;;  %1045 = vmatprep.mubr.f32.mxu1 %v225_v0  ;;  %v303_v63 = vld [vmem:[%s2881_s10 + $0x4c8] sm:$0xff]  ;;  %v2449_v0 = vpack.c.bf16 %v717_v58, %v716_v57  ;;  %v392_v57 = vld [vmem:[%s2881_s10 + $0x790] sm:$0xff]  ;;  %v398_v58 = vld [vmem:[%s2881_s10 + $0x7c0] sm:$0xff] }
  0xdd   : > { %1720 = vmatprep.mubr.f32.mxu0 %v231_v2  ;;  %2288 = vmatpush1.bf16.msra.mxu1 %v2287_v1  ;;  %v622_v1 = vld [vmem:[%s3899_s1 + $0x2c0] sm:$0xff]  ;;  %v623_v2 = vld [vmem:[%s3899_s1 + $0x2c8] sm:$0xff] }
  0xde   : > { %2432 = vmatpush1.bf16.msra.mxu0 %v2431_v4  ;;  %2289 = vmatprep.subr.bf16.mxu1 %v2769_v3  ;;  %v718_v4 = vld [vmem:[%s3899_s1 + $0x5c0] sm:$0xff] }
  0xdf   : > { %1046 = vmatmul.mubr.f32.gmra.mrb[12].mxu1 %v224_v9  ;;  %2433 = vmatprep.subr.bf16.mxu0 %v2769_v3  ;;  %v2308_v9 = vpack.c.bf16 %v623_v2, %v622_v1  ;;  %v416_v1 = vld [vmem:[%s2881_s10 + $0x850] sm:$0xff]  ;;  %v422_v2 = vld [vmem:[%s2881_s10 + $0x880] sm:$0xff] }
  0xe0   : > { %1721 = vmatmul.mubr.f32.gmra.mrb[12].mxu0 %v230_v10  ;;  %1050 = vmatprep.mubr.f32.mxu1 %v237_v11  ;;  %v315_v10 = vld [vmem:[%s2881_s10 + $0x528] sm:$0xff]  ;;  %v2452_v11 = vpack.c.bf16 %v719_v5, %v718_v4  ;;  %v429_v4 = vld [vmem:[%s2881_s10 + $0x8b8] sm:$0xff] }
  0xe1   : > { %1725 = vmatprep.mubr.f32.mxu0 %v243_v13  ;;  %2291 = vmatpush1.bf16.msra.mxu1 %v2290_v12  ;;  %v624_v12 = vld [vmem:[%s3899_s1 + $0x2d0] sm:$0xff]  ;;  %v625_v13 = vld [vmem:[%s3899_s1 + $0x2d8] sm:$0xff]  ;;  %v435_v5 = vld [vmem:[%s2881_s10 + $0x8e8] sm:$0xff] }
  0xe2   : > { %2435 = vmatpush1.bf16.msra.mxu0 %v2434_v14  ;;  %2292 = vmatprep.subr.bf16.mxu1 %v2769_v3  ;;  %v720_v14 = vld [vmem:[%s3899_s1 + $0x5d0] sm:$0xff] }
  0xe3   : > { %1051 = vmatmul.mubr.f32.gmra.mrb[14].mxu1 %v236_v19  ;;  %2436 = vmatprep.subr.bf16.mxu0 %v2769_v3  ;;  %v2311_v19 = vpack.c.bf16 %v625_v13, %v624_v12  ;;  %v453_v12 = vld [vmem:[%s2881_s10 + $0x978] sm:$0xff]  ;;  %v459_v13 = vld [vmem:[%s2881_s10 + $0x9a8] sm:$0xff] }
  0xe4   : > { %1726 = vmatmul.mubr.f32.gmra.mrb[14].mxu0 %v242_v20  ;;  %1055 = vmatprep.mubr.f32.mxu1 %v249_v21  ;;  %v327_v20 = vld [vmem:[%s2881_s10 + $0x588] sm:$0xff]  ;;  %v2455_v21 = vpack.c.bf16 %v721_v15, %v720_v14  ;;  %v452_v14 = vld [vmem:[%s2881_s10 + $0x970] sm:$0xff]  ;;  %v458_v15 = vld [vmem:[%s2881_s10 + $0x9a0] sm:$0xff] }
  0xe5   : > { %1730 = vmatprep.mubr.f32.mxu0 %v255_v23  ;;  %2294 = vmatpush1.bf16.msra.mxu1 %v2293_v22  ;;  %v626_v22 = vld [vmem:[%s3899_s1 + $0x2e0] sm:$0xff]  ;;  %v627_v23 = vld [vmem:[%s3899_s1 + $0x2e8] sm:$0xff] }
  0xe6   : > { %2438 = vmatpush1.bf16.msra.mxu0 %v2437_v24  ;;  %2295 = vmatprep.subr.bf16.mxu1 %v2769_v3  ;;  %v722_v24 = vld [vmem:[%s3899_s1 + $0x5e0] sm:$0xff] }
  0xe7   : > { %1056 = vmatmul.mubr.f32.gmra.mrb[16].mxu1 %v248_v29  ;;  %2439 = vmatprep.subr.bf16.mxu0 %v2769_v3  ;;  %v2314_v29 = vpack.c.bf16 %v627_v23, %v626_v22  ;;  %v476_v22 = vld [vmem:[%s2881_s10 + $0xa30] sm:$0xff]  ;;  %v482_v23 = vld [vmem:[%s2881_s10 + $0xa60] sm:$0xff] }
  0xe8   : > { %1731 = vmatmul.mubr.f32.gmra.mrb[16].mxu0 %v254_v30  ;;  %1060 = vmatprep.mubr.f32.mxu1 %v261_v31  ;;  %v339_v30 = vld [vmem:[%s2881_s10 + $0x5e8] sm:$0xff]  ;;  %v2458_v31 = vpack.c.bf16 %v723_v25, %v722_v24  ;;  %v489_v24 = vld [vmem:[%s2881_s10 + $0xa98] sm:$0xff] }
  0xe9   : > { %1735 = vmatprep.mubr.f32.mxu0 %v267_v33  ;;  %2297 = vmatpush1.bf16.msra.mxu1 %v2296_v32  ;;  %v628_v32 = vld [vmem:[%s3899_s1 + $0x2f0] sm:$0xff]  ;;  %v629_v33 = vld [vmem:[%s3899_s1 + $0x2f8] sm:$0xff]  ;;  %v495_v25 = vld [vmem:[%s2881_s10 + $0xac8] sm:$0xff] }
  0xea   : > { %2441 = vmatpush1.bf16.msra.mxu0 %v2440_v34  ;;  %2298 = vmatprep.subr.bf16.mxu1 %v2769_v3  ;;  %v724_v34 = vld [vmem:[%s3899_s1 + $0x5f0] sm:$0xff] }
  0xeb   : > { %1061 = vmatmul.mubr.f32.gmra.mrb[18].mxu1 %v260_v39  ;;  %2442 = vmatprep.subr.bf16.mxu0 %v2769_v3  ;;  %v2317_v39 = vpack.c.bf16 %v629_v33, %v628_v32  ;;  %v513_v32 = vld [vmem:[%s2881_s10 + $0xb58] sm:$0xff]  ;;  %v519_v33 = vld [vmem:[%s2881_s10 + $0xb88] sm:$0xff] }
  0xec   : > { %1736 = vmatmul.mubr.f32.gmra.mrb[18].mxu0 %v266_v40  ;;  %1065 = vmatprep.mubr.f32.mxu1 %v273_v41  ;;  %v351_v40 = vld [vmem:[%s2881_s10 + $0x648] sm:$0xff]  ;;  %v2461_v41 = vpack.c.bf16 %v725_v35, %v724_v34  ;;  %v512_v34 = vld [vmem:[%s2881_s10 + $0xb50] sm:$0xff]  ;;  %v518_v35 = vld [vmem:[%s2881_s10 + $0xb80] sm:$0xff] }
  0xed   : > { %1740 = vmatprep.mubr.f32.mxu0 %v279_v43  ;;  %2300 = vmatpush1.bf16.msra.mxu1 %v2299_v42  ;;  %v344_v42 = vld [vmem:[%s2881_s10 + $0x610] sm:$0xff]  ;;  %v350_v43 = vld [vmem:[%s2881_s10 + $0x640] sm:$0xff] }
  0xee   : > { %2444 = vmatpush1.bf16.msra.mxu0 %v2443_v44  ;;  %2301 = vmatprep.subr.bf16.mxu1 %v2769_v3  ;;  %v357_v44 = vld [vmem:[%s2881_s10 + $0x678] sm:$0xff] }
  0xef   : > { %1066 = vmatmul.mubr.f32.gmra.mrb[20].mxu1 %v272_v49  ;;  %2445 = vmatprep.subr.bf16.mxu0 %v2769_v3  ;;  %v368_v49 = vld [vmem:[%s2881_s10 + $0x6d0] sm:$0xff] }
  0xf0   : > { %1741 = vmatmul.mubr.f32.gmra.mrb[20].mxu0 %v278_v50  ;;  %1070 = vmatprep.mubr.f32.mxu1 %v285_v51  ;;  %v374_v50 = vld [vmem:[%s2881_s10 + $0x700] sm:$0xff]  ;;  %v381_v51 = vld [vmem:[%s2881_s10 + $0x738] sm:$0xff] }
  0xf1   : > { %1745 = vmatprep.mubr.f32.mxu0 %v291_v53  ;;  %2303 = vmatpush1.bf16.msra.mxu1 %v2302_v52  ;;  %v387_v52 = vld [vmem:[%s2881_s10 + $0x768] sm:$0xff]  ;;  %v380_v53 = vld [vmem:[%s2881_s10 + $0x730] sm:$0xff] }
  0xf2   : > { %2447 = vmatpush1.bf16.msra.mxu0 %v2446_v54  ;;  %2304 = vmatprep.subr.bf16.mxu1 %v2769_v3  ;;  %v386_v54 = vld [vmem:[%s2881_s10 + $0x760] sm:$0xff] }
  0xf3   : > { %1071 = vmatmul.mubr.f32.gmra.mrb[22].mxu1 %v284_v59  ;;  %2448 = vmatprep.subr.bf16.mxu0 %v2769_v3  ;;  %v405_v59 = vld [vmem:[%s2881_s10 + $0x7f8] sm:$0xff] }
  0xf4   : > { %1746 = vmatmul.mubr.f32.gmra.mrb[22].mxu0 %v290_v60  ;;  %1075 = vmatprep.mubr.f32.mxu1 %v297_v61  ;;  %v411_v60 = vld [vmem:[%s2881_s10 + $0x828] sm:$0xff]  ;;  %v404_v61 = vld [vmem:[%s2881_s10 + $0x7f0] sm:$0xff] }
  0xf5   : > { %1750 = vmatprep.mubr.f32.mxu0 %v303_v63  ;;  %2306 = vmatpush1.bf16.msra.mxu1 %v2305_v62  ;;  %v410_v62 = vld [vmem:[%s2881_s10 + $0x820] sm:$0xff]  ;;  %v417_v63 = vld [vmem:[%s2881_s10 + $0x858] sm:$0xff] }
  0xf6   : > { %2450 = vmatpush1.bf16.msra.mxu0 %v2449_v0  ;;  %2307 = vmatprep.subr.bf16.mxu1 %v2769_v3  ;;  %v423_v0 = vld [vmem:[%s2881_s10 + $0x888] sm:$0xff] }
  0xf7   : > { %1076 = vmatmul.mubr.f32.gmra.mrb[24].mxu1 %v296_v6  ;;  %2451 = vmatprep.subr.bf16.mxu0 %v2769_v3  ;;  %v428_v6 = vld [vmem:[%s2881_s10 + $0x8b0] sm:$0xff] }
  0xf8   : > { %1751 = vmatmul.mubr.f32.gmra.mrb[24].mxu0 %v302_v7  ;;  %1080 = vmatprep.mubr.f32.mxu1 %v309_v8  ;;  %v434_v7 = vld [vmem:[%s2881_s10 + $0x8e0] sm:$0xff]  ;;  %v441_v8 = vld [vmem:[%s2881_s10 + $0x918] sm:$0xff] }
  0xf9   : > { %1755 = vmatprep.mubr.f32.mxu0 %v315_v10  ;;  %2309 = vmatpush1.bf16.msra.mxu1 %v2308_v9  ;;  %v447_v9 = vld [vmem:[%s2881_s10 + $0x948] sm:$0xff]  ;;  %v440_v10 = vld [vmem:[%s2881_s10 + $0x910] sm:$0xff] }
  0xfa   : > { %2453 = vmatpush1.bf16.msra.mxu0 %v2452_v11  ;;  %2310 = vmatprep.subr.bf16.mxu1 %v2769_v3  ;;  %v446_v11 = vld [vmem:[%s2881_s10 + $0x940] sm:$0xff] }
  0xfb   : > { %1081 = vmatmul.mubr.f32.gmra.mrb[26].mxu1 %v308_v16  ;;  %2454 = vmatprep.subr.bf16.mxu0 %v2769_v3  ;;  %v465_v16 = vld [vmem:[%s2881_s10 + $0x9d8] sm:$0xff] }
  0xfc   : > { %1756 = vmatmul.mubr.f32.gmra.mrb[26].mxu0 %v314_v17  ;;  %1085 = vmatprep.mubr.f32.mxu1 %v321_v18  ;;  %v471_v17 = vld [vmem:[%s2881_s10 + $0xa08] sm:$0xff]  ;;  %v464_v18 = vld [vmem:[%s2881_s10 + $0x9d0] sm:$0xff] }
  0xfd   : > { %1760 = vmatprep.mubr.f32.mxu0 %v327_v20  ;;  %2312 = vmatpush1.bf16.msra.mxu1 %v2311_v19  ;;  %v470_v19 = vld [vmem:[%s2881_s10 + $0xa00] sm:$0xff]  ;;  %v477_v20 = vld [vmem:[%s2881_s10 + $0xa38] sm:$0xff] }
  0xfe   : > { %2456 = vmatpush1.bf16.msra.mxu0 %v2455_v21  ;;  %2313 = vmatprep.subr.bf16.mxu1 %v2769_v3  ;;  %v483_v21 = vld [vmem:[%s2881_s10 + $0xa68] sm:$0xff] }
  0xff   : > { %1086 = vmatmul.mubr.f32.gmra.mrb[28].mxu1 %v320_v26  ;;  %2457 = vmatprep.subr.bf16.mxu0 %v2769_v3  ;;  %v488_v26 = vld [vmem:[%s2881_s10 + $0xa90] sm:$0xff] }
 0x100   : > { %1761 = vmatmul.mubr.f32.gmra.mrb[28].mxu0 %v326_v27  ;;  %1090 = vmatprep.mubr.f32.mxu1 %v333_v28  ;;  %v494_v27 = vld [vmem:[%s2881_s10 + $0xac0] sm:$0xff]  ;;  %v501_v28 = vld [vmem:[%s2881_s10 + $0xaf8] sm:$0xff] }
 0x101   : > { %1765 = vmatprep.mubr.f32.mxu0 %v339_v30  ;;  %2315 = vmatpush1.bf16.msra.mxu1 %v2314_v29  ;;  %v507_v29 = vld [vmem:[%s2881_s10 + $0xb28] sm:$0xff]  ;;  %v500_v30 = vld [vmem:[%s2881_s10 + $0xaf0] sm:$0xff] }
 0x102   : > { %2459 = vmatpush1.bf16.msra.mxu0 %v2458_v31  ;;  %2316 = vmatprep.subr.bf16.mxu1 %v2769_v3  ;;  %v506_v31 = vld [vmem:[%s2881_s10 + $0xb20] sm:$0xff] }
 0x103   : > { %1091 = vmatmul.mubr.f32.gmra.mrb[30].mxu1 %v332_v36  ;;  %2460 = vmatprep.subr.bf16.mxu0 %v2769_v3  ;;  %v362_v3 = vld [vmem:[%s2881_s10 + $0x6a0] sm:$0xff]  ;;  %v525_v36 = vld [vmem:[%s2881_s10 + $0xbb8] sm:$0xff] }
 0x104   : > { %1766 = vmatmul.mubr.f32.gmra.mrb[30].mxu0 %v338_v37  ;;  %1095 = vmatprep.mubr.f32.mxu1 %v345_v38  ;;  %v531_v37 = vld [vmem:[%s2881_s10 + $0xbe8] sm:$0xff]  ;;  %v524_v38 = vld [vmem:[%s2881_s10 + $0xbb0] sm:$0xff] }
 0x105   : > { %1770 = vmatprep.mubr.f32.mxu0 %v351_v40  ;;  %2318 = vmatpush1.bf16.msra.mxu1 %v2317_v39  ;;  %v530_v39 = vld [vmem:[%s2881_s10 + $0xbe0] sm:$0xff]  ;;  %v155_v40 = vld [vmem:[%s2881_s10 + $0x28] sm:$0xff] }
 0x106   : > { %2462 = vmatpush1.bf16.msra.mxu0 %v2461_v41  ;;  %v161_v41 = vld [vmem:[%s2881_s10 + $0x58] sm:$0xff] }
 0x107   : > { %1096 = vmatmul.mubr.f32.gmra.mrb[32].mxu1 %v344_v42  ;;  %v154_v42 = vld [vmem:[%s2881_s10 + $0x20] sm:$0xff] }
 0x108   : > { %1771 = vmatmul.mubr.f32.gmra.mrb[32].mxu0 %v350_v43  ;;  %1100 = vmatprep.mubr.f32.mxu1 %v357_v44  ;;  %v160_v43 = vld [vmem:[%s2881_s10 + $0x50] sm:$0xff]  ;;  %v167_v44 = vld [vmem:[%s2881_s10 + $0x88] sm:$0xff] }
 0x109   : > { %1775 = vmatprep.mubr.f32.mxu0 %v363_v45  ;;  %v173_v45 = vld [vmem:[%s2881_s10 + $0xb8] sm:$0xff] }
 0x10b   : > { %1101 = vmatmul.mubr.f32.gmra.mrb[34].mxu1 %v356_v46  ;;  %v166_v46 = vld [vmem:[%s2881_s10 + $0x80] sm:$0xff] }
 0x10c   : > { %1776 = vmatmul.mubr.f32.gmra.mrb[34].mxu0 %v362_v3  ;;  %1105 = vmatprep.mubr.f32.mxu1 %v369_v47  ;;  %v172_v3 = vld [vmem:[%s2881_s10 + $0xb0] sm:$0xff]  ;;  %v179_v47 = vld [vmem:[%s2881_s10 + $0xe8] sm:$0xff] }
 0x10d   : > { %1780 = vmatprep.mubr.f32.mxu0 %v375_v48  ;;  %v185_v48 = vld [vmem:[%s2881_s10 + $0x118] sm:$0xff] }
 0x10f   : > { %1106 = vmatmul.mubr.f32.gmra.mrb[36].mxu1 %v368_v49  ;;  %v178_v49 = vld [vmem:[%s2881_s10 + $0xe0] sm:$0xff] }
 0x110   : > { %1781 = vmatmul.mubr.f32.gmra.mrb[36].mxu0 %v374_v50  ;;  %1110 = vmatprep.mubr.f32.mxu1 %v381_v51  ;;  %v184_v50 = vld [vmem:[%s2881_s10 + $0x110] sm:$0xff]  ;;  %v191_v51 = vld [vmem:[%s2881_s10 + $0x148] sm:$0xff] }
 0x111   : > { %1785 = vmatprep.mubr.f32.mxu0 %v387_v52  ;;  %v197_v52 = vld [vmem:[%s2881_s10 + $0x178] sm:$0xff] }
 0x113   : > { %1111 = vmatmul.mubr.f32.gmra.mrb[38].mxu1 %v380_v53  ;;  %v190_v53 = vld [vmem:[%s2881_s10 + $0x140] sm:$0xff] }
 0x114   : > { %1786 = vmatmul.mubr.f32.gmra.mrb[38].mxu0 %v386_v54  ;;  %1115 = vmatprep.mubr.f32.mxu1 %v393_v55  ;;  %v196_v54 = vld [vmem:[%s2881_s10 + $0x170] sm:$0xff]  ;;  %v203_v55 = vld [vmem:[%s2881_s10 + $0x1a8] sm:$0xff] }
 0x115   : > { %1790 = vmatprep.mubr.f32.mxu0 %v399_v56  ;;  %v209_v56 = vld [vmem:[%s2881_s10 + $0x1d8] sm:$0xff] }
 0x117   : > { %1116 = vmatmul.mubr.f32.gmra.mrb[40].mxu1 %v392_v57  ;;  %v202_v57 = vld [vmem:[%s2881_s10 + $0x1a0] sm:$0xff] }
 0x118   : > { %1791 = vmatmul.mubr.f32.gmra.mrb[40].mxu0 %v398_v58  ;;  %1120 = vmatprep.mubr.f32.mxu1 %v405_v59  ;;  %v208_v58 = vld [vmem:[%s2881_s10 + $0x1d0] sm:$0xff]  ;;  %v215_v59 = vld [vmem:[%s2881_s10 + $0x208] sm:$0xff] }
 0x119   : > { %1795 = vmatprep.mubr.f32.mxu0 %v411_v60  ;;  %v221_v60 = vld [vmem:[%s2881_s10 + $0x238] sm:$0xff] }
 0x11b   : > { %1121 = vmatmul.mubr.f32.gmra.mrb[42].mxu1 %v404_v61  ;;  %v214_v61 = vld [vmem:[%s2881_s10 + $0x200] sm:$0xff] }
 0x11c   : > { %1796 = vmatmul.mubr.f32.gmra.mrb[42].mxu0 %v410_v62  ;;  %1125 = vmatprep.mubr.f32.mxu1 %v417_v63  ;;  %v220_v62 = vld [vmem:[%s2881_s10 + $0x230] sm:$0xff]  ;;  %v227_v63 = vld [vmem:[%s2881_s10 + $0x268] sm:$0xff] }
 0x11d   : > { %1800 = vmatprep.mubr.f32.mxu0 %v423_v0  ;;  %v233_v0 = vld [vmem:[%s2881_s10 + $0x298] sm:$0xff] }
 0x11f   : > { %1126 = vmatmul.mubr.f32.gmra.mrb[44].mxu1 %v416_v1  ;;  %v226_v1 = vld [vmem:[%s2881_s10 + $0x260] sm:$0xff] }
 0x120   : > { %1801 = vmatmul.mubr.f32.gmra.mrb[44].mxu0 %v422_v2  ;;  %1130 = vmatprep.mubr.f32.mxu1 %v429_v4  ;;  %v232_v2 = vld [vmem:[%s2881_s10 + $0x290] sm:$0xff]  ;;  %v239_v4 = vld [vmem:[%s2881_s10 + $0x2c8] sm:$0xff] }
 0x121   : > { %1805 = vmatprep.mubr.f32.mxu0 %v435_v5  ;;  %v245_v5 = vld [vmem:[%s2881_s10 + $0x2f8] sm:$0xff] }
 0x123   : > { %1131 = vmatmul.mubr.f32.gmra.mrb[46].mxu1 %v428_v6  ;;  %v238_v6 = vld [vmem:[%s2881_s10 + $0x2c0] sm:$0xff] }
 0x124   : > { %1806 = vmatmul.mubr.f32.gmra.mrb[46].mxu0 %v434_v7  ;;  %1135 = vmatprep.mubr.f32.mxu1 %v441_v8  ;;  %v244_v7 = vld [vmem:[%s2881_s10 + $0x2f0] sm:$0xff]  ;;  %v251_v8 = vld [vmem:[%s2881_s10 + $0x328] sm:$0xff] }
 0x125   : > { %1810 = vmatprep.mubr.f32.mxu0 %v447_v9  ;;  %v257_v9 = vld [vmem:[%s2881_s10 + $0x358] sm:$0xff] }
 0x127   : > { %1136 = vmatmul.mubr.f32.gmra.mrb[48].mxu1 %v440_v10  ;;  %v250_v10 = vld [vmem:[%s2881_s10 + $0x320] sm:$0xff] }
 0x128   : > { %1811 = vmatmul.mubr.f32.gmra.mrb[48].mxu0 %v446_v11  ;;  %1140 = vmatprep.mubr.f32.mxu1 %v453_v12  ;;  %v256_v11 = vld [vmem:[%s2881_s10 + $0x350] sm:$0xff]  ;;  %v263_v12 = vld [vmem:[%s2881_s10 + $0x388] sm:$0xff] }
 0x129   : > { %1815 = vmatprep.mubr.f32.mxu0 %v459_v13  ;;  %v269_v13 = vld [vmem:[%s2881_s10 + $0x3b8] sm:$0xff] }
 0x12b   : > { %1141 = vmatmul.mubr.f32.gmra.mrb[50].mxu1 %v452_v14  ;;  %v262_v14 = vld [vmem:[%s2881_s10 + $0x380] sm:$0xff] }
 0x12c   : > { %1816 = vmatmul.mubr.f32.gmra.mrb[50].mxu0 %v458_v15  ;;  %1145 = vmatprep.mubr.f32.mxu1 %v465_v16  ;;  %v268_v15 = vld [vmem:[%s2881_s10 + $0x3b0] sm:$0xff]  ;;  %v275_v16 = vld [vmem:[%s2881_s10 + $0x3e8] sm:$0xff] }
 0x12d   : > { %1820 = vmatprep.mubr.f32.mxu0 %v471_v17  ;;  %v281_v17 = vld [vmem:[%s2881_s10 + $0x418] sm:$0xff] }
 0x12f   : > { %1146 = vmatmul.mubr.f32.gmra.mrb[52].mxu1 %v464_v18  ;;  %v274_v18 = vld [vmem:[%s2881_s10 + $0x3e0] sm:$0xff] }
 0x130   : > { %1821 = vmatmul.mubr.f32.gmra.mrb[52].mxu0 %v470_v19  ;;  %1150 = vmatprep.mubr.f32.mxu1 %v477_v20  ;;  %v280_v19 = vld [vmem:[%s2881_s10 + $0x410] sm:$0xff]  ;;  %v287_v20 = vld [vmem:[%s2881_s10 + $0x448] sm:$0xff] }
 0x131   : > { %1825 = vmatprep.mubr.f32.mxu0 %v483_v21  ;;  %v293_v21 = vld [vmem:[%s2881_s10 + $0x478] sm:$0xff] }
 0x133   : > { %1151 = vmatmul.mubr.f32.gmra.mrb[54].mxu1 %v476_v22  ;;  %v286_v22 = vld [vmem:[%s2881_s10 + $0x440] sm:$0xff] }
 0x134   : > { %1826 = vmatmul.mubr.f32.gmra.mrb[54].mxu0 %v482_v23  ;;  %1155 = vmatprep.mubr.f32.mxu1 %v489_v24  ;;  %v292_v23 = vld [vmem:[%s2881_s10 + $0x470] sm:$0xff]  ;;  %v299_v24 = vld [vmem:[%s2881_s10 + $0x4a8] sm:$0xff] }
 0x135   : > { %1830 = vmatprep.mubr.f32.mxu0 %v495_v25  ;;  %v305_v25 = vld [vmem:[%s2881_s10 + $0x4d8] sm:$0xff] }
 0x137   : > { %1156 = vmatmul.mubr.f32.gmra.mrb[56].mxu1 %v488_v26  ;;  %v298_v26 = vld [vmem:[%s2881_s10 + $0x4a0] sm:$0xff] }
 0x138   : > { %1831 = vmatmul.mubr.f32.gmra.mrb[56].mxu0 %v494_v27  ;;  %1160 = vmatprep.mubr.f32.mxu1 %v501_v28  ;;  %v304_v27 = vld [vmem:[%s2881_s10 + $0x4d0] sm:$0xff]  ;;  %v311_v28 = vld [vmem:[%s2881_s10 + $0x508] sm:$0xff] }
 0x139   : > { %1835 = vmatprep.mubr.f32.mxu0 %v507_v29  ;;  %v317_v29 = vld [vmem:[%s2881_s10 + $0x538] sm:$0xff] }
 0x13b   : > { %1161 = vmatmul.mubr.f32.gmra.mrb[58].mxu1 %v500_v30  ;;  %v310_v30 = vld [vmem:[%s2881_s10 + $0x500] sm:$0xff] }
 0x13c   : > { %1836 = vmatmul.mubr.f32.gmra.mrb[58].mxu0 %v506_v31  ;;  %1165 = vmatprep.mubr.f32.mxu1 %v513_v32  ;;  %v316_v31 = vld [vmem:[%s2881_s10 + $0x530] sm:$0xff]  ;;  %v323_v32 = vld [vmem:[%s2881_s10 + $0x568] sm:$0xff] }
 0x13d   : > { %1840 = vmatprep.mubr.f32.mxu0 %v519_v33  ;;  %v329_v33 = vld [vmem:[%s2881_s10 + $0x598] sm:$0xff] }
 0x13f   : > { %1166 = vmatmul.mubr.f32.gmra.mrb[60].mxu1 %v512_v34  ;;  %v322_v34 = vld [vmem:[%s2881_s10 + $0x560] sm:$0xff] }
 0x140   : > { %1841 = vmatmul.mubr.f32.gmra.mrb[60].mxu0 %v518_v35  ;;  %1170 = vmatprep.mubr.f32.mxu1 %v525_v36  ;;  %v328_v35 = vld [vmem:[%s2881_s10 + $0x590] sm:$0xff]  ;;  %v335_v36 = vld [vmem:[%s2881_s10 + $0x5c8] sm:$0xff] }
 0x141   : > { %1845 = vmatprep.mubr.f32.mxu0 %v531_v37  ;;  %v341_v37 = vld [vmem:[%s2881_s10 + $0x5f8] sm:$0xff] }
 0x143   : > { %1171 = vmatmul.mubr.f32.gmra.mrb[62].mxu1 %v524_v38  ;;  %v334_v38 = vld [vmem:[%s2881_s10 + $0x5c0] sm:$0xff] }
 0x144   : > { %1846 = vmatmul.mubr.f32.gmra.mrb[62].mxu0 %v530_v39  ;;  %1240 = vmatprep.mubr.f32.mxu1 %v155_v40  ;;  %v340_v39 = vld [vmem:[%s2881_s10 + $0x5f0] sm:$0xff]  ;;  %v347_v40 = vld [vmem:[%s2881_s10 + $0x628] sm:$0xff] }
 0x145   : > { %1915 = vmatprep.mubr.f32.mxu0 %v161_v41  ;;  %v353_v41 = vld [vmem:[%s2881_s10 + $0x658] sm:$0xff] }
 0x147   : > { %1241 = vmatmul.mubr.f32.vlgmr.msra.gmra.mrb[0].mxu1 %v154_v42  ;;  %v346_v42 = vld [vmem:[%s2881_s10 + $0x620] sm:$0xff] }
 0x148   : > { %1916 = vmatmul.mubr.f32.vlgmr.msra.gmra.mrb[0].mxu0 %v160_v43  ;;  %1245 = vmatprep.mubr.f32.mxu1 %v167_v44  ;;  %v352_v43 = vld [vmem:[%s2881_s10 + $0x650] sm:$0xff]  ;;  %v359_v44 = vld [vmem:[%s2881_s10 + $0x688] sm:$0xff] }
 0x149   : > { %1920 = vmatprep.mubr.f32.mxu0 %v173_v45  ;;  %v365_v45 = vld [vmem:[%s2881_s10 + $0x6b8] sm:$0xff] }
 0x14b   : > { %1246 = vmatmul.mubr.f32.gmra.mrb[2].mxu1 %v166_v46  ;;  %v358_v46 = vld [vmem:[%s2881_s10 + $0x680] sm:$0xff] }
 0x14c   : > { %1921 = vmatmul.mubr.f32.gmra.mrb[2].mxu0 %v172_v3  ;;  %1250 = vmatprep.mubr.f32.mxu1 %v179_v47  ;;  %v364_v3 = vld [vmem:[%s2881_s10 + $0x6b0] sm:$0xff]  ;;  %v371_v47 = vld [vmem:[%s2881_s10 + $0x6e8] sm:$0xff] }
 0x14d   : > { %1925 = vmatprep.mubr.f32.mxu0 %v185_v48  ;;  %v377_v48 = vld [vmem:[%s2881_s10 + $0x718] sm:$0xff] }
 0x14f   : > { %1251 = vmatmul.mubr.f32.gmra.mrb[4].mxu1 %v178_v49  ;;  %v370_v49 = vld [vmem:[%s2881_s10 + $0x6e0] sm:$0xff] }
 0x150   : > { %1926 = vmatmul.mubr.f32.gmra.mrb[4].mxu0 %v184_v50  ;;  %1255 = vmatprep.mubr.f32.mxu1 %v191_v51  ;;  %v376_v50 = vld [vmem:[%s2881_s10 + $0x710] sm:$0xff]  ;;  %v383_v51 = vld [vmem:[%s2881_s10 + $0x748] sm:$0xff] }
 0x151   : > { %1930 = vmatprep.mubr.f32.mxu0 %v197_v52  ;;  %v389_v52 = vld [vmem:[%s2881_s10 + $0x778] sm:$0xff] }
 0x153   : > { %1256 = vmatmul.mubr.f32.gmra.mrb[6].mxu1 %v190_v53  ;;  %v382_v53 = vld [vmem:[%s2881_s10 + $0x740] sm:$0xff] }
 0x154   : > { %1931 = vmatmul.mubr.f32.gmra.mrb[6].mxu0 %v196_v54  ;;  %1260 = vmatprep.mubr.f32.mxu1 %v203_v55  ;;  %v388_v54 = vld [vmem:[%s2881_s10 + $0x770] sm:$0xff]  ;;  %v395_v55 = vld [vmem:[%s2881_s10 + $0x7a8] sm:$0xff] }
 0x155   : > { %1935 = vmatprep.mubr.f32.mxu0 %v209_v56  ;;  %v401_v56 = vld [vmem:[%s2881_s10 + $0x7d8] sm:$0xff] }
 0x157   : > { %1261 = vmatmul.mubr.f32.gmra.mrb[8].mxu1 %v202_v57  ;;  %v394_v57 = vld [vmem:[%s2881_s10 + $0x7a0] sm:$0xff] }
 0x158   : > { %1936 = vmatmul.mubr.f32.gmra.mrb[8].mxu0 %v208_v58  ;;  %1265 = vmatprep.mubr.f32.mxu1 %v215_v59  ;;  %v400_v58 = vld [vmem:[%s2881_s10 + $0x7d0] sm:$0xff]  ;;  %v407_v59 = vld [vmem:[%s2881_s10 + $0x808] sm:$0xff] }
 0x159   : > { %1940 = vmatprep.mubr.f32.mxu0 %v221_v60  ;;  %v413_v60 = vld [vmem:[%s2881_s10 + $0x838] sm:$0xff] }
 0x15b   : > { %1266 = vmatmul.mubr.f32.gmra.mrb[10].mxu1 %v214_v61  ;;  %v406_v61 = vld [vmem:[%s2881_s10 + $0x800] sm:$0xff] }
 0x15c   : > { %1941 = vmatmul.mubr.f32.gmra.mrb[10].mxu0 %v220_v62  ;;  %1270 = vmatprep.mubr.f32.mxu1 %v227_v63  ;;  %v412_v62 = vld [vmem:[%s2881_s10 + $0x830] sm:$0xff]  ;;  %v419_v63 = vld [vmem:[%s2881_s10 + $0x868] sm:$0xff] }
 0x15d   : > { %1945 = vmatprep.mubr.f32.mxu0 %v233_v0  ;;  %v425_v0 = vld [vmem:[%s2881_s10 + $0x898] sm:$0xff] }
 0x15f   : > { %1271 = vmatmul.mubr.f32.gmra.mrb[12].mxu1 %v226_v1  ;;  %v418_v1 = vld [vmem:[%s2881_s10 + $0x860] sm:$0xff] }
 0x160   : > { %1946 = vmatmul.mubr.f32.gmra.mrb[12].mxu0 %v232_v2  ;;  %1275 = vmatprep.mubr.f32.mxu1 %v239_v4  ;;  %v424_v2 = vld [vmem:[%s2881_s10 + $0x890] sm:$0xff]  ;;  %v431_v4 = vld [vmem:[%s2881_s10 + $0x8c8] sm:$0xff] }
 0x161   : > { %1950 = vmatprep.mubr.f32.mxu0 %v245_v5  ;;  %v437_v5 = vld [vmem:[%s2881_s10 + $0x8f8] sm:$0xff] }
 0x163   : > { %1276 = vmatmul.mubr.f32.gmra.mrb[14].mxu1 %v238_v6  ;;  %v430_v6 = vld [vmem:[%s2881_s10 + $0x8c0] sm:$0xff] }
 0x164   : > { %1951 = vmatmul.mubr.f32.gmra.mrb[14].mxu0 %v244_v7  ;;  %1280 = vmatprep.mubr.f32.mxu1 %v251_v8  ;;  %v436_v7 = vld [vmem:[%s2881_s10 + $0x8f0] sm:$0xff]  ;;  %v443_v8 = vld [vmem:[%s2881_s10 + $0x928] sm:$0xff] }
 0x165   : > { %1955 = vmatprep.mubr.f32.mxu0 %v257_v9  ;;  %v449_v9 = vld [vmem:[%s2881_s10 + $0x958] sm:$0xff] }
 0x167   : > { %1281 = vmatmul.mubr.f32.gmra.mrb[16].mxu1 %v250_v10  ;;  %v442_v10 = vld [vmem:[%s2881_s10 + $0x920] sm:$0xff] }
 0x168   : > { %1956 = vmatmul.mubr.f32.gmra.mrb[16].mxu0 %v256_v11  ;;  %1285 = vmatprep.mubr.f32.mxu1 %v263_v12  ;;  %v448_v11 = vld [vmem:[%s2881_s10 + $0x950] sm:$0xff]  ;;  %v455_v12 = vld [vmem:[%s2881_s10 + $0x988] sm:$0xff] }
 0x169   : > { %1960 = vmatprep.mubr.f32.mxu0 %v269_v13  ;;  %v461_v13 = vld [vmem:[%s2881_s10 + $0x9b8] sm:$0xff] }
 0x16b   : > { %1286 = vmatmul.mubr.f32.gmra.mrb[18].mxu1 %v262_v14  ;;  %v454_v14 = vld [vmem:[%s2881_s10 + $0x980] sm:$0xff] }
 0x16c   : > { %1961 = vmatmul.mubr.f32.gmra.mrb[18].mxu0 %v268_v15  ;;  %1290 = vmatprep.mubr.f32.mxu1 %v275_v16  ;;  %v460_v15 = vld [vmem:[%s2881_s10 + $0x9b0] sm:$0xff]  ;;  %v467_v16 = vld [vmem:[%s2881_s10 + $0x9e8] sm:$0xff] }
 0x16d   : > { %1965 = vmatprep.mubr.f32.mxu0 %v281_v17  ;;  %v473_v17 = vld [vmem:[%s2881_s10 + $0xa18] sm:$0xff] }
 0x16f   : > { %1291 = vmatmul.mubr.f32.gmra.mrb[20].mxu1 %v274_v18  ;;  %v466_v18 = vld [vmem:[%s2881_s10 + $0x9e0] sm:$0xff] }
 0x170   : > { %1966 = vmatmul.mubr.f32.gmra.mrb[20].mxu0 %v280_v19  ;;  %1295 = vmatprep.mubr.f32.mxu1 %v287_v20  ;;  %v472_v19 = vld [vmem:[%s2881_s10 + $0xa10] sm:$0xff]  ;;  %v479_v20 = vld [vmem:[%s2881_s10 + $0xa48] sm:$0xff] }
 0x171   : > { %1970 = vmatprep.mubr.f32.mxu0 %v293_v21  ;;  %v485_v21 = vld [vmem:[%s2881_s10 + $0xa78] sm:$0xff] }
 0x173   : > { %1296 = vmatmul.mubr.f32.gmra.mrb[22].mxu1 %v286_v22  ;;  %v478_v22 = vld [vmem:[%s2881_s10 + $0xa40] sm:$0xff] }
 0x174   : > { %1971 = vmatmul.mubr.f32.gmra.mrb[22].mxu0 %v292_v23  ;;  %1300 = vmatprep.mubr.f32.mxu1 %v299_v24  ;;  %v484_v23 = vld [vmem:[%s2881_s10 + $0xa70] sm:$0xff]  ;;  %v491_v24 = vld [vmem:[%s2881_s10 + $0xaa8] sm:$0xff] }
 0x175   : > { %1975 = vmatprep.mubr.f32.mxu0 %v305_v25  ;;  %v497_v25 = vld [vmem:[%s2881_s10 + $0xad8] sm:$0xff] }
 0x177   : > { %1301 = vmatmul.mubr.f32.gmra.mrb[24].mxu1 %v298_v26  ;;  %v490_v26 = vld [vmem:[%s2881_s10 + $0xaa0] sm:$0xff] }
 0x178   : > { %1976 = vmatmul.mubr.f32.gmra.mrb[24].mxu0 %v304_v27  ;;  %1305 = vmatprep.mubr.f32.mxu1 %v311_v28  ;;  %v496_v27 = vld [vmem:[%s2881_s10 + $0xad0] sm:$0xff]  ;;  %v503_v28 = vld [vmem:[%s2881_s10 + $0xb08] sm:$0xff] }
 0x179   : > { %1980 = vmatprep.mubr.f32.mxu0 %v317_v29  ;;  %v509_v29 = vld [vmem:[%s2881_s10 + $0xb38] sm:$0xff] }
 0x17b   : > { %1306 = vmatmul.mubr.f32.gmra.mrb[26].mxu1 %v310_v30  ;;  %v502_v30 = vld [vmem:[%s2881_s10 + $0xb00] sm:$0xff] }
 0x17c   : > { %1981 = vmatmul.mubr.f32.gmra.mrb[26].mxu0 %v316_v31  ;;  %1310 = vmatprep.mubr.f32.mxu1 %v323_v32  ;;  %v508_v31 = vld [vmem:[%s2881_s10 + $0xb30] sm:$0xff]  ;;  %v515_v32 = vld [vmem:[%s2881_s10 + $0xb68] sm:$0xff] }
 0x17d   : > { %1985 = vmatprep.mubr.f32.mxu0 %v329_v33  ;;  %v521_v33 = vld [vmem:[%s2881_s10 + $0xb98] sm:$0xff] }
 0x17f   : > { %1311 = vmatmul.mubr.f32.gmra.mrb[28].mxu1 %v322_v34  ;;  %v514_v34 = vld [vmem:[%s2881_s10 + $0xb60] sm:$0xff] }
 0x180   : > { %1986 = vmatmul.mubr.f32.gmra.mrb[28].mxu0 %v328_v35  ;;  %1315 = vmatprep.mubr.f32.mxu1 %v335_v36  ;;  %v520_v35 = vld [vmem:[%s2881_s10 + $0xb90] sm:$0xff]  ;;  %v527_v36 = vld [vmem:[%s2881_s10 + $0xbc8] sm:$0xff] }
 0x181   : > { %1990 = vmatprep.mubr.f32.mxu0 %v341_v37  ;;  %v533_v37 = vld [vmem:[%s2881_s10 + $0xbf8] sm:$0xff] }
 0x183   : > { %1316 = vmatmul.mubr.f32.gmra.mrb[30].mxu1 %v334_v38  ;;  %v526_v38 = vld [vmem:[%s2881_s10 + $0xbc0] sm:$0xff] }
 0x184   : > { %1991 = vmatmul.mubr.f32.gmra.mrb[30].mxu0 %v340_v39  ;;  %1320 = vmatprep.mubr.f32.mxu1 %v347_v40  ;;  %v532_v39 = vld [vmem:[%s2881_s10 + $0xbf0] sm:$0xff] }
 0x185   : > { %1995 = vmatprep.mubr.f32.mxu0 %v353_v41 }
 0x187   : > { %1321 = vmatmul.mubr.f32.gmra.mrb[32].mxu1 %v346_v42 }
 0x188   : > { %1996 = vmatmul.mubr.f32.gmra.mrb[32].mxu0 %v352_v43  ;;  %1325 = vmatprep.mubr.f32.mxu1 %v359_v44 }
 0x189   : > { %2000 = vmatprep.mubr.f32.mxu0 %v365_v45 }
 0x18b   : > { %1326 = vmatmul.mubr.f32.gmra.mrb[34].mxu1 %v358_v46 }
 0x18c   : > { %2001 = vmatmul.mubr.f32.gmra.mrb[34].mxu0 %v364_v3  ;;  %1330 = vmatprep.mubr.f32.mxu1 %v371_v47 }
 0x18d   : > { %2005 = vmatprep.mubr.f32.mxu0 %v377_v48 }
 0x18f   : > { %1331 = vmatmul.mubr.f32.gmra.mrb[36].mxu1 %v370_v49 }
 0x190   : > { %2006 = vmatmul.mubr.f32.gmra.mrb[36].mxu0 %v376_v50  ;;  %1335 = vmatprep.mubr.f32.mxu1 %v383_v51 }
 0x191   : > { %2010 = vmatprep.mubr.f32.mxu0 %v389_v52 }
 0x193   : > { %1336 = vmatmul.mubr.f32.gmra.mrb[38].mxu1 %v382_v53 }
 0x194   : > { %2011 = vmatmul.mubr.f32.gmra.mrb[38].mxu0 %v388_v54  ;;  %1340 = vmatprep.mubr.f32.mxu1 %v395_v55 }
 0x195   : > { %2015 = vmatprep.mubr.f32.mxu0 %v401_v56 }
 0x197   : > { %1341 = vmatmul.mubr.f32.gmra.mrb[40].mxu1 %v394_v57 }
 0x198   : > { %2016 = vmatmul.mubr.f32.gmra.mrb[40].mxu0 %v400_v58  ;;  %1345 = vmatprep.mubr.f32.mxu1 %v407_v59 }
 0x199   : > { %2020 = vmatprep.mubr.f32.mxu0 %v413_v60 }
 0x19b   : > { %1346 = vmatmul.mubr.f32.gmra.mrb[42].mxu1 %v406_v61 }
 0x19c   : > { %2021 = vmatmul.mubr.f32.gmra.mrb[42].mxu0 %v412_v62  ;;  %1350 = vmatprep.mubr.f32.mxu1 %v419_v63 }
 0x19d   : > { %2025 = vmatprep.mubr.f32.mxu0 %v425_v0 }
 0x19f   : > { %1351 = vmatmul.mubr.f32.gmra.mrb[44].mxu1 %v418_v1 }
 0x1a0   : > { %2026 = vmatmul.mubr.f32.gmra.mrb[44].mxu0 %v424_v2  ;;  %1355 = vmatprep.mubr.f32.mxu1 %v431_v4 }
 0x1a1   : > { %2030 = vmatprep.mubr.f32.mxu0 %v437_v5 }
 0x1a3   : > { %1356 = vmatmul.mubr.f32.gmra.mrb[46].mxu1 %v430_v6 }
 0x1a4   : > { %2031 = vmatmul.mubr.f32.gmra.mrb[46].mxu0 %v436_v7  ;;  %1360 = vmatprep.mubr.f32.mxu1 %v443_v8 }
 0x1a5   : > { %2035 = vmatprep.mubr.f32.mxu0 %v449_v9 }
 0x1a7   : > { %1361 = vmatmul.mubr.f32.gmra.mrb[48].mxu1 %v442_v10 }
 0x1a8   : > { %2036 = vmatmul.mubr.f32.gmra.mrb[48].mxu0 %v448_v11  ;;  %1365 = vmatprep.mubr.f32.mxu1 %v455_v12 }
 0x1a9   : > { %2040 = vmatprep.mubr.f32.mxu0 %v461_v13 }
 0x1ab   : > { %1366 = vmatmul.mubr.f32.gmra.mrb[50].mxu1 %v454_v14 }
 0x1ac   : > { %2041 = vmatmul.mubr.f32.gmra.mrb[50].mxu0 %v460_v15  ;;  %1370 = vmatprep.mubr.f32.mxu1 %v467_v16 }
 0x1ad   : > { %2045 = vmatprep.mubr.f32.mxu0 %v473_v17 }
 0x1af   : > { %1371 = vmatmul.mubr.f32.gmra.mrb[52].mxu1 %v466_v18 }
 0x1b0   : > { %2046 = vmatmul.mubr.f32.gmra.mrb[52].mxu0 %v472_v19  ;;  %1375 = vmatprep.mubr.f32.mxu1 %v479_v20 }
 0x1b1   : > { %2050 = vmatprep.mubr.f32.mxu0 %v485_v21 }
 0x1b3   : > { %1376 = vmatmul.mubr.f32.gmra.mrb[54].mxu1 %v478_v22 }
 0x1b4   : > { %2051 = vmatmul.mubr.f32.gmra.mrb[54].mxu0 %v484_v23  ;;  %1380 = vmatprep.mubr.f32.mxu1 %v491_v24 }
 0x1b5   : > { %2055 = vmatprep.mubr.f32.mxu0 %v497_v25 }
 0x1b7   : > { %1381 = vmatmul.mubr.f32.gmra.mrb[56].mxu1 %v490_v26 }
 0x1b8   : > { %2056 = vmatmul.mubr.f32.gmra.mrb[56].mxu0 %v496_v27  ;;  %1385 = vmatprep.mubr.f32.mxu1 %v503_v28 }
 0x1b9   : > { %2060 = vmatprep.mubr.f32.mxu0 %v509_v29 }
 0x1bb   : > { %1386 = vmatmul.mubr.f32.gmra.mrb[58].mxu1 %v502_v30 }
 0x1bc   : > { %2061 = vmatmul.mubr.f32.gmra.mrb[58].mxu0 %v508_v31  ;;  %1390 = vmatprep.mubr.f32.mxu1 %v515_v32 }
 0x1bd   : > { %2065 = vmatprep.mubr.f32.mxu0 %v521_v33 }
 0x1bf   : > { %1391 = vmatmul.mubr.f32.gmra.mrb[60].mxu1 %v514_v34 }
 0x1c0   : > { %2066 = vmatmul.mubr.f32.gmra.mrb[60].mxu0 %v520_v35  ;;  %1395 = vmatprep.mubr.f32.mxu1 %v527_v36 }
 0x1c1   : > { %2070 = vmatprep.mubr.f32.mxu0 %v533_v37 }
 0x1c3   : > { %1396 = vmatmul.mubr.f32.gmra.mrb[62].mxu1 %v526_v38 }
 0x1c4   : > { %2071 = vmatmul.mubr.f32.gmra.mrb[62].mxu0 %v532_v39 }
 0x21a   : > { %v1242_v40 = vpop.f32.mrb[0].mxu1 }
 0x21b   : > { %v1917_v41 = vpop.f32.mrb[0].mxu0  ;;  %v1244_v42 = vpop.f32.mrb[1].mxu1 }
 0x21c   : > { %v2463_v43 = vadd.f32 %v1917_v41, %v1242_v40  ;;  %v1919_v44 = vpop.f32.mrb[1].mxu0 }
 0x21e   : > { %2076 = vst [vmem:[%s3861_s25] sm:$0xff] %v2463_v43  ;;  %v1247_v45 = vpop.f32.mrb[2].mxu1 }
 0x21f   : > { %v1922_v46 = vpop.f32.mrb[2].mxu0  ;;  %v1249_v3 = vpop.f32.mrb[3].mxu1 }
 0x220   : > { %v2464_v47 = vadd.f32 %v1922_v46, %v1247_v45  ;;  %v1924_v48 = vpop.f32.mrb[3].mxu0 }
 0x222   : > { %2077 = vst [vmem:[%s3861_s25 + $0x8] sm:$0xff] %v2464_v47  ;;  %v1252_v49 = vpop.f32.mrb[4].mxu1 }
 0x223   : > { %v1927_v50 = vpop.f32.mrb[4].mxu0  ;;  %v1254_v51 = vpop.f32.mrb[5].mxu1 }
 0x224   : > { %v2465_v52 = vadd.f32 %v1927_v50, %v1252_v49  ;;  %v1929_v53 = vpop.f32.mrb[5].mxu0 }
 0x226   : > { %2078 = vst [vmem:[%s3861_s25 + $0x10] sm:$0xff] %v2465_v52  ;;  %v1257_v54 = vpop.f32.mrb[6].mxu1 }
 0x227   : > { %v1932_v55 = vpop.f32.mrb[6].mxu0  ;;  %v1259_v56 = vpop.f32.mrb[7].mxu1 }
 0x228   : > { %v2466_v57 = vadd.f32 %v1932_v55, %v1257_v54  ;;  %v1934_v58 = vpop.f32.mrb[7].mxu0 }
 0x22a   : > { %2079 = vst [vmem:[%s3861_s25 + $0x18] sm:$0xff] %v2466_v57  ;;  %v1262_v59 = vpop.f32.mrb[8].mxu1 }
 0x22b   : > { %v1937_v60 = vpop.f32.mrb[8].mxu0  ;;  %v1264_v61 = vpop.f32.mrb[9].mxu1 }
 0x22c   : > { %v2467_v62 = vadd.f32 %v1937_v60, %v1262_v59  ;;  %v1939_v63 = vpop.f32.mrb[9].mxu0 }
 0x22e   : > { %2080 = vst [vmem:[%s3861_s25 + $0x20] sm:$0xff] %v2467_v62  ;;  %v1267_v0 = vpop.f32.mrb[10].mxu1 }
 0x22f   : > { %v1942_v1 = vpop.f32.mrb[10].mxu0  ;;  %v1269_v2 = vpop.f32.mrb[11].mxu1 }
 0x230   : > { %v2468_v4 = vadd.f32 %v1942_v1, %v1267_v0  ;;  %v1944_v5 = vpop.f32.mrb[11].mxu0 }
 0x232   : > { %2081 = vst [vmem:[%s3861_s25 + $0x28] sm:$0xff] %v2468_v4  ;;  %v1272_v6 = vpop.f32.mrb[12].mxu1 }
 0x233   : > { %v1947_v7 = vpop.f32.mrb[12].mxu0  ;;  %v1274_v8 = vpop.f32.mrb[13].mxu1 }
 0x234   : > { %v2469_v9 = vadd.f32 %v1947_v7, %v1272_v6  ;;  %v1949_v10 = vpop.f32.mrb[13].mxu0 }
 0x236   : > { %2082 = vst [vmem:[%s3861_s25 + $0x30] sm:$0xff] %v2469_v9  ;;  %v1277_v11 = vpop.f32.mrb[14].mxu1 }
 0x237   : > { %v1952_v12 = vpop.f32.mrb[14].mxu0  ;;  %v1279_v13 = vpop.f32.mrb[15].mxu1 }
 0x238   : > { %v2470_v14 = vadd.f32 %v1952_v12, %v1277_v11  ;;  %v1954_v15 = vpop.f32.mrb[15].mxu0 }
 0x23a   : > { %2083 = vst [vmem:[%s3861_s25 + $0x38] sm:$0xff] %v2470_v14  ;;  %v1282_v16 = vpop.f32.mrb[16].mxu1 }
 0x23b   : > { %v1957_v17 = vpop.f32.mrb[16].mxu0  ;;  %v1284_v18 = vpop.f32.mrb[17].mxu1 }
 0x23c   : > { %v2471_v19 = vadd.f32 %v1957_v17, %v1282_v16  ;;  %v1959_v20 = vpop.f32.mrb[17].mxu0 }
 0x23e   : > { %2084 = vst [vmem:[%s3861_s25 + $0x40] sm:$0xff] %v2471_v19  ;;  %v1287_v21 = vpop.f32.mrb[18].mxu1 }
 0x23f   : > { %v1962_v22 = vpop.f32.mrb[18].mxu0  ;;  %v1289_v23 = vpop.f32.mrb[19].mxu1 }
 0x240   : > { %v2472_v24 = vadd.f32 %v1962_v22, %v1287_v21  ;;  %v1964_v25 = vpop.f32.mrb[19].mxu0 }
 0x242   : > { %2085 = vst [vmem:[%s3861_s25 + $0x48] sm:$0xff] %v2472_v24  ;;  %v1292_v26 = vpop.f32.mrb[20].mxu1 }
 0x243   : > { %v1967_v27 = vpop.f32.mrb[20].mxu0  ;;  %v1294_v28 = vpop.f32.mrb[21].mxu1 }
 0x244   : > { %v2473_v29 = vadd.f32 %v1967_v27, %v1292_v26  ;;  %v1969_v30 = vpop.f32.mrb[21].mxu0 }
 0x246   : > { %2086 = vst [vmem:[%s3861_s25 + $0x50] sm:$0xff] %v2473_v29  ;;  %v1297_v31 = vpop.f32.mrb[22].mxu1 }
 0x247   : > { %v1972_v32 = vpop.f32.mrb[22].mxu0  ;;  %v1299_v33 = vpop.f32.mrb[23].mxu1 }
 0x248   : > { %v2474_v34 = vadd.f32 %v1972_v32, %v1297_v31  ;;  %v1974_v35 = vpop.f32.mrb[23].mxu0 }
 0x24a   : > { %2087 = vst [vmem:[%s3861_s25 + $0x58] sm:$0xff] %v2474_v34  ;;  %v1302_v36 = vpop.f32.mrb[24].mxu1 }
 0x24b   : > { %v1977_v37 = vpop.f32.mrb[24].mxu0  ;;  %v1304_v38 = vpop.f32.mrb[25].mxu1 }
 0x24c   : > { %v2475_v39 = vadd.f32 %v1977_v37, %v1302_v36  ;;  %v1979_v40 = vpop.f32.mrb[25].mxu0 }
 0x24e   : > { %2088 = vst [vmem:[%s3861_s25 + $0x60] sm:$0xff] %v2475_v39  ;;  %v1307_v41 = vpop.f32.mrb[26].mxu1 }
 0x24f   : > { %v1982_v42 = vpop.f32.mrb[26].mxu0  ;;  %v1309_v43 = vpop.f32.mrb[27].mxu1 }
 0x250   : > { %v2476_v44 = vadd.f32 %v1982_v42, %v1307_v41  ;;  %v1984_v45 = vpop.f32.mrb[27].mxu0 }
 0x252   : > { %2089 = vst [vmem:[%s3861_s25 + $0x68] sm:$0xff] %v2476_v44  ;;  %v1312_v46 = vpop.f32.mrb[28].mxu1 }
 0x253   : > { %v1987_v3 = vpop.f32.mrb[28].mxu0  ;;  %v1314_v47 = vpop.f32.mrb[29].mxu1 }
 0x254   : > { %v2477_v48 = vadd.f32 %v1987_v3, %v1312_v46  ;;  %v1989_v49 = vpop.f32.mrb[29].mxu0 }
 0x256   : > { %2090 = vst [vmem:[%s3861_s25 + $0x70] sm:$0xff] %v2477_v48  ;;  %v1317_v50 = vpop.f32.mrb[30].mxu1 }
 0x257   : > { %v1992_v51 = vpop.f32.mrb[30].mxu0  ;;  %v1319_v52 = vpop.f32.mrb[31].mxu1 }
 0x258   : > { %v2478_v53 = vadd.f32 %v1992_v51, %v1317_v50  ;;  %v1994_v54 = vpop.f32.mrb[31].mxu0 }
 0x25a   : > { %2091 = vst [vmem:[%s3861_s25 + $0x78] sm:$0xff] %v2478_v53  ;;  %v1322_v55 = vpop.f32.mrb[32].mxu1 }
 0x25b   : > { %v1997_v56 = vpop.f32.mrb[32].mxu0  ;;  %v1324_v57 = vpop.f32.mrb[33].mxu1 }
 0x25c   : > { %v2479_v58 = vadd.f32 %v1997_v56, %v1322_v55  ;;  %v1999_v59 = vpop.f32.mrb[33].mxu0 }
 0x25e   : > { %2092 = vst [vmem:[%s3861_s25 + $0x80] sm:$0xff] %v2479_v58  ;;  %v1327_v60 = vpop.f32.mrb[34].mxu1 }
 0x25f   : > { %v2002_v61 = vpop.f32.mrb[34].mxu0  ;;  %v1329_v62 = vpop.f32.mrb[35].mxu1 }
 0x260   : > { %v2480_v63 = vadd.f32 %v2002_v61, %v1327_v60  ;;  %v2004_v0 = vpop.f32.mrb[35].mxu0 }
 0x262   : > { %2093 = vst [vmem:[%s3861_s25 + $0x88] sm:$0xff] %v2480_v63  ;;  %v1332_v1 = vpop.f32.mrb[36].mxu1 }
 0x263   : > { %v2007_v2 = vpop.f32.mrb[36].mxu0  ;;  %v1334_v4 = vpop.f32.mrb[37].mxu1 }
 0x264   : > { %v2481_v5 = vadd.f32 %v2007_v2, %v1332_v1  ;;  %v2009_v6 = vpop.f32.mrb[37].mxu0 }
 0x266   : > { %2094 = vst [vmem:[%s3861_s25 + $0x90] sm:$0xff] %v2481_v5  ;;  %v1337_v7 = vpop.f32.mrb[38].mxu1 }
 0x267   : > { %v2012_v8 = vpop.f32.mrb[38].mxu0  ;;  %v1339_v9 = vpop.f32.mrb[39].mxu1 }
 0x268   : > { %v2482_v10 = vadd.f32 %v2012_v8, %v1337_v7  ;;  %v2014_v11 = vpop.f32.mrb[39].mxu0 }
 0x26a   : > { %2095 = vst [vmem:[%s3861_s25 + $0x98] sm:$0xff] %v2482_v10  ;;  %v1342_v12 = vpop.f32.mrb[40].mxu1 }
 0x26b   : > { %v2017_v13 = vpop.f32.mrb[40].mxu0  ;;  %v1344_v14 = vpop.f32.mrb[41].mxu1 }
 0x26c   : > { %v2483_v15 = vadd.f32 %v2017_v13, %v1342_v12  ;;  %v2019_v16 = vpop.f32.mrb[41].mxu0 }
 0x26e   : > { %2096 = vst [vmem:[%s3861_s25 + $0xa0] sm:$0xff] %v2483_v15  ;;  %v1347_v17 = vpop.f32.mrb[42].mxu1 }
 0x26f   : > { %v2022_v18 = vpop.f32.mrb[42].mxu0  ;;  %v1349_v19 = vpop.f32.mrb[43].mxu1 }
 0x270   : > { %v2484_v20 = vadd.f32 %v2022_v18, %v1347_v17  ;;  %v2024_v21 = vpop.f32.mrb[43].mxu0 }
 0x272   : > { %2097 = vst [vmem:[%s3861_s25 + $0xa8] sm:$0xff] %v2484_v20  ;;  %v1352_v22 = vpop.f32.mrb[44].mxu1 }
 0x273   : > { %v2027_v23 = vpop.f32.mrb[44].mxu0  ;;  %v1354_v24 = vpop.f32.mrb[45].mxu1 }
 0x274   : > { %v2485_v25 = vadd.f32 %v2027_v23, %v1352_v22  ;;  %v2029_v26 = vpop.f32.mrb[45].mxu0 }
 0x276   : > { %2098 = vst [vmem:[%s3861_s25 + $0xb0] sm:$0xff] %v2485_v25  ;;  %v1357_v27 = vpop.f32.mrb[46].mxu1 }
 0x277   : > { %v2032_v28 = vpop.f32.mrb[46].mxu0  ;;  %v1359_v29 = vpop.f32.mrb[47].mxu1 }
 0x278   : > { %v2486_v30 = vadd.f32 %v2032_v28, %v1357_v27  ;;  %v2034_v31 = vpop.f32.mrb[47].mxu0 }
 0x27a   : > { %2099 = vst [vmem:[%s3861_s25 + $0xb8] sm:$0xff] %v2486_v30  ;;  %v1362_v32 = vpop.f32.mrb[48].mxu1 }
 0x27b   : > { %v2037_v33 = vpop.f32.mrb[48].mxu0  ;;  %v1364_v34 = vpop.f32.mrb[49].mxu1 }
 0x27c   : > { %v2487_v35 = vadd.f32 %v2037_v33, %v1362_v32  ;;  %v2039_v36 = vpop.f32.mrb[49].mxu0 }
 0x27e   : > { %2100 = vst [vmem:[%s3861_s25 + $0xc0] sm:$0xff] %v2487_v35  ;;  %v1367_v37 = vpop.f32.mrb[50].mxu1 }
 0x27f   : > { %v2042_v38 = vpop.f32.mrb[50].mxu0  ;;  %v1369_v39 = vpop.f32.mrb[51].mxu1 }
 0x280   : > { %v2488_v40 = vadd.f32 %v2042_v38, %v1367_v37  ;;  %v2044_v41 = vpop.f32.mrb[51].mxu0 }
 0x282   : > { %2101 = vst [vmem:[%s3861_s25 + $0xc8] sm:$0xff] %v2488_v40  ;;  %v1372_v42 = vpop.f32.mrb[52].mxu1 }
 0x283   : > { %v2047_v43 = vpop.f32.mrb[52].mxu0  ;;  %v1374_v44 = vpop.f32.mrb[53].mxu1 }
 0x284   : > { %v2489_v45 = vadd.f32 %v2047_v43, %v1372_v42  ;;  %v2049_v46 = vpop.f32.mrb[53].mxu0 }
 0x286   : > { %2102 = vst [vmem:[%s3861_s25 + $0xd0] sm:$0xff] %v2489_v45  ;;  %v1377_v3 = vpop.f32.mrb[54].mxu1 }
 0x287   : > { %v2052_v47 = vpop.f32.mrb[54].mxu0  ;;  %v1379_v48 = vpop.f32.mrb[55].mxu1 }
 0x288   : > { %v2490_v49 = vadd.f32 %v2052_v47, %v1377_v3  ;;  %v2054_v50 = vpop.f32.mrb[55].mxu0 }
 0x28a   : > { %2103 = vst [vmem:[%s3861_s25 + $0xd8] sm:$0xff] %v2490_v49  ;;  %v1382_v51 = vpop.f32.mrb[56].mxu1 }
 0x28b   : > { %v2057_v52 = vpop.f32.mrb[56].mxu0  ;;  %v1384_v53 = vpop.f32.mrb[57].mxu1 }
 0x28c   : > { %v2491_v54 = vadd.f32 %v2057_v52, %v1382_v51  ;;  %v2059_v55 = vpop.f32.mrb[57].mxu0 }
 0x28e   : > { %2104 = vst [vmem:[%s3861_s25 + $0xe0] sm:$0xff] %v2491_v54  ;;  %v1387_v56 = vpop.f32.mrb[58].mxu1 }
 0x28f   : > { %v2062_v57 = vpop.f32.mrb[58].mxu0  ;;  %v1389_v58 = vpop.f32.mrb[59].mxu1 }
 0x290   : > { %v2492_v59 = vadd.f32 %v2062_v57, %v1387_v56  ;;  %v2064_v60 = vpop.f32.mrb[59].mxu0 }
 0x292   : > { %2105 = vst [vmem:[%s3861_s25 + $0xe8] sm:$0xff] %v2492_v59  ;;  %v1392_v61 = vpop.f32.mrb[60].mxu1 }
 0x293   : > { %v2067_v62 = vpop.f32.mrb[60].mxu0  ;;  %v1394_v63 = vpop.f32.mrb[61].mxu1 }
 0x294   : > { %v2493_v0 = vadd.f32 %v2067_v62, %v1392_v61  ;;  %v2069_v1 = vpop.f32.mrb[61].mxu0 }
 0x296   : > { %2106 = vst [vmem:[%s3861_s25 + $0xf0] sm:$0xff] %v2493_v0  ;;  %v1397_v2 = vpop.f32.mrb[62].mxu1 }
 0x297   : > { %v2072_v4 = vpop.f32.mrb[62].mxu0  ;;  %v1399_v5 = vpop.f32.mrb[63].mxu1 }
 0x298   : > { %v2494_v6 = vadd.f32 %v2072_v4, %v1397_v2  ;;  %v2074_v7 = vpop.f32.mrb[63].mxu0 }
 0x29a   : > { %2107 = vst [vmem:[%s3861_s25 + $0xf8] sm:$0xff] %v2494_v6 }
 0x29b PF: > { %s12_s9 = sadd.s32 1, %s2767_s9  }
 0x29c   : > { %p9_p4 = scmp.ge.s32.totalorder %s12_s9, 4  }
 0x29e   :  { %11 = sbr.rel (!%p9_p4) target bundleno = 1 (0x1), region = 58 }

</bundles_post_ra>
